<compile_context>
chip_gen: v7x
topology: tpu7x:2x2x1
jax: 0.10.0
libtpu: 0.0.40
codegen_flags: <defaults>
</compile_context>

<pallas_src>
import functools

import jax
import jax.numpy as jnp
import numpy as np
from jax import lax
from jax.experimental import pallas as pl
from jax.experimental.pallas import tpu as pltpu


# ----------------------------- Pallas kernel ------------------------------ #
def resnet_kernel(
    x_ref,                 # (TM, S)   int32   raw integer state
    expand_ref,            # (S, F)    f32     E[s, f] = 1 iff f // depth == s
    vmod_ref,              # (1, F)    f32     vmod[f] = f % depth
    w1_ref, b1_ref,        # (F, H)  bf16, (1, H)  f32    fc1 (+bn1 folded)
    w2_ref, b2_ref,        # (H, D)  bf16, (1, D)  f32    fc2 (+bn2 folded)
    bw1_ref, bb1_ref,      # (NB, D, D) bf16, (NB, 1, D) f32   block fc1 (+bn1)
    bw2_ref, bb2_ref,      # (NB, D, D) bf16, (NB, 1, D) f32   block fc2 (+bn2)
    hw1_ref, hb1_ref,      # (D, 2D) bf16, (1, 2D) f32   fused [policy_fc1 | value_fc1] (+bn)
    hwo_ref, hbo_ref,      # (2D, OUT_W) bf16, (1, OUT_W) f32  block-diag [policy_out ; value_out]
    out_ref,               # (TM, OUT_W) f32   lanes [0,P): softmax(policy); lane P: value; rest 0
    *, policy_dim,
):
    f32 = jnp.float32
    bf16 = jnp.bfloat16

    # --- In-kernel one-hot encode (replaces wrapper-side jax.nn.one_hot) ---
    # x_exp[b, f] = x[b, f // depth]  via a tiny (TM,S)@(S,F) matmul (exact:
    # one 0/1 term per column), then one-hot = (x_exp == f % depth).
    x_f = x_ref[...].astype(f32)                                       # (TM, S)
    x_exp = jnp.dot(x_f, expand_ref[...], preferred_element_type=f32)  # (TM, F)
    onehot = jnp.where(x_exp == vmod_ref[...], 1.0, 0.0).astype(bf16)  # (TM, F)

    def linear(x_bf16, w_ref, b_ref):
        # bf16 MXU matmul, f32 accumulation; bias add stays in f32.
        return jnp.dot(x_bf16, w_ref[...], preferred_element_type=f32) + b_ref[...]

    # fc1 -> bn1(folded) -> relu -> dropout(identity); bf16 activation storage.
    h = jnp.maximum(linear(onehot, w1_ref, b1_ref), 0.0).astype(bf16)
    # fc2 -> bn2(folded) -> relu -> dropout(identity)
    h = jnp.maximum(linear(h, w2_ref, b2_ref), 0.0).astype(bf16)

    # Residual blocks (weights stacked on axis 0; statically unrolled, NB small).
    num_blocks = bw1_ref.shape[0]
    for i in range(num_blocks):
        residual_f32 = h.astype(f32)
        o = jnp.dot(h, bw1_ref[i], preferred_element_type=f32) + bb1_ref[i]
        o = jnp.maximum(o, 0.0).astype(bf16)            # fc1 -> bn1(folded) -> relu
        o = jnp.dot(o, bw2_ref[i], preferred_element_type=f32) + bb2_ref[i]
        h = jnp.maximum(o + residual_f32, 0.0).astype(bf16)  # fc2 -> bn2 -> +res -> relu

    # Fused heads: one (D, 2D) matmul for policy_fc1|value_fc1, then one
    # (2D, OUT_W) block-diagonal matmul producing logits + value in one tile.
    hv = jnp.maximum(linear(h, hw1_ref, hb1_ref), 0.0).astype(bf16)  # (TM, 2D)
    heads = linear(hv, hwo_ref, hbo_ref)                              # (TM, OUT_W) f32

    # Softmax over policy lanes only; value / padding lanes pass through raw.
    lane = lax.broadcasted_iota(jnp.int32, heads.shape, 1)
    is_policy = lane < policy_dim
    logits = jnp.where(is_policy, heads, -1e30)          # mask non-policy lanes
    m = jnp.max(logits, axis=-1, keepdims=True)
    e = jnp.exp(logits - m)                               # exactly 0 on masked lanes
    denom = jnp.sum(e, axis=-1, keepdims=True)
    softmax = e / denom                                   # exact normalization (off MXU path)

    # Single lane-dense (TM, OUT_W) store: [softmax(policy) | value | zeros].
    out_ref[...] = jnp.where(is_policy, softmax, heads)


# ------------------------------ JAX wrapper -------------------------------- #
def _full_spec(arr):
    nd = arr.ndim
    return pl.BlockSpec(arr.shape, lambda i, _nd=nd: (0,) * _nd)


def _round_up(x, m):
    return -(-x // m) * m


def _choose_tile(batch, *, max_tm=1024, min_grid=2):
    """Pick (tile_m, grid, padded_batch) for the batch axis.

    Goals (perf review): large tiles at large B (amortize ~0.35us/step
    overhead), but keep >=2 grid steps when possible (v7x megacore), and
    shrink the tile to the smallest multiple of 8 that preserves the grid
    size so the last tile carries minimal padding.
    """
    b8 = _round_up(batch, 8)
    tm = _round_up(max(8, min(max_tm, -(-b8 // min_grid))), 8)
    grid = -(-b8 // tm)
    tm = _round_up(-(-b8 // grid), 8)       # minimal-padding tile for this grid
    return tm, grid, tm * grid


def resnet_forward(x_int, params, *, one_hot_depth, state_dim,
                   policy_out_dim, value_out_dim=1):
    B, S = x_int.shape
    assert S == state_dim
    F = state_dim * one_hot_depth
    OUT_W = params["hwo"].shape[1]

    TM, grid, B_pad = _choose_tile(B)
    x_int = x_int.astype(jnp.int32)
    if B_pad != B:
        x_int = jnp.pad(x_int, ((0, B_pad - B), (0, 0)))

    args = (
        x_int,
        params["expand"], params["vmod"],
        params["w1"], params["b1"],
        params["w2"], params["b2"],
        params["bw1"], params["bb1"],
        params["bw2"], params["bb2"],
        params["hw1"], params["hb1"],
        params["hwo"], params["hbo"],
    )

    # Weights / tiny constants stay VMEM-resident across the batch grid
    # (constant index maps); only the int32 state and packed output stream.
    in_specs = [pl.BlockSpec((TM, S), lambda i: (i, 0))]
    in_specs += [_full_spec(a) for a in args[1:]]
    out_spec = pl.BlockSpec((TM, OUT_W), lambda i: (i, 0))

    H = params["w1"].shape[1]
    D = params["w2"].shape[1]
    NB = params["bw1"].shape[0]
    flops = 2 * B_pad * (S * F + F * H + H * D + NB * 2 * D * D
                         + D * 2 * D + 2 * D * OUT_W)
    transcendentals = B_pad * OUT_W                       # exp
    bytes_accessed = int(sum(int(a.size) * a.dtype.itemsize for a in args)
                         + B_pad * OUT_W * 4)

    packed = pl.pallas_call(
        functools.partial(resnet_kernel, policy_dim=policy_out_dim),
        out_shape=jax.ShapeDtypeStruct((B_pad, OUT_W), jnp.float32),
        grid_spec=pltpu.PrefetchScalarGridSpec(
            num_scalar_prefetch=0,
            grid=(grid,),
            in_specs=in_specs,
            out_specs=out_spec,
        ),
        compiler_params=pltpu.CompilerParams(
            # Batch axis shards across both TensorCores on v7x (grid kept >=2
            # steps whenever B allows, see _choose_tile).
            dimension_semantics=("parallel",),
            # Safe on v5e/v6e/v7x; our footprint (weights + a few activation
            # tiles) is only a few MiB.  Raise this (and single-buffer the
            # constant weight specs) if D/NUM_BLOCKS are scaled up.
            vmem_limit_bytes=32 * 1024 * 1024,
        ),
        cost_estimate=pl.CostEstimate(
            flops=int(flops),
            transcendentals=int(transcendentals),
            bytes_accessed=bytes_accessed,
        ),
    )(*args)

    policy = packed[:B, :policy_out_dim]
    value = packed[:B, policy_out_dim:policy_out_dim + value_out_dim]
    return policy, value


# --------------------------- Pure-JAX reference ----------------------------- #
def resnet_forward_ref(x_int, params, *, one_hot_depth, state_dim,
                       policy_out_dim, value_out_dim=1):
    f32, bf16 = jnp.float32, jnp.bfloat16
    B = x_int.shape[0]
    oh = jax.nn.one_hot(x_int, one_hot_depth, dtype=bf16).reshape(B, -1)

    def lin(x_bf16, w, b):
        return jnp.dot(x_bf16, w, preferred_element_type=f32) + b

    h = jax.nn.relu(lin(oh, params["w1"], params["b1"])).astype(bf16)
    h = jax.nn.relu(lin(h, params["w2"], params["b2"])).astype(bf16)
    for i in range(params["bw1"].shape[0]):
        r = h.astype(f32)
        o = jax.nn.relu(lin(h, params["bw1"][i], params["bb1"][i])).astype(bf16)
        o = lin(o, params["bw2"][i], params["bb2"][i])
        h = jax.nn.relu(o + r).astype(bf16)
    hv = jax.nn.relu(lin(h, params["hw1"], params["hb1"])).astype(bf16)
    heads = lin(hv, params["hwo"], params["hbo"])
    policy = jax.nn.softmax(heads[:, :policy_out_dim], axis=-1)
    value = heads[:, policy_out_dim:policy_out_dim + value_out_dim]
    return policy, value


# ------------------------------ Param setup -------------------------------- #
def make_params(key, *, state_dim, one_hot_depth, h1_dim, resnet_dim,
                num_blocks, policy_out_dim, value_out_dim):
    eps = 1e-5
    keys = iter(jax.random.split(key, 8 + 2 * num_blocks))

    def xavier(fan_in, fan_out):
        limit = float(np.sqrt(6.0 / (fan_in + fan_out)))
        # Stored as (in, out); same fan_in/fan_out as PyTorch's (out, in) tensor.
        return jax.random.uniform(next(keys), (fan_in, fan_out), jnp.float32, -limit, limit)

    def fold_bn(w, b, dim):
        # Eval-mode BatchNorm1d folded into the preceding Linear.  Default
        # (untrained) running stats: mean=0, var=1, gamma=1, beta=0.  Swap in
        # real running stats here for a trained checkpoint (fold stays exact).
        mean = jnp.zeros((dim,), jnp.float32)
        var = jnp.ones((dim,), jnp.float32)
        gamma = jnp.ones((dim,), jnp.float32)
        beta = jnp.zeros((dim,), jnp.float32)
        scale = gamma / jnp.sqrt(var + eps)
        return w * scale[None, :], (b - mean[None, :]) * scale[None, :] + beta[None, :]

    def lin(fi, fo, fold=True):
        w = xavier(fi, fo)
        b = jnp.zeros((1, fo), jnp.float32)
        if fold:
            w, b = fold_bn(w, b, fo)
        return w, b

    in_dim = state_dim * one_hot_depth
    w1, b1 = lin(in_dim, h1_dim)                     # fc1 + bn1
    w2, b2 = lin(h1_dim, resnet_dim)                 # fc2 + bn2

    bw1, bb1, bw2, bb2 = [], [], [], []
    for _ in range(num_blocks):
        w, b = lin(resnet_dim, resnet_dim)           # block fc1 + bn1
        bw1.append(w); bb1.append(b)
        w, b = lin(resnet_dim, resnet_dim)           # block fc2 + bn2
        bw2.append(w); bb2.append(b)

    pw1, pb1 = lin(resnet_dim, resnet_dim)           # policy_fc1 + policy_bn1
    pwo, pbo = lin(resnet_dim, policy_out_dim, fold=False)   # policy_fc_out
    vw1, vb1 = lin(resnet_dim, resnet_dim)           # value_fc1 + value_bn1
    vwo, vbo = lin(resnet_dim, value_out_dim, fold=False)    # value_fc_out

    D, P, V = resnet_dim, policy_out_dim, value_out_dim
    out_w = max(128, ((P + V + 127) // 128) * 128)   # lane-dense packed output width

    # Fused first head layer: [policy_fc1 | value_fc1] -> (D, 2D)
    hw1 = jnp.concatenate([pw1, vw1], axis=1)
    hb1 = jnp.concatenate([pb1, vb1], axis=1)

    # Block-diagonal fused output layer, lane-padded to out_w:
    #   rows [0,D)  x cols [0,P)    <- policy_fc_out
    #   rows [D,2D) x cols [P,P+V)  <- value_fc_out
    hwo = jnp.zeros((2 * D, out_w), jnp.float32)
    hwo = hwo.at[:D, :P].set(pwo).at[D:, P:P + V].set(vwo)
    hbo = jnp.zeros((1, out_w), jnp.float32)
    hbo = hbo.at[:, :P].set(pbo).at[:, P:P + V].set(vbo)

    # In-kernel one-hot helpers: expand[s, f] = 1 iff f // depth == s,
    # vmod[0, f] = f % depth.  (Tiny, VMEM-resident constants.)
    S, depth = state_dim, one_hot_depth
    expand = np.kron(np.eye(S, dtype=np.float32), np.ones((1, depth), np.float32))
    vmod = np.tile(np.arange(depth, dtype=np.float32), S)[None, :]

    bf16 = jnp.bfloat16
    return dict(
        expand=jnp.asarray(expand, jnp.float32),
        vmod=jnp.asarray(vmod, jnp.float32),
        w1=w1.astype(bf16), b1=b1,
        w2=w2.astype(bf16), b2=b2,
        bw1=jnp.stack(bw1).astype(bf16), bb1=jnp.stack(bb1),
        bw2=jnp.stack(bw2).astype(bf16), bb2=jnp.stack(bb2),
        hw1=hw1.astype(bf16), hb1=hb1,
        hwo=hwo.astype(bf16), hbo=hbo,
    )


# --------------------------------- Main ------------------------------------ #
if __name__ == "__main__":
    # Module-default dims (h1=256, resnet=256, 4 blocks); small batch.
    STATE_DIM = 8
    ONE_HOT_DEPTH = 6
    H1_DIM = 256
    RESNET_DIM = 256
    NUM_BLOCKS = 4
    POLICY_OUT = 12
    VALUE_OUT = 1
    BATCH = 50          # not a tile multiple: exercises padding + a 2-step grid

    root = jax.random.PRNGKey(0)
    k_param, k_data = jax.random.split(root)

    params = make_params(
        k_param,
        state_dim=STATE_DIM, one_hot_depth=ONE_HOT_DEPTH,
        h1_dim=H1_DIM, resnet_dim=RESNET_DIM,
        num_blocks=NUM_BLOCKS,
        policy_out_dim=POLICY_OUT, value_out_dim=VALUE_OUT,
    )

    # Integer state input, values in [0, one_hot_depth).
    x = jax.random.randint(k_data, (BATCH, STATE_DIM), 0, ONE_HOT_DEPTH, dtype=jnp.int32)

    fwd = jax.jit(functools.partial(
        resnet_forward,
        one_hot_depth=ONE_HOT_DEPTH,
        state_dim=STATE_DIM,
        policy_out_dim=POLICY_OUT,
        value_out_dim=VALUE_OUT,
    ))
    policy_out, value_out = fwd(x, params)
    jax.block_until_ready((policy_out, value_out))

    assert policy_out.shape == (BATCH, POLICY_OUT)
    assert value_out.shape == (BATCH, VALUE_OUT)

    # Softmax rows sum to 1 (exact divide now, so tight tolerance).
    np.testing.assert_allclose(np.asarray(jnp.sum(policy_out, axis=-1)), 1.0,
                               rtol=1e-3, atol=1e-3)

    # Match the pure-JAX reference (same bf16 weights/activation storage,
    # f32 accumulation).
    p_ref, v_ref = resnet_forward_ref(
        x, params, one_hot_depth=ONE_HOT_DEPTH, state_dim=STATE_DIM,
        policy_out_dim=POLICY_OUT, value_out_dim=VALUE_OUT)
    np.testing.assert_allclose(np.asarray(policy_out), np.asarray(p_ref), rtol=5e-3, atol=5e-3)
    np.testing.assert_allclose(np.asarray(value_out), np.asarray(v_ref), rtol=5e-3, atol=5e-3)

    print("KERNEL_OK")
</pallas_src>

<mosaic_0001>
module attributes {stable_mosaic.version = 11 : i64} {
  func.func @resnet_kernel(%arg0: i32, %arg1: memref<32x8xi32, #tpu.memory_space<vmem>>, %arg2: memref<8x48xf32, #tpu.memory_space<vmem>>, %arg3: memref<1x48xf32, #tpu.memory_space<vmem>>, %arg4: memref<48x256xbf16, #tpu.memory_space<vmem>>, %arg5: memref<1x256xf32, #tpu.memory_space<vmem>>, %arg6: memref<256x256xbf16, #tpu.memory_space<vmem>>, %arg7: memref<1x256xf32, #tpu.memory_space<vmem>>, %arg8: memref<4x256x256xbf16, #tpu.memory_space<vmem>>, %arg9: memref<4x1x256xf32, #tpu.memory_space<vmem>>, %arg10: memref<4x256x256xbf16, #tpu.memory_space<vmem>>, %arg11: memref<4x1x256xf32, #tpu.memory_space<vmem>>, %arg12: memref<256x512xbf16, #tpu.memory_space<vmem>>, %arg13: memref<1x512xf32, #tpu.memory_space<vmem>>, %arg14: memref<512x128xbf16, #tpu.memory_space<vmem>>, %arg15: memref<1x128xf32, #tpu.memory_space<vmem>>, %arg16: memref<32x128xf32, #tpu.memory_space<vmem>>) attributes {dimension_semantics = [#tpu.dimension_semantics<parallel>], iteration_bounds = array<i64: 2>, scalar_prefetch = 0 : i64, scratch_operands = 0 : i64, tpu.core_type = #tpu.core_type<tc>, window_params = [{transform_indices = @transform_0, window_bounds = array<i64: 32, 8>}, {pipeline_mode = #tpu.pipeline_mode<synchronous>, transform_indices = @transform_1, window_bounds = array<i64: 8, 48>}, {pipeline_mode = #tpu.pipeline_mode<synchronous>, transform_indices = @transform_2, window_bounds = array<i64: 1, 48>}, {pipeline_mode = #tpu.pipeline_mode<synchronous>, transform_indices = @transform_3, window_bounds = array<i64: 48, 256>}, {pipeline_mode = #tpu.pipeline_mode<synchronous>, transform_indices = @transform_4, window_bounds = array<i64: 1, 256>}, {pipeline_mode = #tpu.pipeline_mode<synchronous>, transform_indices = @transform_5, window_bounds = array<i64: 256, 256>}, {pipeline_mode = #tpu.pipeline_mode<synchronous>, transform_indices = @transform_6, window_bounds = array<i64: 1, 256>}, {pipeline_mode = #tpu.pipeline_mode<synchronous>, transform_indices = @transform_7, window_bounds = array<i64: 4, 256, 256>}, {pipeline_mode = #tpu.pipeline_mode<synchronous>, transform_indices = @transform_8, window_bounds = array<i64: 4, 1, 256>}, {pipeline_mode = #tpu.pipeline_mode<synchronous>, transform_indices = @transform_9, window_bounds = array<i64: 4, 256, 256>}, {pipeline_mode = #tpu.pipeline_mode<synchronous>, transform_indices = @transform_10, window_bounds = array<i64: 4, 1, 256>}, {pipeline_mode = #tpu.pipeline_mode<synchronous>, transform_indices = @transform_11, window_bounds = array<i64: 256, 512>}, {pipeline_mode = #tpu.pipeline_mode<synchronous>, transform_indices = @transform_12, window_bounds = array<i64: 1, 512>}, {pipeline_mode = #tpu.pipeline_mode<synchronous>, transform_indices = @transform_13, window_bounds = array<i64: 512, 128>}, {pipeline_mode = #tpu.pipeline_mode<synchronous>, transform_indices = @transform_14, window_bounds = array<i64: 1, 128>}, {transform_indices = @transform_15, window_bounds = array<i64: 32, 128>}]} {
    %c0 = arith.constant 0 : index
    %c0_0 = arith.constant 0 : index
    %0 = vector.load %arg1[%c0, %c0_0] : memref<32x8xi32, #tpu.memory_space<vmem>>, vector<32x8xi32>
    %1 = arith.sitofp %0 : vector<32x8xi32> to vector<32x8xf32>
    %c0_1 = arith.constant 0 : index
    %c0_2 = arith.constant 0 : index
    %2 = vector.load %arg2[%c0_1, %c0_2] : memref<8x48xf32, #tpu.memory_space<vmem>>, vector<8x48xf32>
    %cst = arith.constant dense<0.000000e+00> : vector<32x48xf32>
    %3 = tpu.matmul %1, %2, %cst {dimension_numbers = #tpu.dot_dimension_numbers<[1], [0], [0], [1], [0, 0, 1, 1], [], []>} : vector<32x8xf32>, vector<8x48xf32>, vector<32x48xf32> -> vector<32x48xf32>
    %c0_3 = arith.constant 0 : index
    %c0_4 = arith.constant 0 : index
    %4 = vector.load %arg3[%c0_3, %c0_4] : memref<1x48xf32, #tpu.memory_space<vmem>>, vector<1x48xf32>
    %5 = vector.broadcast %4 : vector<1x48xf32> to vector<32x48xf32>
    %6 = arith.cmpf oeq, %3, %5 : vector<32x48xf32>
    %cst_5 = arith.constant 1.000000e+00 : f32
    %cst_6 = arith.constant 0.000000e+00 : f32
    %7 = vector.broadcast %cst_5 : f32 to vector<32x48xf32>
    %8 = vector.broadcast %cst_6 : f32 to vector<32x48xf32>
    %9 = arith.select %6, %7, %8 : vector<32x48xi1>, vector<32x48xf32>
    %10 = arith.truncf %9 : vector<32x48xf32> to vector<32x48xbf16>
    %c0_7 = arith.constant 0 : index
    %c0_8 = arith.constant 0 : index
    %11 = vector.load %arg4[%c0_7, %c0_8] : memref<48x256xbf16, #tpu.memory_space<vmem>>, vector<48x256xbf16>
    %cst_9 = arith.constant dense<0.000000e+00> : vector<32x256xf32>
    %12 = tpu.matmul %10, %11, %cst_9 {dimension_numbers = #tpu.dot_dimension_numbers<[1], [0], [0], [1], [0, 0, 1, 1], [], []>} : vector<32x48xbf16>, vector<48x256xbf16>, vector<32x256xf32> -> vector<32x256xf32>
    %c0_10 = arith.constant 0 : index
    %c0_11 = arith.constant 0 : index
    %13 = vector.load %arg5[%c0_10, %c0_11] : memref<1x256xf32, #tpu.memory_space<vmem>>, vector<1x256xf32>
    %14 = vector.broadcast %13 : vector<1x256xf32> to vector<32x256xf32>
    %15 = arith.addf %12, %14 : vector<32x256xf32>
    %cst_12 = arith.constant 0.000000e+00 : f32
    %16 = vector.broadcast %cst_12 : f32 to vector<32x256xf32>
    %17 = arith.maximumf %15, %16 : vector<32x256xf32>
    %18 = arith.truncf %17 : vector<32x256xf32> to vector<32x256xbf16>
    %c0_13 = arith.constant 0 : index
    %c0_14 = arith.constant 0 : index
    %19 = vector.load %arg6[%c0_13, %c0_14] : memref<256x256xbf16, #tpu.memory_space<vmem>>, vector<256x256xbf16>
    %cst_15 = arith.constant dense<0.000000e+00> : vector<32x256xf32>
    %20 = tpu.matmul %18, %19, %cst_15 {dimension_numbers = #tpu.dot_dimension_numbers<[1], [0], [0], [1], [0, 0, 1, 1], [], []>} : vector<32x256xbf16>, vector<256x256xbf16>, vector<32x256xf32> -> vector<32x256xf32>
    %c0_16 = arith.constant 0 : index
    %c0_17 = arith.constant 0 : index
    %21 = vector.load %arg7[%c0_16, %c0_17] : memref<1x256xf32, #tpu.memory_space<vmem>>, vector<1x256xf32>
    %22 = vector.broadcast %21 : vector<1x256xf32> to vector<32x256xf32>
    %23 = arith.addf %20, %22 : vector<32x256xf32>
    %cst_18 = arith.constant 0.000000e+00 : f32
    %24 = vector.broadcast %cst_18 : f32 to vector<32x256xf32>
    %25 = arith.maximumf %23, %24 : vector<32x256xf32>
    %26 = arith.truncf %25 : vector<32x256xf32> to vector<32x256xbf16>
    %27 = arith.extf %26 : vector<32x256xbf16> to vector<32x256xf32>
    %c0_19 = arith.constant 0 : index
    %c0_20 = arith.constant 0 : index
    %c0_21 = arith.constant 0 : index
    %28 = vector.load %arg8[%c0_19, %c0_20, %c0_21] : memref<4x256x256xbf16, #tpu.memory_space<vmem>>, vector<1x256x256xbf16>
    %29 = vector.shape_cast %28 : vector<1x256x256xbf16> to vector<256x256xbf16>
    %cst_22 = arith.constant dense<0.000000e+00> : vector<32x256xf32>
    %30 = tpu.matmul %26, %29, %cst_22 {dimension_numbers = #tpu.dot_dimension_numbers<[1], [0], [0], [1], [0, 0, 1, 1], [], []>} : vector<32x256xbf16>, vector<256x256xbf16>, vector<32x256xf32> -> vector<32x256xf32>
    %c0_23 = arith.constant 0 : index
    %c0_24 = arith.constant 0 : index
    %c0_25 = arith.constant 0 : index
    %31 = vector.load %arg9[%c0_23, %c0_24, %c0_25] : memref<4x1x256xf32, #tpu.memory_space<vmem>>, vector<1x1x256xf32>
    %32 = vector.shape_cast %31 : vector<1x1x256xf32> to vector<1x256xf32>
    %33 = vector.broadcast %32 : vector<1x256xf32> to vector<32x256xf32>
    %34 = arith.addf %30, %33 : vector<32x256xf32>
    %cst_26 = arith.constant 0.000000e+00 : f32
    %35 = vector.broadcast %cst_26 : f32 to vector<32x256xf32>
    %36 = arith.maximumf %34, %35 : vector<32x256xf32>
    %37 = arith.truncf %36 : vector<32x256xf32> to vector<32x256xbf16>
    %c0_27 = arith.constant 0 : index
    %c0_28 = arith.constant 0 : index
    %c0_29 = arith.constant 0 : index
    %38 = vector.load %arg10[%c0_27, %c0_28, %c0_29] : memref<4x256x256xbf16, #tpu.memory_space<vmem>>, vector<1x256x256xbf16>
    %39 = vector.shape_cast %38 : vector<1x256x256xbf16> to vector<256x256xbf16>
    %cst_30 = arith.constant dense<0.000000e+00> : vector<32x256xf32>
    %40 = tpu.matmul %37, %39, %cst_30 {dimension_numbers = #tpu.dot_dimension_numbers<[1], [0], [0], [1], [0, 0, 1, 1], [], []>} : vector<32x256xbf16>, vector<256x256xbf16>, vector<32x256xf32> -> vector<32x256xf32>
    %c0_31 = arith.constant 0 : index
    %c0_32 = arith.constant 0 : index
    %c0_33 = arith.constant 0 : index
    %41 = vector.load %arg11[%c0_31, %c0_32, %c0_33] : memref<4x1x256xf32, #tpu.memory_space<vmem>>, vector<1x1x256xf32>
    %42 = vector.shape_cast %41 : vector<1x1x256xf32> to vector<1x256xf32>
    %43 = vector.broadcast %42 : vector<1x256xf32> to vector<32x256xf32>
    %44 = arith.addf %40, %43 : vector<32x256xf32>
    %45 = arith.addf %44, %27 : vector<32x256xf32>
    %cst_34 = arith.constant 0.000000e+00 : f32
    %46 = vector.broadcast %cst_34 : f32 to vector<32x256xf32>
    %47 = arith.maximumf %45, %46 : vector<32x256xf32>
    %48 = arith.truncf %47 : vector<32x256xf32> to vector<32x256xbf16>
    %49 = arith.extf %48 : vector<32x256xbf16> to vector<32x256xf32>
    %c1 = arith.constant 1 : index
    %c0_35 = arith.constant 0 : index
    %c0_36 = arith.constant 0 : index
    %50 = vector.load %arg8[%c1, %c0_35, %c0_36] : memref<4x256x256xbf16, #tpu.memory_space<vmem>>, vector<1x256x256xbf16>
    %51 = vector.shape_cast %50 : vector<1x256x256xbf16> to vector<256x256xbf16>
    %cst_37 = arith.constant dense<0.000000e+00> : vector<32x256xf32>
    %52 = tpu.matmul %48, %51, %cst_37 {dimension_numbers = #tpu.dot_dimension_numbers<[1], [0], [0], [1], [0, 0, 1, 1], [], []>} : vector<32x256xbf16>, vector<256x256xbf16>, vector<32x256xf32> -> vector<32x256xf32>
    %c1_38 = arith.constant 1 : index
    %c0_39 = arith.constant 0 : index
    %c0_40 = arith.constant 0 : index
    %53 = vector.load %arg9[%c1_38, %c0_39, %c0_40] : memref<4x1x256xf32, #tpu.memory_space<vmem>>, vector<1x1x256xf32>
    %54 = vector.shape_cast %53 : vector<1x1x256xf32> to vector<1x256xf32>
    %55 = vector.broadcast %54 : vector<1x256xf32> to vector<32x256xf32>
    %56 = arith.addf %52, %55 : vector<32x256xf32>
    %cst_41 = arith.constant 0.000000e+00 : f32
    %57 = vector.broadcast %cst_41 : f32 to vector<32x256xf32>
    %58 = arith.maximumf %56, %57 : vector<32x256xf32>
    %59 = arith.truncf %58 : vector<32x256xf32> to vector<32x256xbf16>
    %c1_42 = arith.constant 1 : index
    %c0_43 = arith.constant 0 : index
    %c0_44 = arith.constant 0 : index
    %60 = vector.load %arg10[%c1_42, %c0_43, %c0_44] : memref<4x256x256xbf16, #tpu.memory_space<vmem>>, vector<1x256x256xbf16>
    %61 = vector.shape_cast %60 : vector<1x256x256xbf16> to vector<256x256xbf16>
    %cst_45 = arith.constant dense<0.000000e+00> : vector<32x256xf32>
    %62 = tpu.matmul %59, %61, %cst_45 {dimension_numbers = #tpu.dot_dimension_numbers<[1], [0], [0], [1], [0, 0, 1, 1], [], []>} : vector<32x256xbf16>, vector<256x256xbf16>, vector<32x256xf32> -> vector<32x256xf32>
    %c1_46 = arith.constant 1 : index
    %c0_47 = arith.constant 0 : index
    %c0_48 = arith.constant 0 : index
    %63 = vector.load %arg11[%c1_46, %c0_47, %c0_48] : memref<4x1x256xf32, #tpu.memory_space<vmem>>, vector<1x1x256xf32>
    %64 = vector.shape_cast %63 : vector<1x1x256xf32> to vector<1x256xf32>
    %65 = vector.broadcast %64 : vector<1x256xf32> to vector<32x256xf32>
    %66 = arith.addf %62, %65 : vector<32x256xf32>
    %67 = arith.addf %66, %49 : vector<32x256xf32>
    %cst_49 = arith.constant 0.000000e+00 : f32
    %68 = vector.broadcast %cst_49 : f32 to vector<32x256xf32>
    %69 = arith.maximumf %67, %68 : vector<32x256xf32>
    %70 = arith.truncf %69 : vector<32x256xf32> to vector<32x256xbf16>
    %71 = arith.extf %70 : vector<32x256xbf16> to vector<32x256xf32>
    %c2 = arith.constant 2 : index
    %c0_50 = arith.constant 0 : index
    %c0_51 = arith.constant 0 : index
    %72 = vector.load %arg8[%c2, %c0_50, %c0_51] : memref<4x256x256xbf16, #tpu.memory_space<vmem>>, vector<1x256x256xbf16>
    %73 = vector.shape_cast %72 : vector<1x256x256xbf16> to vector<256x256xbf16>
    %cst_52 = arith.constant dense<0.000000e+00> : vector<32x256xf32>
    %74 = tpu.matmul %70, %73, %cst_52 {dimension_numbers = #tpu.dot_dimension_numbers<[1], [0], [0], [1], [0, 0, 1, 1], [], []>} : vector<32x256xbf16>, vector<256x256xbf16>, vector<32x256xf32> -> vector<32x256xf32>
    %c2_53 = arith.constant 2 : index
    %c0_54 = arith.constant 0 : index
    %c0_55 = arith.constant 0 : index
    %75 = vector.load %arg9[%c2_53, %c0_54, %c0_55] : memref<4x1x256xf32, #tpu.memory_space<vmem>>, vector<1x1x256xf32>
    %76 = vector.shape_cast %75 : vector<1x1x256xf32> to vector<1x256xf32>
    %77 = vector.broadcast %76 : vector<1x256xf32> to vector<32x256xf32>
    %78 = arith.addf %74, %77 : vector<32x256xf32>
    %cst_56 = arith.constant 0.000000e+00 : f32
    %79 = vector.broadcast %cst_56 : f32 to vector<32x256xf32>
    %80 = arith.maximumf %78, %79 : vector<32x256xf32>
    %81 = arith.truncf %80 : vector<32x256xf32> to vector<32x256xbf16>
    %c2_57 = arith.constant 2 : index
    %c0_58 = arith.constant 0 : index
    %c0_59 = arith.constant 0 : index
    %82 = vector.load %arg10[%c2_57, %c0_58, %c0_59] : memref<4x256x256xbf16, #tpu.memory_space<vmem>>, vector<1x256x256xbf16>
    %83 = vector.shape_cast %82 : vector<1x256x256xbf16> to vector<256x256xbf16>
    %cst_60 = arith.constant dense<0.000000e+00> : vector<32x256xf32>
    %84 = tpu.matmul %81, %83, %cst_60 {dimension_numbers = #tpu.dot_dimension_numbers<[1], [0], [0], [1], [0, 0, 1, 1], [], []>} : vector<32x256xbf16>, vector<256x256xbf16>, vector<32x256xf32> -> vector<32x256xf32>
    %c2_61 = arith.constant 2 : index
    %c0_62 = arith.constant 0 : index
    %c0_63 = arith.constant 0 : index
    %85 = vector.load %arg11[%c2_61, %c0_62, %c0_63] : memref<4x1x256xf32, #tpu.memory_space<vmem>>, vector<1x1x256xf32>
    %86 = vector.shape_cast %85 : vector<1x1x256xf32> to vector<1x256xf32>
    %87 = vector.broadcast %86 : vector<1x256xf32> to vector<32x256xf32>
    %88 = arith.addf %84, %87 : vector<32x256xf32>
    %89 = arith.addf %88, %71 : vector<32x256xf32>
    %cst_64 = arith.constant 0.000000e+00 : f32
    %90 = vector.broadcast %cst_64 : f32 to vector<32x256xf32>
    %91 = arith.maximumf %89, %90 : vector<32x256xf32>
    %92 = arith.truncf %91 : vector<32x256xf32> to vector<32x256xbf16>
    %93 = arith.extf %92 : vector<32x256xbf16> to vector<32x256xf32>
    %c3 = arith.constant 3 : index
    %c0_65 = arith.constant 0 : index
    %c0_66 = arith.constant 0 : index
    %94 = vector.load %arg8[%c3, %c0_65, %c0_66] : memref<4x256x256xbf16, #tpu.memory_space<vmem>>, vector<1x256x256xbf16>
    %95 = vector.shape_cast %94 : vector<1x256x256xbf16> to vector<256x256xbf16>
    %cst_67 = arith.constant dense<0.000000e+00> : vector<32x256xf32>
    %96 = tpu.matmul %92, %95, %cst_67 {dimension_numbers = #tpu.dot_dimension_numbers<[1], [0], [0], [1], [0, 0, 1, 1], [], []>} : vector<32x256xbf16>, vector<256x256xbf16>, vector<32x256xf32> -> vector<32x256xf32>
    %c3_68 = arith.constant 3 : index
    %c0_69 = arith.constant 0 : index
    %c0_70 = arith.constant 0 : index
    %97 = vector.load %arg9[%c3_68, %c0_69, %c0_70] : memref<4x1x256xf32, #tpu.memory_space<vmem>>, vector<1x1x256xf32>
    %98 = vector.shape_cast %97 : vector<1x1x256xf32> to vector<1x256xf32>
    %99 = vector.broadcast %98 : vector<1x256xf32> to vector<32x256xf32>
    %100 = arith.addf %96, %99 : vector<32x256xf32>
    %cst_71 = arith.constant 0.000000e+00 : f32
    %101 = vector.broadcast %cst_71 : f32 to vector<32x256xf32>
    %102 = arith.maximumf %100, %101 : vector<32x256xf32>
    %103 = arith.truncf %102 : vector<32x256xf32> to vector<32x256xbf16>
    %c3_72 = arith.constant 3 : index
    %c0_73 = arith.constant 0 : index
    %c0_74 = arith.constant 0 : index
    %104 = vector.load %arg10[%c3_72, %c0_73, %c0_74] : memref<4x256x256xbf16, #tpu.memory_space<vmem>>, vector<1x256x256xbf16>
    %105 = vector.shape_cast %104 : vector<1x256x256xbf16> to vector<256x256xbf16>
    %cst_75 = arith.constant dense<0.000000e+00> : vector<32x256xf32>
    %106 = tpu.matmul %103, %105, %cst_75 {dimension_numbers = #tpu.dot_dimension_numbers<[1], [0], [0], [1], [0, 0, 1, 1], [], []>} : vector<32x256xbf16>, vector<256x256xbf16>, vector<32x256xf32> -> vector<32x256xf32>
    %c3_76 = arith.constant 3 : index
    %c0_77 = arith.constant 0 : index
    %c0_78 = arith.constant 0 : index
    %107 = vector.load %arg11[%c3_76, %c0_77, %c0_78] : memref<4x1x256xf32, #tpu.memory_space<vmem>>, vector<1x1x256xf32>
    %108 = vector.shape_cast %107 : vector<1x1x256xf32> to vector<1x256xf32>
    %109 = vector.broadcast %108 : vector<1x256xf32> to vector<32x256xf32>
    %110 = arith.addf %106, %109 : vector<32x256xf32>
    %111 = arith.addf %110, %93 : vector<32x256xf32>
    %cst_79 = arith.constant 0.000000e+00 : f32
    %112 = vector.broadcast %cst_79 : f32 to vector<32x256xf32>
    %113 = arith.maximumf %111, %112 : vector<32x256xf32>
    %114 = arith.truncf %113 : vector<32x256xf32> to vector<32x256xbf16>
    %c0_80 = arith.constant 0 : index
    %c0_81 = arith.constant 0 : index
    %115 = vector.load %arg12[%c0_80, %c0_81] : memref<256x512xbf16, #tpu.memory_space<vmem>>, vector<256x512xbf16>
    %cst_82 = arith.constant dense<0.000000e+00> : vector<32x512xf32>
    %116 = tpu.matmul %114, %115, %cst_82 {dimension_numbers = #tpu.dot_dimension_numbers<[1], [0], [0], [1], [0, 0, 1, 1], [], []>} : vector<32x256xbf16>, vector<256x512xbf16>, vector<32x512xf32> -> vector<32x512xf32>
    %c0_83 = arith.constant 0 : index
    %c0_84 = arith.constant 0 : index
    %117 = vector.load %arg13[%c0_83, %c0_84] : memref<1x512xf32, #tpu.memory_space<vmem>>, vector<1x512xf32>
    %118 = vector.broadcast %117 : vector<1x512xf32> to vector<32x512xf32>
    %119 = arith.addf %116, %118 : vector<32x512xf32>
    %cst_85 = arith.constant 0.000000e+00 : f32
    %120 = vector.broadcast %cst_85 : f32 to vector<32x512xf32>
    %121 = arith.maximumf %119, %120 : vector<32x512xf32>
    %122 = arith.truncf %121 : vector<32x512xf32> to vector<32x512xbf16>
    %c0_86 = arith.constant 0 : index
    %c0_87 = arith.constant 0 : index
    %123 = vector.load %arg14[%c0_86, %c0_87] : memref<512x128xbf16, #tpu.memory_space<vmem>>, vector<512x128xbf16>
    %cst_88 = arith.constant dense<0.000000e+00> : vector<32x128xf32>
    %124 = tpu.matmul %122, %123, %cst_88 {dimension_numbers = #tpu.dot_dimension_numbers<[1], [0], [0], [1], [0, 0, 1, 1], [], []>} : vector<32x512xbf16>, vector<512x128xbf16>, vector<32x128xf32> -> vector<32x128xf32>
    %c0_89 = arith.constant 0 : index
    %c0_90 = arith.constant 0 : index
    %125 = vector.load %arg15[%c0_89, %c0_90] : memref<1x128xf32, #tpu.memory_space<vmem>>, vector<1x128xf32>
    %126 = vector.broadcast %125 : vector<1x128xf32> to vector<32x128xf32>
    %127 = arith.addf %124, %126 : vector<32x128xf32>
    %128 = tpu.iota {dimensions = array<i32: 1>} : vector<32x128xi32>
    %c12_i32 = arith.constant 12 : i32
    %129 = vector.broadcast %c12_i32 : i32 to vector<32x128xi32>
    %130 = arith.cmpi slt, %128, %129 : vector<32x128xi32>
    %cst_91 = arith.constant -1.000000e+30 : f32
    %131 = vector.broadcast %cst_91 : f32 to vector<32x128xf32>
    %132 = arith.select %130, %127, %131 : vector<32x128xi1>, vector<32x128xf32>
    %cst_92 = arith.constant dense<0xFF800000> : vector<32xf32>
    %133 = vector.multi_reduction <maximumf>, %132, %cst_92 [1] : vector<32x128xf32> to vector<32xf32>
    %134 = vector.shape_cast %133 : vector<32xf32> to vector<32x1xf32>
    %135 = vector.broadcast %134 : vector<32x1xf32> to vector<32x128xf32>
    %136 = arith.subf %132, %135 : vector<32x128xf32>
    %137 = math.exp %136 : vector<32x128xf32>
    %cst_93 = arith.constant dense<0.000000e+00> : vector<32xf32>
    %138 = vector.multi_reduction <add>, %137, %cst_93 [1] : vector<32x128xf32> to vector<32xf32>
    %139 = vector.shape_cast %138 : vector<32xf32> to vector<32x1xf32>
    %140 = vector.broadcast %139 : vector<32x1xf32> to vector<32x128xf32>
    %141 = arith.divf %137, %140 : vector<32x128xf32>
    %142 = arith.select %130, %141, %127 : vector<32x128xi1>, vector<32x128xf32>
    %c0_94 = arith.constant 0 : index
    %c0_95 = arith.constant 0 : index
    %143 = vector.load %arg16[%c0_94, %c0_95] : memref<32x128xf32, #tpu.memory_space<vmem>>, vector<32x128xf32>
    tpu.vector_store %arg16[%c0_94, %c0_95], %142 {strides = array<i32>} : memref<32x128xf32, #tpu.memory_space<vmem>>, vector<32x128xf32>,
    return
  }
  func.func @transform_0(%arg0: i32) -> (i32, i32) {
    %c0_i32 = arith.constant 0 : i32
    %c0_i32_0 = arith.constant 0 : i32
    return %arg0, %c0_i32 : i32, i32
  }
  func.func @transform_1(%arg0: i32) -> (i32, i32) {
    %c0_i32 = arith.constant 0 : i32
    %c0_i32_0 = arith.constant 0 : i32
    %c0_i32_1 = arith.constant 0 : i32
    return %c0_i32, %c0_i32_0 : i32, i32
  }
  func.func @transform_2(%arg0: i32) -> (i32, i32) {
    %c0_i32 = arith.constant 0 : i32
    %c0_i32_0 = arith.constant 0 : i32
    %c0_i32_1 = arith.constant 0 : i32
    return %c0_i32, %c0_i32_0 : i32, i32
  }
  func.func @transform_3(%arg0: i32) -> (i32, i32) {
    %c0_i32 = arith.constant 0 : i32
    %c0_i32_0 = arith.constant 0 : i32
    %c0_i32_1 = arith.constant 0 : i32
    return %c0_i32, %c0_i32_0 : i32, i32
  }
  func.func @transform_4(%arg0: i32) -> (i32, i32) {
    %c0_i32 = arith.constant 0 : i32
    %c0_i32_0 = arith.constant 0 : i32
    %c0_i32_1 = arith.constant 0 : i32
    return %c0_i32, %c0_i32_0 : i32, i32
  }
  func.func @transform_5(%arg0: i32) -> (i32, i32) {
    %c0_i32 = arith.constant 0 : i32
    %c0_i32_0 = arith.constant 0 : i32
    %c0_i32_1 = arith.constant 0 : i32
    return %c0_i32, %c0_i32_0 : i32, i32
  }
  func.func @transform_6(%arg0: i32) -> (i32, i32) {
    %c0_i32 = arith.constant 0 : i32
    %c0_i32_0 = arith.constant 0 : i32
    %c0_i32_1 = arith.constant 0 : i32
    return %c0_i32, %c0_i32_0 : i32, i32
  }
  func.func @transform_7(%arg0: i32) -> (i32, i32, i32) {
    %c0_i32 = arith.constant 0 : i32
    %c0_i32_0 = arith.constant 0 : i32
    %c0_i32_1 = arith.constant 0 : i32
    %c0_i32_2 = arith.constant 0 : i32
    return %c0_i32, %c0_i32_0, %c0_i32_1 : i32, i32, i32
  }
  func.func @transform_8(%arg0: i32) -> (i32, i32, i32) {
    %c0_i32 = arith.constant 0 : i32
    %c0_i32_0 = arith.constant 0 : i32
    %c0_i32_1 = arith.constant 0 : i32
    %c0_i32_2 = arith.constant 0 : i32
    return %c0_i32, %c0_i32_0, %c0_i32_1 : i32, i32, i32
  }
  func.func @transform_9(%arg0: i32) -> (i32, i32, i32) {
    %c0_i32 = arith.constant 0 : i32
    %c0_i32_0 = arith.constant 0 : i32
    %c0_i32_1 = arith.constant 0 : i32
    %c0_i32_2 = arith.constant 0 : i32
    return %c0_i32, %c0_i32_0, %c0_i32_1 : i32, i32, i32
  }
  func.func @transform_10(%arg0: i32) -> (i32, i32, i32) {
    %c0_i32 = arith.constant 0 : i32
    %c0_i32_0 = arith.constant 0 : i32
    %c0_i32_1 = arith.constant 0 : i32
    %c0_i32_2 = arith.constant 0 : i32
    return %c0_i32, %c0_i32_0, %c0_i32_1 : i32, i32, i32
  }
  func.func @transform_11(%arg0: i32) -> (i32, i32) {
    %c0_i32 = arith.constant 0 : i32
    %c0_i32_0 = arith.constant 0 : i32
    %c0_i32_1 = arith.constant 0 : i32
    return %c0_i32, %c0_i32_0 : i32, i32
  }
  func.func @transform_12(%arg0: i32) -> (i32, i32) {
    %c0_i32 = arith.constant 0 : i32
    %c0_i32_0 = arith.constant 0 : i32
    %c0_i32_1 = arith.constant 0 : i32
    return %c0_i32, %c0_i32_0 : i32, i32
  }
  func.func @transform_13(%arg0: i32) -> (i32, i32) {
    %c0_i32 = arith.constant 0 : i32
    %c0_i32_0 = arith.constant 0 : i32
    %c0_i32_1 = arith.constant 0 : i32
    return %c0_i32, %c0_i32_0 : i32, i32
  }
  func.func @transform_14(%arg0: i32) -> (i32, i32) {
    %c0_i32 = arith.constant 0 : i32
    %c0_i32_0 = arith.constant 0 : i32
    %c0_i32_1 = arith.constant 0 : i32
    return %c0_i32, %c0_i32_0 : i32, i32
  }
  func.func @transform_15(%arg0: i32) -> (i32, i32) {
    %c0_i32 = arith.constant 0 : i32
    %c0_i32_0 = arith.constant 0 : i32
    return %arg0, %c0_i32 : i32, i32
  }
}

</mosaic_0001>

<bundles_post_ra>
// kernel: resnet_forward.1
= control target key start
LH: loop header
LB: loop body
LE: loop exit
PB: predicated region body
PF: predicated region fallthrough
CT: control target
= control target key end

     0   :  { %s6148_s0 = inlined_call_operand.vmem [shape: s32[64,8], index: 0, kind: input, shape index: {}]   ;;  %s6149_s1 = inlined_call_operand.vmem [shape: f32[8,48], index: 1, kind: input, shape index: {}]   ;;  %s6150_s2 = inlined_call_operand.vmem [shape: f32[1,48], index: 2, kind: input, shape index: {}]   ;;  %s6151_s3 = inlined_call_operand.vmem [shape: bf16[48,256], index: 3, kind: input, shape index: {}]   ;;  %s6152_s4 = inlined_call_operand.vmem [shape: f32[1,256], index: 4, kind: input, shape index: {}]   ;;  %s6153_s5 = inlined_call_operand.hbm [shape: bf16[256,256], index: 5, kind: input, shape index: {}]   ;;  %s6154_s6 = inlined_call_operand.vmem [shape: f32[1,256], index: 6, kind: input, shape index: {}]   ;;  %s6155_s7 = inlined_call_operand.hbm [shape: bf16[4,256,256], index: 7, kind: input, shape index: {}]   ;;  %s6156_s8 = inlined_call_operand.vmem [shape: f32[4,1,256], index: 8, kind: input, shape index: {}]   ;;  %s6157_s9 = inlined_call_operand.hbm [shape: bf16[4,256,256], index: 9, kind: input, shape index: {}]   ;;  %s6158_s10 = inlined_call_operand.vmem [shape: f32[4,1,256], index: 10, kind: input, shape index: {}]   ;;  %s6159_s11 = inlined_call_operand.hbm [shape: bf16[256,512], index: 11, kind: input, shape index: {}]   ;;  %s6160_s12 = inlined_call_operand.vmem [shape: f32[1,512], index: 12, kind: input, shape index: {}]   ;;  %s6161_s13 = inlined_call_operand.hbm [shape: bf16[512,128], index: 13, kind: input, shape index: {}]   ;;  %s6162_s14 = inlined_call_operand.vmem [shape: f32[1,128], index: 14, kind: input, shape index: {}]   ;;  %s6163_s15 = inlined_call_operand.vmem [shape: f32[64,128], index: 15, kind: output, shape index: {}]  }
   0x1   :  { %6173 = sst [smem:[#allocation13_spill]] %s6155_s7 }
   0x2   :  { %6174 = sst [smem:[#allocation14_spill]] %s6158_s10 }
   0x3   :  { %6175 = sst [smem:[#allocation15_spill]] %s6160_s12 }
   0x4   :  { %6176 = sst [smem:[#allocation16_spill]] %s6162_s14 }
   0x5   :  { %6177 = sst [smem:[#allocation17_spill]] %s6163_s15 }
   0x6   :  { %20 = vsyncpa [#allocation3], 0 }
   0x7   :  { %21 = vsyncpa [#allocation5], 0 }
   0x8   :  { %22 = vsyncpa [#allocation8], 0  ;;  %s5766_s18 = smov 0  }
   0x9 LB: > { %s6164_s19 = sadd.s32 4294967295, %s5671_s18   ;;  %p4369_p0 = scmp.ge.s32.totalorder %s5671_s18, 1  ;;  %s5671_s18 = sphi %s5766_s18, %s28_s18  }
   0xa   : > { %p379_p1 = scmp.lt.s32.totalorder %s5671_s18, 3  ;;  %p5776_p2 = scmp.eq.s32.totalorder %s6164_s19, 0 }
   0xb   : > { %s5673_s22 = smov [#allocation4]   ;;  %s5674_s24 = smov [#allocation7]  }
   0xc   : > { %s6178_s20 = scalar_select %p5776_p2, 1, 0 }
   0xd   : > { %p5780_p3 = pnand %p4369_p0, %p379_p1  ;;  %s419_s23 = sshll.u32 %s5673_s22, 4  ;;  %s5784_s23 = int_to_ptr.vmem [resolvable:$true] %s419_s23 }
   0xe   : > { %s451_s25 = sshll.u32 %s5674_s24, 4  ;;  %s5675_s27 = smov [#allocation2]   ;;  %s5788_s25 = int_to_ptr.vmem [resolvable:$true] %s451_s25 }
   0xf   : > { %s6179_s21 = scalar_select %p5780_p3, 1, 0 }
  0x10   : > { %p4881_p4 = pneg %p5780_p3  ;;  %s5796_s28 = sshll.u32 %s5675_s27, 4  ;;  %s404_s28 = int_to_ptr.vmem [resolvable:$true] %s5796_s28 }
  0x11   : > { %s6181_s7 = sld [smem:[#allocation13_spill]] }
  0x12   : > { %p5792_p5 = pnand %p5776_p2, %p4881_p4 }
  0x14   : > { %p5806_p7 = pneg %p5792_p5 }
  0x17   : > { %s5513_s16 = scalar_lea.hbm %s6181_s7, 16384 }
  0x18   : > { %p5514_p6 = scmp.ne.s32.totalorder %s6181_s7, %s5513_s16  ;;  %p5520_p10 = scmp.lt.u32.totalorder %s5513_s16, %s6181_s7 }
  0x1a   : > { %p5516_p8 = pnand %p5806_p7, %p5514_p6 }
  0x1c   : > { %p5517_p9 = pneg %p5516_p8 }
  0x1e   : > { %p5522_p11 = pnand %p5520_p10, %p5517_p9 }
  0x20   : > { %5525 = shalt.err (!%p5522_p11)
}
  0x21   : > { %s5526_s29 = scalar_lea.vmem %s5784_s23, 16384  ;;  %p5534_p1 = scmp.lt.s32.totalorder %s5784_s23, %s5784_s23 }
  0x22   : > { %p5527_p12 = scmp.ne.s32.totalorder %s5784_s23, %s5526_s29  ;;  %p5535_p4 = scmp.lt.s32.totalorder %s5526_s29, %s5526_s29 }
  0x24   : > { %p5529_p13 = pnand %p5527_p12, %p5806_p7  ;;  %p5536_p6 = por %p5535_p4, %p5534_p1 }
  0x26   : > { %p5530_p0 = pneg %p5529_p13 }
  0x28   : > { %p5537_p8 = pnand %p5536_p6, %p5530_p0 }
  0x2a   : > { %5540 = shalt.err (!%p5537_p8)
}
  0x2b   : > { %s6166_s30 = smov 128   ;;  %s6168_s19 = smov 8  }
  0x2c   : > { %4887 = dma.hbm_to_vmem [thread:$0]  (!%p5792_p5), %s6181_s7, 16384, %s5784_s23, [#allocation5], %s6166_s30, %s6166_s30, %s6168_s19  }
  0x2d   : > { %s5541_s29 = scalar_lea.hbm %s6159_s11, 8192 }
  0x2e   : > { %p5542_p9 = scmp.ne.s32.totalorder %s6159_s11, %s5541_s29  ;;  %p5548_p12 = scmp.lt.u32.totalorder %s5541_s29, %s6159_s11 }
  0x30   : > { %p5544_p10 = pnand %p5542_p9, %p5806_p7 }
  0x32   : > { %p5545_p11 = pneg %p5544_p10 }
  0x34   : > { %p5550_p13 = pnand %p5548_p12, %p5545_p11 }
  0x36   : > { %5553 = shalt.err (!%p5550_p13)
}
  0x37   : > { %s5554_s23 = scalar_lea.vmem %s5788_s25, 8192  ;;  %p5562_p6 = scmp.lt.s32.totalorder %s5788_s25, %s5788_s25 }
  0x38   : > { %p5555_p0 = scmp.ne.s32.totalorder %s5788_s25, %s5554_s23  ;;  %p5563_p8 = scmp.lt.s32.totalorder %s5554_s23, %s5554_s23 }
  0x3a   : > { %p5557_p1 = pnand %p5555_p0, %p5806_p7  ;;  %p5564_p9 = por %p5563_p8, %p5562_p6 }
  0x3c   : > { %p5558_p4 = pneg %p5557_p1 }
  0x3e   : > { %p5565_p10 = pnand %p5564_p9, %p5558_p4 }
  0x40   : > { %5568 = shalt.err (!%p5565_p10)
}
  0x41   : > { %s5678_s14 = smov 256   ;;  %s5679_s10 = smov 16  }
  0x42   : > { %4893 = dma.hbm_to_vmem [thread:$0]  (!%p5792_p5), %s6159_s11, 8192, %s5788_s25, [#allocation8], %s5678_s14, %s5678_s14, %s5679_s10  }
  0x43   : > { %s5680_s16 = smov [#allocation6]   ;;  %s5569_s29 = scalar_lea.hbm %s6153_s5, 4096 }
  0x44   : > { %s435_s17 = sshll.u32 %s5680_s16, 4  ;;  %p5570_p11 = scmp.ne.s32.totalorder %s6153_s5, %s5569_s29  ;;  %s436_s17 = int_to_ptr.vmem [resolvable:$true] %s435_s17 }
  0x45   : > { %p5576_p0 = scmp.lt.u32.totalorder %s5569_s29, %s6153_s5 }
  0x46   : > { %p5572_p12 = pnand %p5570_p11, %p5806_p7 }
  0x48   : > { %p5573_p13 = pneg %p5572_p12 }
  0x4a   : > { %p5578_p1 = pnand %p5576_p0, %p5573_p13 }
  0x4c   : > { %5581 = shalt.err (!%p5578_p1)
}
  0x4d   : > { %s5582_s25 = scalar_lea.vmem %s404_s28, 4096  ;;  %p5590_p9 = scmp.lt.s32.totalorder %s404_s28, %s404_s28 }
  0x4e   : > { %p5583_p4 = scmp.ne.s32.totalorder %s404_s28, %s5582_s25  ;;  %p5591_p10 = scmp.lt.s32.totalorder %s5582_s25, %s5582_s25 }
  0x50   : > { %p5585_p6 = pnand %p5583_p4, %p5806_p7  ;;  %p5592_p2 = por %p5591_p10, %p5590_p9 }
  0x52   : > { %p5586_p8 = pneg %p5585_p6 }
  0x54   : > { %p5593_p3 = pnand %p5592_p2, %p5586_p8 }
  0x56   : > { %5596 = shalt.err (!%p5593_p3)
}
  0x57   : > { %s6183_s30 = smov 8   ;;  %s6184_s14 = smov 128  }
  0x58   : > { %4884 = dma.hbm_to_vmem [thread:$0]  (!%p5792_p5), %s6153_s5, 4096, %s404_s28, [#allocation3], %s6184_s14, %s6184_s14, %s6183_s30  }
  0x59   : > { %s5597_s15 = scalar_lea.hbm %s6157_s9, 16384 }
  0x5a   : > { %p5598_p2 = scmp.ne.s32.totalorder %s6157_s9, %s5597_s15  ;;  %p5604_p12 = scmp.lt.u32.totalorder %s5597_s15, %s6157_s9 }
  0x5c   : > { %p5600_p3 = pnand %p5598_p2, %p5806_p7 }
  0x5e   : > { %p5601_p11 = pneg %p5600_p3 }
  0x60   : > { %p5606_p13 = pnand %p5604_p12, %p5601_p11 }
  0x62   : > { %5609 = shalt.err (!%p5606_p13)
}
  0x63   : > { %s5610_s23 = scalar_lea.vmem %s436_s17, 16384  ;;  %p5618_p6 = scmp.lt.s32.totalorder %s436_s17, %s436_s17 }
  0x64   : > { %p5611_p0 = scmp.ne.s32.totalorder %s436_s17, %s5610_s23  ;;  %p5619_p8 = scmp.lt.s32.totalorder %s5610_s23, %s5610_s23 }
  0x66   : > { %p5613_p1 = pnand %p5611_p0, %p5806_p7  ;;  %p5620_p9 = por %p5619_p8, %p5618_p6 }
  0x68   : > { %p5614_p4 = pneg %p5613_p1 }
  0x6a   : > { %p5621_p10 = pnand %p5620_p9, %p5614_p4 }
  0x6c   : > { %5624 = shalt.err (!%p5621_p10)
}
  0x6d   : > { %4890 = dma.hbm_to_vmem [thread:$0]  (!%p5792_p5), %s6157_s9, 16384, %s436_s17, [#allocation5], %s6184_s14, %s6184_s14, %s6183_s30  }
  0x6e   : > { %s5681_s7 = smov [#allocation9]   ;;  %s5625_s15 = scalar_lea.hbm %s6161_s13, 4096 }
  0x6f   : > { %s467_s19 = sshll.u32 %s5681_s7, 4  ;;  %p5626_p2 = scmp.ne.s32.totalorder %s6161_s13, %s5625_s15  ;;  %s468_s19 = int_to_ptr.vmem [resolvable:$true] %s467_s19 }
  0x70   : > { %p5632_p12 = scmp.lt.u32.totalorder %s5625_s15, %s6161_s13 }
  0x71   : > { %p5628_p3 = pnand %p5626_p2, %p5806_p7 }
  0x73   : > { %p5629_p11 = pneg %p5628_p3 }
  0x75   : > { %p5634_p13 = pnand %p5632_p12, %p5629_p11 }
  0x77   : > { %5637 = shalt.err (!%p5634_p13)
}
  0x78   : > { %s5638_s17 = scalar_lea.vmem %s468_s19, 4096  ;;  %p5646_p6 = scmp.lt.s32.totalorder %s468_s19, %s468_s19 }
  0x79   : > { %p5639_p0 = scmp.ne.s32.totalorder %s468_s19, %s5638_s17  ;;  %p5647_p8 = scmp.lt.s32.totalorder %s5638_s17, %s5638_s17 }
  0x7b   : > { %p5641_p1 = pnand %p5639_p0, %p5806_p7  ;;  %p5648_p9 = por %p5647_p8, %p5646_p6 }
  0x7d   : > { %p5642_p4 = pneg %p5641_p1 }
  0x7f   : > { %p5649_p10 = pnand %p5648_p9, %p5642_p4 }
  0x81   : > { %5652 = shalt.err (!%p5649_p10)
}
  0x82   : > { %s5682_s30 = smov 64   ;;  %s5683_s14 = smov 4  }
  0x83   : > { %4896 = dma.hbm_to_vmem [thread:$0]  (!%p5792_p5), %s6161_s13, 4096, %s468_s19, [#allocation8], %s5682_s30, %s5682_s30, %s5683_s14  }
  0x84   : > { %p6185_p2 = scmp.ne.s32.totalorder %s6179_s21, 0 }
  0x85   : > { %p6186_p3 = scmp.ne.s32.totalorder (!%p6185_p2), %s6178_s20, 0 }
  0x86   : > { %495 = sbr.rel (%p6185_p2) target bundleno = 3400 (0xd48), region = 80 }
  0x8d   : > { %5658 = dma.done.wait (%p6186_p3), [#allocation3], 4096  }
  0x8e   : > { %5660 = vsyncadd (%p6186_p3), [#allocation3], 4294963200 }
  0x8f   : > { %5662 = dma.done.wait (%p6186_p3), [#allocation5], 32768  }
  0x90   : > { %5664 = vsyncadd (%p6186_p3), [#allocation5], 4294934528 }
  0x91   : > { %5666 = dma.done.wait (%p6186_p3), [#allocation8], 12288  }
  0x92   : > { %5668 = vsyncadd (%p6186_p3), [#allocation8], 4294955008  ;;  %s6187_s21 = sadd.s32 4294967295, %s5671_s18   ;;  %v580_v0 = vld [vmem:[%s6149_s1] sm:$0xff]  ;;  %vm581_vm0 = vcmask 64512   ;;  %v5684_v15 = vmov 0  }
  0x93   : > { %s4382_s26 = sshll.u32 %s6187_s21, 2  ;;  %4853 = vmatprep.subr.mxu0 %v580_v0  ;;  %v4928_v8 = vld [vmem:[%s6151_s3 + $0x4] ss:$8 sps:$4 sm:$0xff]   ;;  %v4930_v9 = vld [vmem:[%s6151_s3] ss:$8 sps:$4 sm:$0xff]   ;;  %783 = vmatprep.mubr.bf16.mxu1 %v5684_v15  ;;  %v5685_v47 = vmov 0.0  }
  0x94   : > { %p560_p5 = scmp.lt.s32.totalorder %s4382_s26, 7  ;;  %4854 = vmatpush3.msra.mxu0 %v580_v0  ;;  %v4931_v10 = vld [vmem:[%s6151_s3 + $0x14] ss:$8 sps:$4 sm:$0xff]   ;;  %751 = vmatprep.subr.bf16.mxu1 %v4928_v8  ;;  %v4933_v12 = vld [vmem:[%s6151_s3 + $0x10] ss:$8 sps:$4 sm:$0xff]   ;;  %vm744_vm3 = vcmask 392192  }
  0x95   : > { %752 = vmatpush1.bf16.msra.mxu1 %v4930_v9  ;;  %v4934_v13 = vld [vmem:[%s6151_s3 + $0x24] ss:$8 sps:$4 sm:$0xff]   ;;  %v4936_v14 = vld [vmem:[%s6151_s3 + $0x20] ss:$8 sps:$4 sm:$0xff]   ;;  %v4942_v18 = vld [vmem:[#allocation2 + $0x14] ss:$8 sps:$4 sm:$0xff]  }
  0x96   : > { %s6193_s26 = smov (!%p560_p5, %s4382_s26), 7  ;;  %753 = vmatprep.subr.bf16.mxu1 %v4931_v10  ;;  %v4937_v16 = vld [vmem:[#allocation2] ss:$8 sps:$4 sm:$0xff]   ;;  %v4939_v17 = vld [vmem:[#allocation2 + $0x4] ss:$8 sps:$4 sm:$0xff]   ;;  %s6188_s29 = sld [smem:[#allocation14_spill]] }
  0x97   : > { %s4383_s24 = sshll.u32 %s6193_s26, 3  ;;  %1020 = vmatprep.subr.bf16.mxu0 %v4939_v17  ;;  %v4940_v19 = vld [vmem:[#allocation2 + $0x10] ss:$8 sps:$4 sm:$0xff]   ;;  %v4945_v20 = vld [vmem:[#allocation2 + $0x24] ss:$8 sps:$4 sm:$0xff]   ;;  %s6189_s22 = sld [smem:[#allocation15_spill]] }
  0x98   : > { %s563_s19 = scalar_lea.vmem %s6148_s0, %s4383_s24  ;;  %v4943_v21 = vld [vmem:[#allocation2 + $0x20] ss:$8 sps:$4 sm:$0xff]   ;;  %v4948_v22 = vld [vmem:[#allocation2 + $0x34] ss:$8 sps:$4 sm:$0xff]   ;;  %v4946_v23 = vld [vmem:[#allocation2 + $0x30] ss:$8 sps:$4 sm:$0xff]  }
  0x99   : > { %v572_v1 = vld [vmem:[%s563_s19] sm:$0xff]  ;;  %v573_v2 = vld [vmem:[%s563_s19 + $0x8] sm:$0xff]  ;;  %v574_v5 = vld [vmem:[%s563_s19 + $0x10] sm:$0xff]  ;;  %754 = vmatpush1.bf16.msra.mxu1 %v4933_v12  ;;  %s6190_s30 = sld [smem:[#allocation16_spill]]  ;;  %s6191_s28 = sld [smem:[#allocation17_spill]] }
  0x9a   : > { %v576_v3 = vcvt.s32.f32 %v572_v1  ;;  %v577_v4 = vcvt.s32.f32 %v573_v2  ;;  %v575_v6 = vld [vmem:[%s563_s19 + $0x18] sm:$0xff]  ;;  %v578_v7 = vcvt.s32.f32 %v574_v5  ;;  %755 = vmatprep.subr.bf16.mxu1 %v4934_v13  ;;  %v4951_v24 = vld [vmem:[#allocation2 + $0x44] ss:$8 sps:$4 sm:$0xff]   ;;  %v4949_v25 = vld [vmem:[#allocation2 + $0x40] ss:$8 sps:$4 sm:$0xff]  }
  0x9b   : > { %v579_v11 = vcvt.s32.f32 %v575_v6  ;;  %v4954_v26 = vld [vmem:[#allocation2 + $0x54] ss:$8 sps:$4 sm:$0xff]   ;;  %v4952_v27 = vld [vmem:[#allocation2 + $0x50] ss:$8 sps:$4 sm:$0xff]   ;;  %v4957_v28 = vld [vmem:[#allocation2 + $0x64] ss:$8 sps:$4 sm:$0xff]  }
  0x9c   : > { %4855 = vmatprep.mubr.msk.f32.mxu0 %vm581_vm0, %v576_v3  ;;  %v4955_v29 = vld [vmem:[#allocation2 + $0x60] ss:$8 sps:$4 sm:$0xff]   ;;  %v4960_v30 = vld [vmem:[#allocation2 + $0x74] ss:$8 sps:$4 sm:$0xff]   ;;  %v4958_v31 = vld [vmem:[#allocation2 + $0x70] ss:$8 sps:$4 sm:$0xff]  }
  0x9d   : > { %4856 = vmatmul.mubr.msk.f32.vlgmr.msra.gmra.mrb[0].mxu0 %vm581_vm0, %v577_v4  ;;  %756 = vmatpush1.bf16.msra.mxu1 %v4936_v14  ;;  %v4963_v32 = vld [vmem:[#allocation2 + $0x84] ss:$8 sps:$4 sm:$0xff]   ;;  %v4961_v33 = vld [vmem:[#allocation2 + $0x80] ss:$8 sps:$4 sm:$0xff]   ;;  %v4966_v34 = vld [vmem:[#allocation2 + $0x94] ss:$8 sps:$4 sm:$0xff]  }
  0x9e   : > { %4858 = vmatprep.mubr.msk.f32.mxu0 %vm581_vm0, %v578_v7  ;;  %1021 = vmatpush1.bf16.msra.mxu0 %v4937_v16  ;;  %v4964_v35 = vld [vmem:[#allocation2 + $0x90] ss:$8 sps:$4 sm:$0xff]   ;;  %v4969_v36 = vld [vmem:[#allocation2 + $0xa4] ss:$8 sps:$4 sm:$0xff]   ;;  %v4967_v37 = vld [vmem:[#allocation2 + $0xa0] ss:$8 sps:$4 sm:$0xff]  }
  0x9f   : > { %1022 = vmatprep.subr.bf16.mxu0 %v4942_v18  ;;  %v4972_v38 = vld [vmem:[#allocation2 + $0xb4] ss:$8 sps:$4 sm:$0xff]   ;;  %v4970_v39 = vld [vmem:[#allocation2 + $0xb0] ss:$8 sps:$4 sm:$0xff]   ;;  %v4975_v40 = vld [vmem:[#allocation2 + $0xc4] ss:$8 sps:$4 sm:$0xff]   ;;  %s569_s21 = scalar_lea.vmem %s6191_s28, %s4383_s24 }
  0xa0   : > { %v4973_v41 = vld [vmem:[#allocation2 + $0xc0] ss:$8 sps:$4 sm:$0xff]   ;;  %v4978_v42 = vld [vmem:[#allocation2 + $0xd4] ss:$8 sps:$4 sm:$0xff]   ;;  %v4976_v43 = vld [vmem:[#allocation2 + $0xd0] ss:$8 sps:$4 sm:$0xff]  }
  0xa1   : > { %4859 = vmatmul.mubr.msk.f32.gmra.mrb[2].mxu0 %vm581_vm0, %v579_v11  ;;  %v4390_v44 = vld [vmem:[%s6150_s2] ss:$0 sm:$0xff]  ;;  %v4981_v56 = vld [vmem:[#allocation2 + $0xe4] ss:$8 sps:$4 sm:$0xff]   ;;  %v4984_v58 = vld [vmem:[#allocation2 + $0xf4] ss:$8 sps:$4 sm:$0xff]  }
  0xa2   : > { %1023 = vmatpush1.bf16.msra.mxu0 %v4940_v19  ;;  %v4979_v57 = vld [vmem:[#allocation2 + $0xe0] ss:$8 sps:$4 sm:$0xff]   ;;  %v4982_v59 = vld [vmem:[#allocation2 + $0xf0] ss:$8 sps:$4 sm:$0xff]   ;;  %v4987_v61 = vld [vmem:[#allocation4 + $0x4] ss:$8 sps:$4 sm:$0xff]  }
  0xa3   : > { %1024 = vmatprep.subr.bf16.mxu0 %v4945_v20  ;;  %v4985_v60 = vld [vmem:[#allocation4] ss:$8 sps:$4 sm:$0xff]   ;;  %v4990_v62 = vld [vmem:[#allocation4 + $0x14] ss:$8 sps:$4 sm:$0xff]   ;;  %1297 = vmatprep.subr.bf16.mxu1 %v4987_v61  ;;  %v4988_v63 = vld [vmem:[#allocation4 + $0x10] ss:$8 sps:$4 sm:$0xff]  }
  0xa4   : > { %v4993_v0 = vld [vmem:[#allocation4 + $0x24] ss:$8 sps:$4 sm:$0xff]   ;;  %v4991_v1 = vld [vmem:[#allocation4 + $0x20] ss:$8 sps:$4 sm:$0xff]   ;;  %v4996_v2 = vld [vmem:[#allocation4 + $0x34] ss:$8 sps:$4 sm:$0xff]  }
  0xa5   : > { %v4994_v3 = vld [vmem:[#allocation4 + $0x30] ss:$8 sps:$4 sm:$0xff]   ;;  %v4999_v4 = vld [vmem:[#allocation4 + $0x44] ss:$8 sps:$4 sm:$0xff]   ;;  %v4997_v5 = vld [vmem:[#allocation4 + $0x40] ss:$8 sps:$4 sm:$0xff]  }
  0xa6   : > { %1025 = vmatpush1.bf16.msra.mxu0 %v4943_v21  ;;  %v5002_v6 = vld [vmem:[#allocation4 + $0x54] ss:$8 sps:$4 sm:$0xff]   ;;  %v5000_v7 = vld [vmem:[#allocation4 + $0x50] ss:$8 sps:$4 sm:$0xff]   ;;  %v5005_v8 = vld [vmem:[#allocation4 + $0x64] ss:$8 sps:$4 sm:$0xff]  }
  0xa7   : > { %1026 = vmatprep.subr.bf16.mxu0 %v4948_v22  ;;  %v5003_v9 = vld [vmem:[#allocation4 + $0x60] ss:$8 sps:$4 sm:$0xff]   ;;  %v5008_v10 = vld [vmem:[#allocation4 + $0x74] ss:$8 sps:$4 sm:$0xff]   ;;  %v5006_v11 = vld [vmem:[#allocation4 + $0x70] ss:$8 sps:$4 sm:$0xff]  }
  0xa8   : > { %v5011_v12 = vld [vmem:[#allocation4 + $0x84] ss:$8 sps:$4 sm:$0xff]   ;;  %v5009_v13 = vld [vmem:[#allocation4 + $0x80] ss:$8 sps:$4 sm:$0xff]   ;;  %v5014_v14 = vld [vmem:[#allocation4 + $0x94] ss:$8 sps:$4 sm:$0xff]  }
  0xa9   : > { %v5017_v16 = vld [vmem:[#allocation4 + $0xa4] ss:$8 sps:$4 sm:$0xff]   ;;  %v5015_v17 = vld [vmem:[#allocation4 + $0xa0] ss:$8 sps:$4 sm:$0xff]   ;;  %v5020_v18 = vld [vmem:[#allocation4 + $0xb4] ss:$8 sps:$4 sm:$0xff]  }
  0xaa   : > { %1027 = vmatpush1.bf16.msra.mxu0 %v4946_v23  ;;  %v5018_v19 = vld [vmem:[#allocation4 + $0xb0] ss:$8 sps:$4 sm:$0xff]   ;;  %v5023_v20 = vld [vmem:[#allocation4 + $0xc4] ss:$8 sps:$4 sm:$0xff]   ;;  %v5021_v21 = vld [vmem:[#allocation4 + $0xc0] ss:$8 sps:$4 sm:$0xff]  }
  0xab   : > { %1028 = vmatprep.subr.bf16.mxu0 %v4951_v24  ;;  %v5026_v22 = vld [vmem:[#allocation4 + $0xd4] ss:$8 sps:$4 sm:$0xff]   ;;  %v5024_v23 = vld [vmem:[#allocation4 + $0xd0] ss:$8 sps:$4 sm:$0xff]   ;;  %v704_v24 = vlaneseq }
  0xac   : > { %v5032_v61 = vld [vmem:[#allocation4 + $0xf4] ss:$8 sps:$4 sm:$0xff]  }
  0xae   : > { %1029 = vmatpush1.bf16.msra.mxu0 %v4949_v25  ;;  %v5969_v25 = vshrl.u32 %v704_v24, 7 }
  0xaf   : > { %1030 = vmatprep.subr.bf16.mxu0 %v4954_v26 }
  0xb0   : > { %v5972_v26 = vsub.s32 0, %v5969_v25 }
  0xb2   : > { %1031 = vmatpush1.bf16.msra.mxu0 %v4952_v27  ;;  %v702_v27 = vld [vmem:[%s6152_s4] sm:$0x3] }
  0xb3   : > { %1032 = vmatprep.subr.bf16.mxu0 %v4957_v28  ;;  %v5978_v28 = vsub.s32 1, %v5969_v25 }
  0xb6   : > { %1033 = vmatpush1.bf16.msra.mxu0 %v4955_v29  ;;  %v707_v29 = vrot.slane %v702_v27, %v5972_v26 }
  0xb7   : > { %1034 = vmatprep.subr.bf16.mxu0 %v4960_v30  ;;  %v711_v30 = vrot.slane %v702_v27, %v5978_v28  ;;  %v5069_v27 = vld [vmem:[#allocation6 + $0xc0] ss:$8 sps:$4 sm:$0xff]  }
  0xba   : > { %1035 = vmatpush1.bf16.msra.mxu0 %v4958_v31 }
  0xbb   : > { %1036 = vmatprep.subr.bf16.mxu0 %v4963_v32 }
  0xbe   : > { %1037 = vmatpush1.bf16.msra.mxu0 %v4961_v33 }
  0xbf   : > { %1038 = vmatprep.subr.bf16.mxu0 %v4966_v34 }
  0xc2   : > { %1039 = vmatpush1.bf16.msra.mxu0 %v4964_v35 }
  0xc3   : > { %1040 = vmatprep.subr.bf16.mxu0 %v4969_v36 }
  0xc6   : > { %1041 = vmatpush1.bf16.msra.mxu0 %v4967_v37 }
  0xc7   : > { %1042 = vmatprep.subr.bf16.mxu0 %v4972_v38 }
  0xca   : > { %1043 = vmatpush1.bf16.msra.mxu0 %v4970_v39 }
  0xcb   : > { %1044 = vmatprep.subr.bf16.mxu0 %v4975_v40 }
  0xce   : > { %1045 = vmatpush1.bf16.msra.mxu0 %v4973_v41 }
  0xcf   : > { %1046 = vmatprep.subr.bf16.mxu0 %v4978_v42 }
  0xd2   : > { %1047 = vmatpush1.bf16.msra.mxu0 %v4976_v43 }
  0xd3   : > { %1048 = vmatprep.subr.bf16.mxu0 %v4981_v56 }
  0xd6   : > { %1049 = vmatpush1.bf16.msra.mxu0 %v4979_v57 }
  0xd7   : > { %1050 = vmatprep.subr.bf16.mxu0 %v4984_v58 }
  0xda   : > { %1051 = vmatpush1.bf16.msra.mxu0 %v4982_v59  ;;  %v5029_v59 = vld [vmem:[#allocation4 + $0xe4] ss:$8 sps:$4 sm:$0xff]  }
 0x170   : > { %v4857_v45 = vpop.f32.mrb[0].mxu0 }
 0x171   : > { %vm687_vm1 = vcmp.eq.f32.partialorder %v4857_v45, %v4390_v44  ;;  %v660_v46 = vpop.f32.mrb[1].mxu0 }
 0x172   : > { %v691_v48 = vsel %vm687_vm1, 1.0, %v5685_v47  ;;  %vm686_vm2 = vcmp.eq.f32.partialorder %v660_v46, %v4390_v44 }
 0x173   : > { %v690_v49 = vsel %vm686_vm2, 1.0, %v5685_v47 }
 0x174   : > { %v694_v50 = vpack.c.bf16 %v691_v48, %v690_v49  ;;  %v4860_v51 = vpop.f32.mrb[2].mxu0 }
 0x175   : > { %vm689_vm4 = vcmp.eq.f32.partialorder %v4860_v51, %v4390_v44  ;;  %v670_v52 = vpop.f32.mrb[3].mxu0 }
 0x176   : > { %4397 = vmatmul.mubr.msk.bf16.vlgmr.msra.gmra.mrb[0].mxu1 %vm744_vm3, %v694_v50  ;;  %v693_v53 = vsel %vm689_vm4, 1.0, %v5685_v47  ;;  %vm688_vm5 = vcmp.eq.f32.partialorder %v670_v52, %v4390_v44 }
 0x177   : > { %v692_v54 = vsel %vm688_vm5, 1.0, %v5685_v47  ;;  %793 = vmatprep.mubr.bf16.mxu1 %v5684_v15  ;;  %1298 = vmatpush1.bf16.msra.mxu1 %v4985_v60  ;;  %v5012_v15 = vld [vmem:[#allocation4 + $0x90] ss:$8 sps:$4 sm:$0xff]   ;;  %v5027_v60 = vld [vmem:[#allocation4 + $0xe0] ss:$8 sps:$4 sm:$0xff]  }
 0x178   : > { %v695_v55 = vpack.c.bf16 %v693_v53, %v692_v54  ;;  %1299 = vmatprep.subr.bf16.mxu1 %v4990_v62  ;;  %v5030_v62 = vld [vmem:[#allocation4 + $0xf0] ss:$8 sps:$4 sm:$0xff]  }
 0x17b   : > { %1300 = vmatpush1.bf16.msra.mxu1 %v4988_v63  ;;  %v5033_v63 = vld [vmem:[#allocation6] ss:$8 sps:$4 sm:$0xff]  }
 0x17c   : > { %1301 = vmatprep.subr.bf16.mxu1 %v4993_v0  ;;  %v5035_v0 = vld [vmem:[#allocation6 + $0x4] ss:$8 sps:$4 sm:$0xff]  }
 0x17d   : > { %1566 = vmatprep.subr.bf16.mxu0 %v5035_v0  ;;  %v5080_v0 = vld [vmem:[#allocation6 + $0xf4] ss:$8 sps:$4 sm:$0xff]  }
 0x17e   : > { %4398 = vmatmul.mubr.msk.bf16.gmra.mrb[4].mxu1 %vm744_vm3, %v695_v55 }
 0x17f   : > { %1302 = vmatpush1.bf16.msra.mxu1 %v4991_v1  ;;  %v5038_v1 = vld [vmem:[#allocation6 + $0x14] ss:$8 sps:$4 sm:$0xff]  }
 0x180   : > { %1303 = vmatprep.subr.bf16.mxu1 %v4996_v2  ;;  %v5036_v2 = vld [vmem:[#allocation6 + $0x10] ss:$8 sps:$4 sm:$0xff]  }
 0x183   : > { %1304 = vmatpush1.bf16.msra.mxu1 %v4994_v3  ;;  %v5041_v3 = vld [vmem:[#allocation6 + $0x24] ss:$8 sps:$4 sm:$0xff]  }
 0x184   : > { %1305 = vmatprep.subr.bf16.mxu1 %v4999_v4  ;;  %v5039_v4 = vld [vmem:[#allocation6 + $0x20] ss:$8 sps:$4 sm:$0xff]  }
 0x187   : > { %1306 = vmatpush1.bf16.msra.mxu1 %v4997_v5  ;;  %v5044_v5 = vld [vmem:[#allocation6 + $0x34] ss:$8 sps:$4 sm:$0xff]  }
 0x188   : > { %1307 = vmatprep.subr.bf16.mxu1 %v5002_v6  ;;  %v5042_v6 = vld [vmem:[#allocation6 + $0x30] ss:$8 sps:$4 sm:$0xff]  }
 0x18b   : > { %1308 = vmatpush1.bf16.msra.mxu1 %v5000_v7  ;;  %v5047_v7 = vld [vmem:[#allocation6 + $0x44] ss:$8 sps:$4 sm:$0xff]  }
 0x18c   : > { %1309 = vmatprep.subr.bf16.mxu1 %v5005_v8  ;;  %v5045_v8 = vld [vmem:[#allocation6 + $0x40] ss:$8 sps:$4 sm:$0xff]  }
 0x18f   : > { %1310 = vmatpush1.bf16.msra.mxu1 %v5003_v9  ;;  %v5050_v9 = vld [vmem:[#allocation6 + $0x54] ss:$8 sps:$4 sm:$0xff]  }
 0x190   : > { %1311 = vmatprep.subr.bf16.mxu1 %v5008_v10  ;;  %v5048_v10 = vld [vmem:[#allocation6 + $0x50] ss:$8 sps:$4 sm:$0xff]  }
 0x193   : > { %1312 = vmatpush1.bf16.msra.mxu1 %v5006_v11  ;;  %v5053_v11 = vld [vmem:[#allocation6 + $0x64] ss:$8 sps:$4 sm:$0xff]  }
 0x194   : > { %1313 = vmatprep.subr.bf16.mxu1 %v5011_v12  ;;  %v5051_v12 = vld [vmem:[#allocation6 + $0x60] ss:$8 sps:$4 sm:$0xff]  }
 0x197   : > { %1314 = vmatpush1.bf16.msra.mxu1 %v5009_v13  ;;  %v5056_v13 = vld [vmem:[#allocation6 + $0x74] ss:$8 sps:$4 sm:$0xff]  }
 0x198   : > { %1315 = vmatprep.subr.bf16.mxu1 %v5014_v14  ;;  %v5054_v14 = vld [vmem:[#allocation6 + $0x70] ss:$8 sps:$4 sm:$0xff]  }
 0x19b   : > { %1316 = vmatpush1.bf16.msra.mxu1 %v5012_v15  ;;  %v5059_v15 = vld [vmem:[#allocation6 + $0x84] ss:$8 sps:$4 sm:$0xff]  }
 0x19c   : > { %1317 = vmatprep.subr.bf16.mxu1 %v5017_v16  ;;  %v5057_v16 = vld [vmem:[#allocation6 + $0x80] ss:$8 sps:$4 sm:$0xff]  }
 0x19f   : > { %1318 = vmatpush1.bf16.msra.mxu1 %v5015_v17  ;;  %v5062_v17 = vld [vmem:[#allocation6 + $0x94] ss:$8 sps:$4 sm:$0xff]  }
 0x1a0   : > { %1319 = vmatprep.subr.bf16.mxu1 %v5020_v18  ;;  %v5060_v18 = vld [vmem:[#allocation6 + $0x90] ss:$8 sps:$4 sm:$0xff]  }
 0x1a3   : > { %1320 = vmatpush1.bf16.msra.mxu1 %v5018_v19  ;;  %v5065_v19 = vld [vmem:[#allocation6 + $0xa4] ss:$8 sps:$4 sm:$0xff]  }
 0x1a4   : > { %1321 = vmatprep.subr.bf16.mxu1 %v5023_v20  ;;  %v5063_v20 = vld [vmem:[#allocation6 + $0xa0] ss:$8 sps:$4 sm:$0xff]  }
 0x1a7   : > { %1322 = vmatpush1.bf16.msra.mxu1 %v5021_v21  ;;  %v5068_v21 = vld [vmem:[#allocation6 + $0xb4] ss:$8 sps:$4 sm:$0xff]  }
 0x1a8   : > { %1323 = vmatprep.subr.bf16.mxu1 %v5026_v22  ;;  %v5066_v22 = vld [vmem:[#allocation6 + $0xb0] ss:$8 sps:$4 sm:$0xff]  }
 0x1ab   : > { %1324 = vmatpush1.bf16.msra.mxu1 %v5024_v23  ;;  %v5071_v23 = vld [vmem:[#allocation6 + $0xc4] ss:$8 sps:$4 sm:$0xff]  }
 0x1ac   : > { %1325 = vmatprep.subr.bf16.mxu1 %v5029_v59 }
 0x1af   : > { %1326 = vmatpush1.bf16.msra.mxu1 %v5027_v60 }
 0x1b0   : > { %1327 = vmatprep.subr.bf16.mxu1 %v5032_v61 }
 0x1b3   : > { %1328 = vmatpush1.bf16.msra.mxu1 %v5030_v62  ;;  %v5077_v62 = vld [vmem:[#allocation6 + $0xe4] ss:$8 sps:$4 sm:$0xff]  }
 0x249   : > { %v785_v31 = vpop.f32.mrb[0].mxu1 }
 0x24a   : > { %v786_v32 = vadd.f32 %v785_v31, %v707_v29  ;;  %v787_v33 = vpop.f32.mrb[1].mxu1  ;;  %v848_v31 = vld [vmem:[%s6154_s6] sm:$0x3] }
 0x24b   : > { %v788_v34 = vadd.f32 %v787_v33, %v711_v30  ;;  %v789_v35 = vpop.f32.mrb[2].mxu1  ;;  %v857_v33 = vrot.slane %v848_v31, %v5978_v28 }
 0x24c   : > { %v790_v36 = vadd.f32 %v789_v35, %v707_v29  ;;  %v791_v37 = vpop.f32.mrb[3].mxu1  ;;  %v804_v39 = vmax.f32 %v786_v32, 0.0  ;;  %v853_v32 = vrot.slane %v848_v31, %v5972_v26  ;;  %v5117_v31 = vld [vmem:[#allocation4 + $0x1c0] ss:$8 sps:$4 sm:$0xff]  }
 0x24d   : > { %v792_v38 = vadd.f32 %v791_v37, %v711_v30  ;;  %v805_v41 = vmax.f32 %v788_v34, 0.0 }
 0x24e   : > { %v806_v40 = vmax.f32 %v790_v36, 0.0 }
 0x24f   : > { %v807_v42 = vmax.f32 %v792_v38, 0.0 }
 0x250   : > { %v812_v43 = vpack.c.bf16 %v806_v40, %v804_v39 }
 0x251   : > { %v813_v44 = vpack.c.bf16 %v807_v42, %v805_v41  ;;  %v795_v45 = vpop.f32.mrb[4].mxu1 }
 0x252   : > { %v796_v46 = vadd.f32 %v795_v45, %v707_v29  ;;  %v797_v47 = vpop.f32.mrb[5].mxu1 }
 0x253   : > { %v798_v48 = vadd.f32 %v797_v47, %v711_v30  ;;  %v799_v49 = vpop.f32.mrb[6].mxu1  ;;  %1052 = vmatprep.mubr.bf16.mxu0 %v813_v44 }
 0x254   : > { %v808_v50 = vmax.f32 %v796_v46, 0.0  ;;  %v800_v51 = vadd.f32 %v799_v49, %v707_v29  ;;  %v801_v52 = vpop.f32.mrb[7].mxu1  ;;  %1053 = vmatmul.mubr.bf16.vlgmr.msra.gmra.mrb[4].mxu0 %v812_v43  ;;  %v5074_v29 = vld [vmem:[#allocation6 + $0xd4] ss:$8 sps:$4 sm:$0xff]  }
 0x255   : > { %v809_v53 = vmax.f32 %v798_v48, 0.0  ;;  %v802_v54 = vadd.f32 %v801_v52, %v711_v30  ;;  %1567 = vmatpush1.bf16.msra.mxu0 %v5033_v63  ;;  %v5072_v30 = vld [vmem:[#allocation6 + $0xd0] ss:$8 sps:$4 sm:$0xff]   ;;  %v5075_v63 = vld [vmem:[#allocation6 + $0xe0] ss:$8 sps:$4 sm:$0xff]  }
 0x256   : > { %v810_v55 = vmax.f32 %v800_v51, 0.0  ;;  %1568 = vmatprep.subr.bf16.mxu0 %v5038_v1  ;;  %v5078_v1 = vld [vmem:[#allocation6 + $0xf0] ss:$8 sps:$4 sm:$0xff]  }
 0x257   : > { %v811_v56 = vmax.f32 %v802_v54, 0.0 }
 0x258   : > { %v814_v57 = vpack.c.bf16 %v810_v55, %v808_v50 }
 0x259   : > { %v815_v58 = vpack.c.bf16 %v811_v56, %v809_v53  ;;  %1569 = vmatpush1.bf16.msra.mxu0 %v5036_v2  ;;  %v5081_v2 = vld [vmem:[#allocation4 + $0x100] ss:$8 sps:$4 sm:$0xff]  }
 0x25a   : > { %1570 = vmatprep.subr.bf16.mxu0 %v5041_v3  ;;  %v5083_v3 = vld [vmem:[#allocation4 + $0x104] ss:$8 sps:$4 sm:$0xff]  }
 0x25b   : > { %1062 = vmatprep.mubr.bf16.mxu0 %v815_v58  ;;  %1853 = vmatprep.subr.bf16.mxu1 %v5083_v3  ;;  %v5122_v3 = vld [vmem:[#allocation4 + $0x1d4] ss:$8 sps:$4 sm:$0xff]  }
 0x25c   : > { %1063 = vmatmul.mubr.bf16.gmra.mrb[8].mxu0 %v814_v57 }
 0x25d   : > { %1571 = vmatpush1.bf16.msra.mxu0 %v5039_v4  ;;  %v5086_v4 = vld [vmem:[#allocation4 + $0x114] ss:$8 sps:$4 sm:$0xff]  }
 0x25e   : > { %1572 = vmatprep.subr.bf16.mxu0 %v5044_v5  ;;  %v5084_v5 = vld [vmem:[#allocation4 + $0x110] ss:$8 sps:$4 sm:$0xff]  }
 0x261   : > { %1573 = vmatpush1.bf16.msra.mxu0 %v5042_v6  ;;  %v5089_v6 = vld [vmem:[#allocation4 + $0x124] ss:$8 sps:$4 sm:$0xff]  }
 0x262   : > { %1574 = vmatprep.subr.bf16.mxu0 %v5047_v7  ;;  %v5087_v7 = vld [vmem:[#allocation4 + $0x120] ss:$8 sps:$4 sm:$0xff]  }
 0x265   : > { %1575 = vmatpush1.bf16.msra.mxu0 %v5045_v8  ;;  %v5092_v8 = vld [vmem:[#allocation4 + $0x134] ss:$8 sps:$4 sm:$0xff]  }
 0x266   : > { %1576 = vmatprep.subr.bf16.mxu0 %v5050_v9  ;;  %v5090_v9 = vld [vmem:[#allocation4 + $0x130] ss:$8 sps:$4 sm:$0xff]  }
 0x269   : > { %1577 = vmatpush1.bf16.msra.mxu0 %v5048_v10  ;;  %v5095_v10 = vld [vmem:[#allocation4 + $0x144] ss:$8 sps:$4 sm:$0xff]  }
 0x26a   : > { %1578 = vmatprep.subr.bf16.mxu0 %v5053_v11  ;;  %v5093_v11 = vld [vmem:[#allocation4 + $0x140] ss:$8 sps:$4 sm:$0xff]  }
 0x26d   : > { %1579 = vmatpush1.bf16.msra.mxu0 %v5051_v12  ;;  %v5098_v12 = vld [vmem:[#allocation4 + $0x154] ss:$8 sps:$4 sm:$0xff]  }
 0x26e   : > { %1580 = vmatprep.subr.bf16.mxu0 %v5056_v13  ;;  %v5096_v13 = vld [vmem:[#allocation4 + $0x150] ss:$8 sps:$4 sm:$0xff]  }
 0x271   : > { %1581 = vmatpush1.bf16.msra.mxu0 %v5054_v14  ;;  %v5101_v14 = vld [vmem:[#allocation4 + $0x164] ss:$8 sps:$4 sm:$0xff]  }
 0x272   : > { %1582 = vmatprep.subr.bf16.mxu0 %v5059_v15  ;;  %v5099_v15 = vld [vmem:[#allocation4 + $0x160] ss:$8 sps:$4 sm:$0xff]  }
 0x275   : > { %1583 = vmatpush1.bf16.msra.mxu0 %v5057_v16  ;;  %v5104_v16 = vld [vmem:[#allocation4 + $0x174] ss:$8 sps:$4 sm:$0xff]  }
 0x276   : > { %1584 = vmatprep.subr.bf16.mxu0 %v5062_v17  ;;  %v5102_v17 = vld [vmem:[#allocation4 + $0x170] ss:$8 sps:$4 sm:$0xff]  }
 0x279   : > { %1585 = vmatpush1.bf16.msra.mxu0 %v5060_v18  ;;  %v5107_v18 = vld [vmem:[#allocation4 + $0x184] ss:$8 sps:$4 sm:$0xff]  }
 0x27a   : > { %1586 = vmatprep.subr.bf16.mxu0 %v5065_v19  ;;  %v5105_v19 = vld [vmem:[#allocation4 + $0x180] ss:$8 sps:$4 sm:$0xff]  }
 0x27d   : > { %1587 = vmatpush1.bf16.msra.mxu0 %v5063_v20  ;;  %v5110_v20 = vld [vmem:[#allocation4 + $0x194] ss:$8 sps:$4 sm:$0xff]  }
 0x27e   : > { %1588 = vmatprep.subr.bf16.mxu0 %v5068_v21  ;;  %v5108_v21 = vld [vmem:[#allocation4 + $0x190] ss:$8 sps:$4 sm:$0xff]  }
 0x281   : > { %1589 = vmatpush1.bf16.msra.mxu0 %v5066_v22  ;;  %v5113_v22 = vld [vmem:[#allocation4 + $0x1a4] ss:$8 sps:$4 sm:$0xff]  }
 0x282   : > { %1590 = vmatprep.subr.bf16.mxu0 %v5071_v23  ;;  %v5111_v23 = vld [vmem:[#allocation4 + $0x1a0] ss:$8 sps:$4 sm:$0xff]  }
 0x285   : > { %1591 = vmatpush1.bf16.msra.mxu0 %v5069_v27  ;;  %v5116_v27 = vld [vmem:[#allocation4 + $0x1b4] ss:$8 sps:$4 sm:$0xff]  }
 0x286   : > { %1592 = vmatprep.subr.bf16.mxu0 %v5074_v29  ;;  %v5114_v29 = vld [vmem:[#allocation4 + $0x1b0] ss:$8 sps:$4 sm:$0xff]  }
 0x289   : > { %1593 = vmatpush1.bf16.msra.mxu0 %v5072_v30  ;;  %v5119_v30 = vld [vmem:[#allocation4 + $0x1c4] ss:$8 sps:$4 sm:$0xff]  }
 0x28a   : > { %1594 = vmatprep.subr.bf16.mxu0 %v5077_v62 }
 0x28d   : > { %1595 = vmatpush1.bf16.msra.mxu0 %v5075_v63 }
 0x28e   : > { %1596 = vmatprep.subr.bf16.mxu0 %v5080_v0 }
 0x291   : > { %1597 = vmatpush1.bf16.msra.mxu0 %v5078_v1 }
 0x327   : > { %v1054_v34 = vpop.f32.mrb[4].mxu0 }
 0x328   : > { %v1055_v35 = vadd.f32 %v1054_v34, %v853_v32  ;;  %v1056_v36 = vpop.f32.mrb[5].mxu0 }
 0x329   : > { %v1057_v37 = vadd.f32 %v1056_v36, %v857_v33  ;;  %v1058_v38 = vpop.f32.mrb[6].mxu0 }
 0x32a   : > { %v1059_v39 = vadd.f32 %v1058_v38, %v853_v32  ;;  %v1060_v40 = vpop.f32.mrb[7].mxu0  ;;  %v1073_v42 = vmax.f32 %v1055_v35, 0.0 }
 0x32b   : > { %v1061_v41 = vadd.f32 %v1060_v40, %v857_v33  ;;  %v1074_v44 = vmax.f32 %v1057_v37, 0.0 }
 0x32c   : > { %v1075_v43 = vmax.f32 %v1059_v39, 0.0 }
 0x32d   : > { %v1076_v45 = vmax.f32 %v1061_v41, 0.0 }
 0x32e   : > { %v5987_v46 = vpack.c.bf16 %v1075_v43, %v1073_v42 }
 0x32f   : > { %v5989_v47 = vpack.c.bf16 %v1076_v45, %v1074_v44  ;;  %v1064_v48 = vpop.f32.mrb[8].mxu0 }
 0x330   : > { %v1065_v49 = vadd.f32 %v1064_v48, %v853_v32  ;;  %v1066_v50 = vpop.f32.mrb[9].mxu0 }
 0x331   : > { %v1067_v51 = vadd.f32 %v1066_v50, %v857_v33  ;;  %v1068_v52 = vpop.f32.mrb[10].mxu0  ;;  %1329 = vmatprep.mubr.bf16.mxu1 %v5989_v47 }
 0x332   : > { %v1077_v53 = vmax.f32 %v1065_v49, 0.0  ;;  %v1069_v54 = vadd.f32 %v1068_v52, %v853_v32  ;;  %v1070_v55 = vpop.f32.mrb[11].mxu0  ;;  %1330 = vmatmul.mubr.bf16.vlgmr.msra.gmra.mrb[8].mxu1 %v5987_v46  ;;  %v1125_v32 = vld [vmem:[%s6156_s8] sm:$0x3] }
 0x333   : > { %v1078_v56 = vmax.f32 %v1067_v51, 0.0  ;;  %v1071_v57 = vadd.f32 %v1070_v55, %v857_v33  ;;  %1854 = vmatpush1.bf16.msra.mxu1 %v5081_v2  ;;  %v1130_v33 = vrot.slane %v1125_v32, %v5972_v26  ;;  %v1134_v34 = vrot.slane %v1125_v32, %v5978_v28  ;;  %v5156_v32 = vld [vmem:[#allocation6 + $0x190] ss:$8 sps:$4 sm:$0xff]  }
 0x334   : > { %v1079_v58 = vmax.f32 %v1069_v54, 0.0  ;;  %1855 = vmatprep.subr.bf16.mxu1 %v5086_v4  ;;  %v5120_v4 = vld [vmem:[#allocation4 + $0x1d0] ss:$8 sps:$4 sm:$0xff]  }
 0x335   : > { %v1080_v59 = vmax.f32 %v1071_v57, 0.0 }
 0x336   : > { %v5993_v60 = vpack.c.bf16 %v1079_v58, %v1077_v53 }
 0x337   : > { %v5995_v61 = vpack.c.bf16 %v1080_v59, %v1078_v56  ;;  %1856 = vmatpush1.bf16.msra.mxu1 %v5084_v5  ;;  %v5125_v5 = vld [vmem:[#allocation4 + $0x1e4] ss:$8 sps:$4 sm:$0xff]  }
 0x338   : > { %1857 = vmatprep.subr.bf16.mxu1 %v5089_v6  ;;  %v5123_v6 = vld [vmem:[#allocation4 + $0x1e0] ss:$8 sps:$4 sm:$0xff]  }
 0x339   : > { %1339 = vmatprep.mubr.bf16.mxu1 %v5995_v61 }
 0x33a   : > { %1340 = vmatmul.mubr.bf16.gmra.mrb[12].mxu1 %v5993_v60 }
 0x33b   : > { %1858 = vmatpush1.bf16.msra.mxu1 %v5087_v7  ;;  %v5128_v7 = vld [vmem:[#allocation4 + $0x1f4] ss:$8 sps:$4 sm:$0xff]  }
 0x33c   : > { %1859 = vmatprep.subr.bf16.mxu1 %v5092_v8  ;;  %v5126_v8 = vld [vmem:[#allocation4 + $0x1f0] ss:$8 sps:$4 sm:$0xff]  }
 0x33f   : > { %1860 = vmatpush1.bf16.msra.mxu1 %v5090_v9  ;;  %v5129_v9 = vld [vmem:[#allocation6 + $0x100] ss:$8 sps:$4 sm:$0xff]  }
 0x340   : > { %1861 = vmatprep.subr.bf16.mxu1 %v5095_v10  ;;  %v5131_v10 = vld [vmem:[#allocation6 + $0x104] ss:$8 sps:$4 sm:$0xff]  }
 0x341   : > { %2124 = vmatprep.subr.bf16.mxu0 %v5131_v10 }
 0x343   : > { %1862 = vmatpush1.bf16.msra.mxu1 %v5093_v11  ;;  %v5134_v11 = vld [vmem:[#allocation6 + $0x114] ss:$8 sps:$4 sm:$0xff]  }
 0x344   : > { %1863 = vmatprep.subr.bf16.mxu1 %v5098_v12  ;;  %v5132_v12 = vld [vmem:[#allocation6 + $0x110] ss:$8 sps:$4 sm:$0xff]  }
 0x347   : > { %1864 = vmatpush1.bf16.msra.mxu1 %v5096_v13  ;;  %v5137_v13 = vld [vmem:[#allocation6 + $0x124] ss:$8 sps:$4 sm:$0xff]  }
 0x348   : > { %1865 = vmatprep.subr.bf16.mxu1 %v5101_v14  ;;  %v5135_v14 = vld [vmem:[#allocation6 + $0x120] ss:$8 sps:$4 sm:$0xff]  }
 0x34b   : > { %1866 = vmatpush1.bf16.msra.mxu1 %v5099_v15  ;;  %v5140_v15 = vld [vmem:[#allocation6 + $0x134] ss:$8 sps:$4 sm:$0xff]  }
 0x34c   : > { %1867 = vmatprep.subr.bf16.mxu1 %v5104_v16  ;;  %v5138_v16 = vld [vmem:[#allocation6 + $0x130] ss:$8 sps:$4 sm:$0xff]  }
 0x34f   : > { %1868 = vmatpush1.bf16.msra.mxu1 %v5102_v17  ;;  %v5143_v17 = vld [vmem:[#allocation6 + $0x144] ss:$8 sps:$4 sm:$0xff]  }
 0x350   : > { %1869 = vmatprep.subr.bf16.mxu1 %v5107_v18  ;;  %v5141_v18 = vld [vmem:[#allocation6 + $0x140] ss:$8 sps:$4 sm:$0xff]  }
 0x353   : > { %1870 = vmatpush1.bf16.msra.mxu1 %v5105_v19  ;;  %v5146_v19 = vld [vmem:[#allocation6 + $0x154] ss:$8 sps:$4 sm:$0xff]  }
 0x354   : > { %1871 = vmatprep.subr.bf16.mxu1 %v5110_v20  ;;  %v5144_v20 = vld [vmem:[#allocation6 + $0x150] ss:$8 sps:$4 sm:$0xff]  }
 0x357   : > { %1872 = vmatpush1.bf16.msra.mxu1 %v5108_v21  ;;  %v5149_v21 = vld [vmem:[#allocation6 + $0x164] ss:$8 sps:$4 sm:$0xff]  }
 0x358   : > { %1873 = vmatprep.subr.bf16.mxu1 %v5113_v22  ;;  %v5147_v22 = vld [vmem:[#allocation6 + $0x160] ss:$8 sps:$4 sm:$0xff]  }
 0x35b   : > { %1874 = vmatpush1.bf16.msra.mxu1 %v5111_v23  ;;  %v5152_v23 = vld [vmem:[#allocation6 + $0x174] ss:$8 sps:$4 sm:$0xff]  }
 0x35c   : > { %1875 = vmatprep.subr.bf16.mxu1 %v5116_v27  ;;  %v5150_v27 = vld [vmem:[#allocation6 + $0x170] ss:$8 sps:$4 sm:$0xff]  }
 0x35f   : > { %1876 = vmatpush1.bf16.msra.mxu1 %v5114_v29  ;;  %v5155_v29 = vld [vmem:[#allocation6 + $0x184] ss:$8 sps:$4 sm:$0xff]  }
 0x360   : > { %1877 = vmatprep.subr.bf16.mxu1 %v5119_v30  ;;  %v5153_v30 = vld [vmem:[#allocation6 + $0x180] ss:$8 sps:$4 sm:$0xff]  }
 0x363   : > { %1878 = vmatpush1.bf16.msra.mxu1 %v5117_v31  ;;  %v5158_v31 = vld [vmem:[#allocation6 + $0x194] ss:$8 sps:$4 sm:$0xff]  }
 0x364   : > { %1879 = vmatprep.subr.bf16.mxu1 %v5122_v3 }
 0x367   : > { %1880 = vmatpush1.bf16.msra.mxu1 %v5120_v4 }
 0x368   : > { %1881 = vmatprep.subr.bf16.mxu1 %v5125_v5 }
 0x36b   : > { %1882 = vmatpush1.bf16.msra.mxu1 %v5123_v6  ;;  %v1089_v6 = vunpack.c.l.bf16 %v5993_v60 }
 0x36c   : > { %1883 = vmatprep.subr.bf16.mxu1 %v5128_v7 }
 0x36f   : > { %1884 = vmatpush1.bf16.msra.mxu1 %v5126_v8 }
 0x405   : > { %v1331_v35 = vpop.f32.mrb[8].mxu1 }
 0x406   : > { %v1332_v36 = vadd.f32 %v1331_v35, %v1130_v33  ;;  %v1333_v37 = vpop.f32.mrb[9].mxu1  ;;  %v5164_v35 = vld [vmem:[#allocation6 + $0x1b4] ss:$8 sps:$4 sm:$0xff]  }
 0x407   : > { %v1334_v38 = vadd.f32 %v1333_v37, %v1134_v34  ;;  %v1335_v39 = vpop.f32.mrb[10].mxu1  ;;  %v5167_v37 = vld [vmem:[#allocation6 + $0x1c4] ss:$8 sps:$4 sm:$0xff]  }
 0x408   : > { %v1336_v40 = vadd.f32 %v1335_v39, %v1130_v33  ;;  %v1337_v41 = vpop.f32.mrb[11].mxu1  ;;  %v1350_v43 = vmax.f32 %v1332_v36, 0.0  ;;  %v5162_v36 = vld [vmem:[#allocation6 + $0x1b0] ss:$8 sps:$4 sm:$0xff]   ;;  %v5170_v39 = vld [vmem:[#allocation6 + $0x1d4] ss:$8 sps:$4 sm:$0xff]  }
 0x409   : > { %v1338_v42 = vadd.f32 %v1337_v41, %v1134_v34  ;;  %v1351_v45 = vmax.f32 %v1334_v38, 0.0  ;;  %v5165_v38 = vld [vmem:[#allocation6 + $0x1c0] ss:$8 sps:$4 sm:$0xff]  }
 0x40a   : > { %v1352_v44 = vmax.f32 %v1336_v40, 0.0  ;;  %v5168_v40 = vld [vmem:[#allocation6 + $0x1d0] ss:$8 sps:$4 sm:$0xff]   ;;  %v1394_v41 = vld [vmem:[%s6188_s29] sm:$0x3] }
 0x40b   : > { %v1353_v48 = vmax.f32 %v1338_v42, 0.0  ;;  %v1399_v42 = vrot.slane %v1394_v41, %v5972_v26 }
 0x40c   : > { %v1358_v49 = vpack.c.bf16 %v1352_v44, %v1350_v43  ;;  %v1403_v43 = vrot.slane %v1394_v41, %v5978_v28  ;;  %v5189_v41 = vld [vmem:[#allocation4 + $0x240] ss:$8 sps:$4 sm:$0xff]  }
 0x40d   : > { %v1359_v50 = vpack.c.bf16 %v1353_v48, %v1351_v45  ;;  %v1341_v51 = vpop.f32.mrb[12].mxu1  ;;  %v1085_v45 = vunpack.c.l.bf16 %v5987_v46 }
 0x40e   : > { %v1342_v52 = vadd.f32 %v1341_v51, %v1130_v33  ;;  %v1343_v53 = vpop.f32.mrb[13].mxu1 }
 0x40f   : > { %v1344_v54 = vadd.f32 %v1343_v53, %v1134_v34  ;;  %v1345_v55 = vpop.f32.mrb[14].mxu1  ;;  %1598 = vmatprep.mubr.bf16.mxu0 %v1359_v50  ;;  %v1086_v50 = vunpack.c.l.bf16 %v5989_v47 }
 0x410   : > { %v1354_v56 = vmax.f32 %v1342_v52, 0.0  ;;  %v1346_v57 = vadd.f32 %v1345_v55, %v1130_v33  ;;  %v1347_v58 = vpop.f32.mrb[15].mxu1  ;;  %1599 = vmatmul.mubr.bf16.vlgmr.msra.gmra.mrb[12].mxu0 %v1358_v49  ;;  %v5161_v33 = vld [vmem:[#allocation6 + $0x1a4] ss:$8 sps:$4 sm:$0xff]  }
 0x411   : > { %v1355_v59 = vmax.f32 %v1344_v54, 0.0  ;;  %v1348_v62 = vadd.f32 %v1347_v58, %v1134_v34  ;;  %2125 = vmatpush1.bf16.msra.mxu0 %v5129_v9  ;;  %v5159_v34 = vld [vmem:[#allocation6 + $0x1a0] ss:$8 sps:$4 sm:$0xff]   ;;  %v1087_v54 = vunpack.c.h.bf16 %v5987_v46  ;;  %v1088_v58 = vunpack.c.h.bf16 %v5989_v47 }
 0x412   : > { %v1356_v63 = vmax.f32 %v1346_v57, 0.0  ;;  %2126 = vmatprep.subr.bf16.mxu0 %v5134_v11  ;;  %v1090_v46 = vunpack.c.l.bf16 %v5995_v61 }
 0x413   : > { %v1357_v0 = vmax.f32 %v1348_v62, 0.0 }
 0x414   : > { %v1360_v1 = vpack.c.bf16 %v1356_v63, %v1354_v56 }
 0x415   : > { %v1361_v2 = vpack.c.bf16 %v1357_v0, %v1355_v59  ;;  %2127 = vmatpush1.bf16.msra.mxu0 %v5132_v12  ;;  %v1091_v12 = vunpack.c.h.bf16 %v5993_v60  ;;  %v5173_v60 = vld [vmem:[#allocation6 + $0x1e4] ss:$8 sps:$4 sm:$0xff]  }
 0x416   : > { %2128 = vmatprep.subr.bf16.mxu0 %v5137_v13 }
 0x417   : > { %1608 = vmatprep.mubr.bf16.mxu0 %v1361_v2 }
 0x418   : > { %1609 = vmatmul.mubr.bf16.gmra.mrb[16].mxu0 %v1360_v1 }
 0x419   : > { %2129 = vmatpush1.bf16.msra.mxu0 %v5135_v14 }
 0x41a   : > { %2130 = vmatprep.subr.bf16.mxu0 %v5140_v15 }
 0x41d   : > { %2131 = vmatpush1.bf16.msra.mxu0 %v5138_v16  ;;  %v1092_v16 = vunpack.c.h.bf16 %v5995_v61  ;;  %v5171_v61 = vld [vmem:[#allocation6 + $0x1e0] ss:$8 sps:$4 sm:$0xff]  }
 0x41e   : > { %2132 = vmatprep.subr.bf16.mxu0 %v5143_v17 }
 0x421   : > { %2133 = vmatpush1.bf16.msra.mxu0 %v5141_v18 }
 0x422   : > { %2134 = vmatprep.subr.bf16.mxu0 %v5146_v19 }
 0x425   : > { %2135 = vmatpush1.bf16.msra.mxu0 %v5144_v20 }
 0x426   : > { %2136 = vmatprep.subr.bf16.mxu0 %v5149_v21 }
 0x429   : > { %2137 = vmatpush1.bf16.msra.mxu0 %v5147_v22 }
 0x42a   : > { %2138 = vmatprep.subr.bf16.mxu0 %v5152_v23 }
 0x42d   : > { %2139 = vmatpush1.bf16.msra.mxu0 %v5150_v27 }
 0x42e   : > { %2140 = vmatprep.subr.bf16.mxu0 %v5155_v29 }
 0x431   : > { %2141 = vmatpush1.bf16.msra.mxu0 %v5153_v30  ;;  %v5176_v30 = vld [vmem:[#allocation6 + $0x1f4] ss:$8 sps:$4 sm:$0xff]  }
 0x432   : > { %2142 = vmatprep.subr.bf16.mxu0 %v5158_v31  ;;  %v5174_v31 = vld [vmem:[#allocation6 + $0x1f0] ss:$8 sps:$4 sm:$0xff]  }
 0x435   : > { %2143 = vmatpush1.bf16.msra.mxu0 %v5156_v32  ;;  %v5177_v32 = vld [vmem:[#allocation4 + $0x200] ss:$8 sps:$4 sm:$0xff]  }
 0x436   : > { %2144 = vmatprep.subr.bf16.mxu0 %v5161_v33  ;;  %v5179_v33 = vld [vmem:[#allocation4 + $0x204] ss:$8 sps:$4 sm:$0xff]  }
 0x437   : > { %2411 = vmatprep.subr.bf16.mxu1 %v5179_v33  ;;  %v5218_v33 = vld [vmem:[#allocation4 + $0x2d4] ss:$8 sps:$4 sm:$0xff]  }
 0x439   : > { %2145 = vmatpush1.bf16.msra.mxu0 %v5159_v34  ;;  %v5182_v34 = vld [vmem:[#allocation4 + $0x214] ss:$8 sps:$4 sm:$0xff]  }
 0x43a   : > { %2146 = vmatprep.subr.bf16.mxu0 %v5164_v35  ;;  %v5180_v35 = vld [vmem:[#allocation4 + $0x210] ss:$8 sps:$4 sm:$0xff]  }
 0x43d   : > { %2147 = vmatpush1.bf16.msra.mxu0 %v5162_v36  ;;  %v5185_v36 = vld [vmem:[#allocation4 + $0x224] ss:$8 sps:$4 sm:$0xff]  }
 0x43e   : > { %2148 = vmatprep.subr.bf16.mxu0 %v5167_v37  ;;  %v5183_v37 = vld [vmem:[#allocation4 + $0x220] ss:$8 sps:$4 sm:$0xff]  }
 0x441   : > { %2149 = vmatpush1.bf16.msra.mxu0 %v5165_v38  ;;  %v5188_v38 = vld [vmem:[#allocation4 + $0x234] ss:$8 sps:$4 sm:$0xff]  }
 0x442   : > { %2150 = vmatprep.subr.bf16.mxu0 %v5170_v39  ;;  %v5186_v39 = vld [vmem:[#allocation4 + $0x230] ss:$8 sps:$4 sm:$0xff]  }
 0x445   : > { %2151 = vmatpush1.bf16.msra.mxu0 %v5168_v40  ;;  %v5191_v40 = vld [vmem:[#allocation4 + $0x244] ss:$8 sps:$4 sm:$0xff]  }
 0x446   : > { %2152 = vmatprep.subr.bf16.mxu0 %v5173_v60 }
 0x449   : > { %2153 = vmatpush1.bf16.msra.mxu0 %v5171_v61 }
 0x44a   : > { %2154 = vmatprep.subr.bf16.mxu0 %v5176_v30 }
 0x44d   : > { %2155 = vmatpush1.bf16.msra.mxu0 %v5174_v31 }
 0x4e3   : > { %v1600_v44 = vpop.f32.mrb[12].mxu0 }
 0x4e4   : > { %v1601_v48 = vadd.f32 %v1600_v44, %v1399_v42  ;;  %v1602_v49 = vpop.f32.mrb[13].mxu0  ;;  %v5197_v44 = vld [vmem:[#allocation4 + $0x264] ss:$8 sps:$4 sm:$0xff]  }
 0x4e5   : > { %v1603_v51 = vadd.f32 %v1602_v49, %v1403_v43  ;;  %v1604_v52 = vpop.f32.mrb[14].mxu0  ;;  %v5198_v49 = vld [vmem:[#allocation4 + $0x270] ss:$8 sps:$4 sm:$0xff]  }
 0x4e6   : > { %v1619_v53 = vadd.f32 %v1601_v48, %v1085_v45  ;;  %v1605_v55 = vadd.f32 %v1604_v52, %v1399_v42  ;;  %v1606_v56 = vpop.f32.mrb[15].mxu0  ;;  %v5195_v45 = vld [vmem:[#allocation4 + $0x260] ss:$8 sps:$4 sm:$0xff]   ;;  %v5200_v48 = vld [vmem:[#allocation4 + $0x274] ss:$8 sps:$4 sm:$0xff]  }
 0x4e7   : > { %v1620_v57 = vadd.f32 %v1603_v51, %v1086_v50  ;;  %v1607_v59 = vadd.f32 %v1606_v56, %v1403_v43  ;;  %v5203_v50 = vld [vmem:[#allocation4 + $0x284] ss:$8 sps:$4 sm:$0xff]   ;;  %v5201_v51 = vld [vmem:[#allocation4 + $0x280] ss:$8 sps:$4 sm:$0xff]   ;;  %v5206_v52 = vld [vmem:[#allocation4 + $0x294] ss:$8 sps:$4 sm:$0xff]  }
 0x4e8   : > { %v1621_v62 = vadd.f32 %v1605_v55, %v1087_v54  ;;  %v1627_v0 = vmax.f32 %v1619_v53, 0.0  ;;  %v5204_v53 = vld [vmem:[#allocation4 + $0x290] ss:$8 sps:$4 sm:$0xff]   ;;  %v5209_v54 = vld [vmem:[#allocation4 + $0x2a4] ss:$8 sps:$4 sm:$0xff]  }
 0x4e9   : > { %v1622_v63 = vadd.f32 %v1607_v59, %v1088_v58  ;;  %v1628_v2 = vmax.f32 %v1620_v57, 0.0  ;;  %v5207_v55 = vld [vmem:[#allocation4 + $0x2a0] ss:$8 sps:$4 sm:$0xff]   ;;  %v5212_v56 = vld [vmem:[#allocation4 + $0x2b4] ss:$8 sps:$4 sm:$0xff]  }
 0x4ea   : > { %v1629_v1 = vmax.f32 %v1621_v62, 0.0  ;;  %v5210_v57 = vld [vmem:[#allocation4 + $0x2b0] ss:$8 sps:$4 sm:$0xff]   ;;  %v5215_v58 = vld [vmem:[#allocation4 + $0x2c4] ss:$8 sps:$4 sm:$0xff]  }
 0x4eb   : > { %v1630_v3 = vmax.f32 %v1622_v63, 0.0  ;;  %v1610_v4 = vpop.f32.mrb[16].mxu0  ;;  %v5213_v59 = vld [vmem:[#allocation4 + $0x2c0] ss:$8 sps:$4 sm:$0xff]  }
 0x4ec   : > { %v6013_v5 = vpack.c.bf16 %v1629_v1, %v1627_v0  ;;  %v1611_v7 = vadd.f32 %v1610_v4, %v1399_v42  ;;  %v1612_v8 = vpop.f32.mrb[17].mxu0  ;;  %v4495_v62 = vld [vmem:[%s6156_s8 + $0x2] sm:$0x3] }
 0x4ed   : > { %v1613_v9 = vadd.f32 %v1612_v8, %v1403_v43  ;;  %v1614_v10 = vpop.f32.mrb[18].mxu0  ;;  %v6017_v11 = vpack.c.bf16 %v1630_v3, %v1628_v2  ;;  %v1686_v63 = vrot.slane %v4495_v62, %v5972_v26  ;;  %v1690_v0 = vrot.slane %v4495_v62, %v5978_v28  ;;  %v5252_v62 = vld [vmem:[#allocation6 + $0x290] ss:$8 sps:$4 sm:$0xff]  }
 0x4ee   : > { %v1623_v47 = vadd.f32 %v1611_v7, %v1089_v6  ;;  %v1615_v13 = vadd.f32 %v1614_v10, %v1399_v42  ;;  %v1616_v14 = vpop.f32.mrb[19].mxu0  ;;  %v5194_v42 = vld [vmem:[#allocation4 + $0x254] ss:$8 sps:$4 sm:$0xff]  }
 0x4ef   : > { %v1624_v15 = vadd.f32 %v1613_v9, %v1090_v46  ;;  %v1617_v17 = vadd.f32 %v1616_v14, %v1403_v43  ;;  %1885 = vmatprep.mubr.bf16.mxu1 %v6017_v11  ;;  %v5192_v43 = vld [vmem:[#allocation4 + $0x250] ss:$8 sps:$4 sm:$0xff]  }
 0x4f0   : > { %v1625_v18 = vadd.f32 %v1615_v13, %v1091_v12  ;;  %1886 = vmatmul.mubr.bf16.vlgmr.msra.gmra.mrb[16].mxu1 %v6013_v5  ;;  %v1631_v20 = vmax.f32 %v1623_v47, 0.0 }
 0x4f1   : > { %v1626_v19 = vadd.f32 %v1617_v17, %v1092_v16  ;;  %v1632_v22 = vmax.f32 %v1624_v15, 0.0  ;;  %2412 = vmatpush1.bf16.msra.mxu1 %v5177_v32 }
 0x4f2   : > { %v1633_v21 = vmax.f32 %v1625_v18, 0.0  ;;  %2413 = vmatprep.subr.bf16.mxu1 %v5182_v34  ;;  %v5216_v34 = vld [vmem:[#allocation4 + $0x2d0] ss:$8 sps:$4 sm:$0xff]  }
 0x4f3   : > { %v1634_v23 = vmax.f32 %v1626_v19, 0.0 }
 0x4f4   : > { %v6023_v27 = vpack.c.bf16 %v1633_v21, %v1631_v20 }
 0x4f5   : > { %v6025_v29 = vpack.c.bf16 %v1634_v23, %v1632_v22  ;;  %2414 = vmatpush1.bf16.msra.mxu1 %v5180_v35  ;;  %v5221_v35 = vld [vmem:[#allocation4 + $0x2e4] ss:$8 sps:$4 sm:$0xff]  }
 0x4f6   : > { %2415 = vmatprep.subr.bf16.mxu1 %v5185_v36  ;;  %v5219_v36 = vld [vmem:[#allocation4 + $0x2e0] ss:$8 sps:$4 sm:$0xff]  }
 0x4f7   : > { %1895 = vmatprep.mubr.bf16.mxu1 %v6025_v29 }
 0x4f8   : > { %1896 = vmatmul.mubr.bf16.gmra.mrb[20].mxu1 %v6023_v27 }
 0x4f9   : > { %2416 = vmatpush1.bf16.msra.mxu1 %v5183_v37  ;;  %v5224_v37 = vld [vmem:[#allocation4 + $0x2f4] ss:$8 sps:$4 sm:$0xff]  }
 0x4fa   : > { %2417 = vmatprep.subr.bf16.mxu1 %v5188_v38  ;;  %v5222_v38 = vld [vmem:[#allocation4 + $0x2f0] ss:$8 sps:$4 sm:$0xff]  }
 0x4fd   : > { %2418 = vmatpush1.bf16.msra.mxu1 %v5186_v39  ;;  %v5225_v39 = vld [vmem:[#allocation6 + $0x200] ss:$8 sps:$4 sm:$0xff]  }
 0x4fe   : > { %2419 = vmatprep.subr.bf16.mxu1 %v5191_v40  ;;  %v5227_v40 = vld [vmem:[#allocation6 + $0x204] ss:$8 sps:$4 sm:$0xff]  }
 0x4ff   : > { %2682 = vmatprep.subr.bf16.mxu0 %v5227_v40 }
 0x501   : > { %2420 = vmatpush1.bf16.msra.mxu1 %v5189_v41  ;;  %v5230_v41 = vld [vmem:[#allocation6 + $0x214] ss:$8 sps:$4 sm:$0xff]  }
 0x502   : > { %2421 = vmatprep.subr.bf16.mxu1 %v5194_v42  ;;  %v5228_v42 = vld [vmem:[#allocation6 + $0x210] ss:$8 sps:$4 sm:$0xff]  }
 0x505   : > { %2422 = vmatpush1.bf16.msra.mxu1 %v5192_v43  ;;  %v5233_v43 = vld [vmem:[#allocation6 + $0x224] ss:$8 sps:$4 sm:$0xff]  }
 0x506   : > { %2423 = vmatprep.subr.bf16.mxu1 %v5197_v44  ;;  %v5231_v44 = vld [vmem:[#allocation6 + $0x220] ss:$8 sps:$4 sm:$0xff]  }
 0x509   : > { %2424 = vmatpush1.bf16.msra.mxu1 %v5195_v45  ;;  %v5236_v45 = vld [vmem:[#allocation6 + $0x234] ss:$8 sps:$4 sm:$0xff]  }
 0x50a   : > { %2425 = vmatprep.subr.bf16.mxu1 %v5200_v48  ;;  %v5234_v48 = vld [vmem:[#allocation6 + $0x230] ss:$8 sps:$4 sm:$0xff]  }
 0x50d   : > { %2426 = vmatpush1.bf16.msra.mxu1 %v5198_v49  ;;  %v5239_v49 = vld [vmem:[#allocation6 + $0x244] ss:$8 sps:$4 sm:$0xff]  }
 0x50e   : > { %2427 = vmatprep.subr.bf16.mxu1 %v5203_v50  ;;  %v5237_v50 = vld [vmem:[#allocation6 + $0x240] ss:$8 sps:$4 sm:$0xff]  }
 0x511   : > { %2428 = vmatpush1.bf16.msra.mxu1 %v5201_v51  ;;  %v5242_v51 = vld [vmem:[#allocation6 + $0x254] ss:$8 sps:$4 sm:$0xff]  }
 0x512   : > { %2429 = vmatprep.subr.bf16.mxu1 %v5206_v52  ;;  %v5240_v52 = vld [vmem:[#allocation6 + $0x250] ss:$8 sps:$4 sm:$0xff]  }
 0x515   : > { %2430 = vmatpush1.bf16.msra.mxu1 %v5204_v53  ;;  %v5245_v53 = vld [vmem:[#allocation6 + $0x264] ss:$8 sps:$4 sm:$0xff]  }
 0x516   : > { %2431 = vmatprep.subr.bf16.mxu1 %v5209_v54  ;;  %v5243_v54 = vld [vmem:[#allocation6 + $0x260] ss:$8 sps:$4 sm:$0xff]  }
 0x519   : > { %2432 = vmatpush1.bf16.msra.mxu1 %v5207_v55  ;;  %v5248_v55 = vld [vmem:[#allocation6 + $0x274] ss:$8 sps:$4 sm:$0xff]  }
 0x51a   : > { %2433 = vmatprep.subr.bf16.mxu1 %v5212_v56  ;;  %v5246_v56 = vld [vmem:[#allocation6 + $0x270] ss:$8 sps:$4 sm:$0xff]  }
 0x51d   : > { %2434 = vmatpush1.bf16.msra.mxu1 %v5210_v57  ;;  %v5251_v57 = vld [vmem:[#allocation6 + $0x284] ss:$8 sps:$4 sm:$0xff]  }
 0x51e   : > { %2435 = vmatprep.subr.bf16.mxu1 %v5215_v58  ;;  %v5249_v58 = vld [vmem:[#allocation6 + $0x280] ss:$8 sps:$4 sm:$0xff]  }
 0x521   : > { %2436 = vmatpush1.bf16.msra.mxu1 %v5213_v59  ;;  %v5254_v59 = vld [vmem:[#allocation6 + $0x294] ss:$8 sps:$4 sm:$0xff]  }
 0x522   : > { %2437 = vmatprep.subr.bf16.mxu1 %v5218_v33 }
 0x525   : > { %2438 = vmatpush1.bf16.msra.mxu1 %v5216_v34 }
 0x526   : > { %2439 = vmatprep.subr.bf16.mxu1 %v5221_v35 }
 0x529   : > { %2440 = vmatpush1.bf16.msra.mxu1 %v5219_v36  ;;  %v1643_v36 = vunpack.c.l.bf16 %v6023_v27 }
 0x52a   : > { %2441 = vmatprep.subr.bf16.mxu1 %v5224_v37 }
 0x52d   : > { %2442 = vmatpush1.bf16.msra.mxu1 %v5222_v38 }
 0x5c3   : > { %v1887_v1 = vpop.f32.mrb[16].mxu1 }
 0x5c4   : > { %v1888_v2 = vadd.f32 %v1887_v1, %v1686_v63  ;;  %v1889_v3 = vpop.f32.mrb[17].mxu1  ;;  %v5260_v1 = vld [vmem:[#allocation6 + $0x2b4] ss:$8 sps:$4 sm:$0xff]  }
 0x5c5   : > { %v1890_v4 = vadd.f32 %v1889_v3, %v1690_v0  ;;  %v1891_v6 = vpop.f32.mrb[18].mxu1  ;;  %v5263_v3 = vld [vmem:[#allocation6 + $0x2c4] ss:$8 sps:$4 sm:$0xff]  }
 0x5c6   : > { %v1892_v7 = vadd.f32 %v1891_v6, %v1686_v63  ;;  %v1893_v8 = vpop.f32.mrb[19].mxu1  ;;  %v1906_v9 = vmax.f32 %v1888_v2, 0.0  ;;  %v5258_v2 = vld [vmem:[#allocation6 + $0x2b0] ss:$8 sps:$4 sm:$0xff]   ;;  %v5266_v6 = vld [vmem:[#allocation6 + $0x2d4] ss:$8 sps:$4 sm:$0xff]  }
 0x5c7   : > { %v1894_v46 = vadd.f32 %v1893_v8, %v1690_v0  ;;  %v1907_v47 = vmax.f32 %v1890_v4, 0.0  ;;  %v5261_v4 = vld [vmem:[#allocation6 + $0x2c0] ss:$8 sps:$4 sm:$0xff]  }
 0x5c8   : > { %v1908_v10 = vmax.f32 %v1892_v7, 0.0  ;;  %v5264_v7 = vld [vmem:[#allocation6 + $0x2d0] ss:$8 sps:$4 sm:$0xff]   ;;  %v4528_v8 = vld [vmem:[%s6188_s29 + $0x2] sm:$0x3] }
 0x5c9   : > { %v1909_v12 = vmax.f32 %v1894_v46, 0.0  ;;  %v1957_v46 = vrot.slane %v4528_v8, %v5972_v26 }
 0x5ca   : > { %v1914_v13 = vpack.c.bf16 %v1908_v10, %v1906_v9  ;;  %v1961_v9 = vrot.slane %v4528_v8, %v5978_v28  ;;  %v5285_v8 = vld [vmem:[#allocation4 + $0x340] ss:$8 sps:$4 sm:$0xff]  }
 0x5cb   : > { %v1915_v14 = vpack.c.bf16 %v1909_v12, %v1907_v47  ;;  %v1897_v15 = vpop.f32.mrb[20].mxu1  ;;  %v1639_v47 = vunpack.c.l.bf16 %v6013_v5 }
 0x5cc   : > { %v1898_v16 = vadd.f32 %v1897_v15, %v1686_v63  ;;  %v1899_v17 = vpop.f32.mrb[21].mxu1 }
 0x5cd   : > { %v1900_v18 = vadd.f32 %v1899_v17, %v1690_v0  ;;  %v1901_v19 = vpop.f32.mrb[22].mxu1  ;;  %2156 = vmatprep.mubr.bf16.mxu0 %v1915_v14  ;;  %v1640_v14 = vunpack.c.l.bf16 %v6017_v11 }
 0x5ce   : > { %v1902_v20 = vadd.f32 %v1901_v19, %v1686_v63  ;;  %v1903_v21 = vpop.f32.mrb[23].mxu1  ;;  %2157 = vmatmul.mubr.bf16.vlgmr.msra.gmra.mrb[20].mxu0 %v1914_v13  ;;  %v1910_v23 = vmax.f32 %v1898_v16, 0.0  ;;  %v5257_v63 = vld [vmem:[#allocation6 + $0x2a4] ss:$8 sps:$4 sm:$0xff]  }
 0x5cf   : > { %v1904_v22 = vadd.f32 %v1903_v21, %v1690_v0  ;;  %v1911_v61 = vmax.f32 %v1900_v18, 0.0  ;;  %2683 = vmatpush1.bf16.msra.mxu0 %v5225_v39  ;;  %v5255_v0 = vld [vmem:[#allocation6 + $0x2a0] ss:$8 sps:$4 sm:$0xff]   ;;  %v1641_v18 = vunpack.c.h.bf16 %v6013_v5  ;;  %v1644_v5 = vunpack.c.l.bf16 %v6025_v29 }
 0x5d0   : > { %v1912_v60 = vmax.f32 %v1902_v20, 0.0  ;;  %2684 = vmatprep.subr.bf16.mxu0 %v5230_v41 }
 0x5d1   : > { %v1913_v30 = vmax.f32 %v1904_v22, 0.0  ;;  %v1642_v22 = vunpack.c.h.bf16 %v6017_v11 }
 0x5d2   : > { %v1916_v31 = vpack.c.bf16 %v1912_v60, %v1910_v23 }
 0x5d3   : > { %v1917_v32 = vpack.c.bf16 %v1913_v30, %v1911_v61  ;;  %2685 = vmatpush1.bf16.msra.mxu0 %v5228_v42  ;;  %v1645_v42 = vunpack.c.h.bf16 %v6023_v27  ;;  %v5269_v27 = vld [vmem:[#allocation6 + $0x2e4] ss:$8 sps:$4 sm:$0xff]  }
 0x5d4   : > { %2686 = vmatprep.subr.bf16.mxu0 %v5233_v43 }
 0x5d5   : > { %2166 = vmatprep.mubr.bf16.mxu0 %v1917_v32 }
 0x5d6   : > { %2167 = vmatmul.mubr.bf16.gmra.mrb[24].mxu0 %v1916_v31 }
 0x5d7   : > { %2687 = vmatpush1.bf16.msra.mxu0 %v5231_v44 }
 0x5d8   : > { %2688 = vmatprep.subr.bf16.mxu0 %v5236_v45 }
 0x5db   : > { %2689 = vmatpush1.bf16.msra.mxu0 %v5234_v48  ;;  %v1646_v48 = vunpack.c.h.bf16 %v6025_v29  ;;  %v5267_v29 = vld [vmem:[#allocation6 + $0x2e0] ss:$8 sps:$4 sm:$0xff]  }
 0x5dc   : > { %2690 = vmatprep.subr.bf16.mxu0 %v5239_v49 }
 0x5df   : > { %2691 = vmatpush1.bf16.msra.mxu0 %v5237_v50 }
 0x5e0   : > { %2692 = vmatprep.subr.bf16.mxu0 %v5242_v51 }
 0x5e3   : > { %2693 = vmatpush1.bf16.msra.mxu0 %v5240_v52 }
 0x5e4   : > { %2694 = vmatprep.subr.bf16.mxu0 %v5245_v53 }
 0x5e7   : > { %2695 = vmatpush1.bf16.msra.mxu0 %v5243_v54 }
 0x5e8   : > { %2696 = vmatprep.subr.bf16.mxu0 %v5248_v55 }
 0x5eb   : > { %2697 = vmatpush1.bf16.msra.mxu0 %v5246_v56 }
 0x5ec   : > { %2698 = vmatprep.subr.bf16.mxu0 %v5251_v57 }
 0x5ef   : > { %2699 = vmatpush1.bf16.msra.mxu0 %v5249_v58  ;;  %v5272_v58 = vld [vmem:[#allocation6 + $0x2f4] ss:$8 sps:$4 sm:$0xff]  }
 0x5f0   : > { %2700 = vmatprep.subr.bf16.mxu0 %v5254_v59  ;;  %v5270_v59 = vld [vmem:[#allocation6 + $0x2f0] ss:$8 sps:$4 sm:$0xff]  }
 0x5f3   : > { %2701 = vmatpush1.bf16.msra.mxu0 %v5252_v62  ;;  %v5273_v62 = vld [vmem:[#allocation4 + $0x300] ss:$8 sps:$4 sm:$0xff]  }
 0x5f4   : > { %2702 = vmatprep.subr.bf16.mxu0 %v5257_v63  ;;  %v5275_v63 = vld [vmem:[#allocation4 + $0x304] ss:$8 sps:$4 sm:$0xff]  }
 0x5f5   : > { %2969 = vmatprep.subr.bf16.mxu1 %v5275_v63  ;;  %v5314_v63 = vld [vmem:[#allocation4 + $0x3d4] ss:$8 sps:$4 sm:$0xff]  }
 0x5f7   : > { %2703 = vmatpush1.bf16.msra.mxu0 %v5255_v0  ;;  %v5278_v0 = vld [vmem:[#allocation4 + $0x314] ss:$8 sps:$4 sm:$0xff]  }
 0x5f8   : > { %2704 = vmatprep.subr.bf16.mxu0 %v5260_v1  ;;  %v5276_v1 = vld [vmem:[#allocation4 + $0x310] ss:$8 sps:$4 sm:$0xff]  }
 0x5fb   : > { %2705 = vmatpush1.bf16.msra.mxu0 %v5258_v2  ;;  %v5281_v2 = vld [vmem:[#allocation4 + $0x324] ss:$8 sps:$4 sm:$0xff]  }
 0x5fc   : > { %2706 = vmatprep.subr.bf16.mxu0 %v5263_v3  ;;  %v5279_v3 = vld [vmem:[#allocation4 + $0x320] ss:$8 sps:$4 sm:$0xff]  }
 0x5ff   : > { %2707 = vmatpush1.bf16.msra.mxu0 %v5261_v4  ;;  %v5284_v4 = vld [vmem:[#allocation4 + $0x334] ss:$8 sps:$4 sm:$0xff]  }
 0x600   : > { %2708 = vmatprep.subr.bf16.mxu0 %v5266_v6  ;;  %v5282_v6 = vld [vmem:[#allocation4 + $0x330] ss:$8 sps:$4 sm:$0xff]  }
 0x603   : > { %2709 = vmatpush1.bf16.msra.mxu0 %v5264_v7  ;;  %v5287_v7 = vld [vmem:[#allocation4 + $0x344] ss:$8 sps:$4 sm:$0xff]  }
 0x604   : > { %2710 = vmatprep.subr.bf16.mxu0 %v5269_v27 }
 0x607   : > { %2711 = vmatpush1.bf16.msra.mxu0 %v5267_v29 }
 0x608   : > { %2712 = vmatprep.subr.bf16.mxu0 %v5272_v58 }
 0x60b   : > { %2713 = vmatpush1.bf16.msra.mxu0 %v5270_v59 }
 0x6a1   : > { %v2158_v10 = vpop.f32.mrb[20].mxu0 }
 0x6a2   : > { %v2159_v12 = vadd.f32 %v2158_v10, %v1957_v46  ;;  %v2160_v13 = vpop.f32.mrb[21].mxu0  ;;  %v5293_v10 = vld [vmem:[#allocation4 + $0x364] ss:$8 sps:$4 sm:$0xff]  }
 0x6a3   : > { %v2161_v15 = vadd.f32 %v2160_v13, %v1961_v9  ;;  %v2162_v16 = vpop.f32.mrb[22].mxu0  ;;  %v5294_v13 = vld [vmem:[#allocation4 + $0x370] ss:$8 sps:$4 sm:$0xff]  }
 0x6a4   : > { %v2177_v17 = vadd.f32 %v2159_v12, %v1639_v47  ;;  %v2163_v19 = vadd.f32 %v2162_v16, %v1957_v46  ;;  %v2164_v20 = vpop.f32.mrb[23].mxu0  ;;  %v5291_v47 = vld [vmem:[#allocation4 + $0x360] ss:$8 sps:$4 sm:$0xff]   ;;  %v5296_v12 = vld [vmem:[#allocation4 + $0x374] ss:$8 sps:$4 sm:$0xff]  }
 0x6a5   : > { %v2178_v21 = vadd.f32 %v2161_v15, %v1640_v14  ;;  %v2165_v23 = vadd.f32 %v2164_v20, %v1961_v9  ;;  %v5299_v14 = vld [vmem:[#allocation4 + $0x384] ss:$8 sps:$4 sm:$0xff]   ;;  %v5297_v15 = vld [vmem:[#allocation4 + $0x380] ss:$8 sps:$4 sm:$0xff]   ;;  %v5302_v16 = vld [vmem:[#allocation4 + $0x394] ss:$8 sps:$4 sm:$0xff]  }
 0x6a6   : > { %v2179_v60 = vadd.f32 %v2163_v19, %v1641_v18  ;;  %v2185_v30 = vmax.f32 %v2177_v17, 0.0  ;;  %v5300_v17 = vld [vmem:[#allocation4 + $0x390] ss:$8 sps:$4 sm:$0xff]   ;;  %v5305_v18 = vld [vmem:[#allocation4 + $0x3a4] ss:$8 sps:$4 sm:$0xff]  }
 0x6a7   : > { %v2180_v61 = vadd.f32 %v2165_v23, %v1642_v22  ;;  %v2186_v32 = vmax.f32 %v2178_v21, 0.0  ;;  %v5303_v19 = vld [vmem:[#allocation4 + $0x3a0] ss:$8 sps:$4 sm:$0xff]   ;;  %v5308_v20 = vld [vmem:[#allocation4 + $0x3b4] ss:$8 sps:$4 sm:$0xff]  }
 0x6a8   : > { %v2187_v31 = vmax.f32 %v2179_v60, 0.0  ;;  %v5306_v21 = vld [vmem:[#allocation4 + $0x3b0] ss:$8 sps:$4 sm:$0xff]   ;;  %v5311_v22 = vld [vmem:[#allocation4 + $0x3c4] ss:$8 sps:$4 sm:$0xff]  }
 0x6a9   : > { %v2188_v33 = vmax.f32 %v2180_v61, 0.0  ;;  %v2168_v34 = vpop.f32.mrb[24].mxu0  ;;  %v5309_v23 = vld [vmem:[#allocation4 + $0x3c0] ss:$8 sps:$4 sm:$0xff]   ;;  %v4561_v60 = vld [vmem:[%s6156_s8 + $0x4] sm:$0x3] }
 0x6aa   : > { %v6043_v35 = vpack.c.bf16 %v2187_v31, %v2185_v30  ;;  %v2169_v37 = vadd.f32 %v2168_v34, %v1957_v46  ;;  %v2170_v38 = vpop.f32.mrb[25].mxu0  ;;  %v2244_v61 = vrot.slane %v4561_v60, %v5972_v26  ;;  %v2248_v30 = vrot.slane %v4561_v60, %v5978_v28  ;;  %v5348_v60 = vld [vmem:[#allocation6 + $0x390] ss:$8 sps:$4 sm:$0xff]  }
 0x6ab   : > { %v2171_v39 = vadd.f32 %v2170_v38, %v1961_v9  ;;  %v2172_v40 = vpop.f32.mrb[26].mxu0  ;;  %v6047_v41 = vpack.c.bf16 %v2188_v33, %v2186_v32 }
 0x6ac   : > { %v2181_v11 = vadd.f32 %v2169_v37, %v1643_v36  ;;  %v2173_v43 = vadd.f32 %v2172_v40, %v1957_v46  ;;  %v2174_v44 = vpop.f32.mrb[27].mxu0  ;;  %v5290_v46 = vld [vmem:[#allocation4 + $0x354] ss:$8 sps:$4 sm:$0xff]  }
 0x6ad   : > { %v2182_v45 = vadd.f32 %v2171_v39, %v1644_v5  ;;  %v2175_v49 = vadd.f32 %v2174_v44, %v1961_v9  ;;  %2443 = vmatprep.mubr.bf16.mxu1 %v6047_v41  ;;  %v5288_v9 = vld [vmem:[#allocation4 + $0x350] ss:$8 sps:$4 sm:$0xff]  }
 0x6ae   : > { %v2183_v50 = vadd.f32 %v2173_v43, %v1645_v42  ;;  %2444 = vmatmul.mubr.bf16.vlgmr.msra.gmra.mrb[24].mxu1 %v6043_v35  ;;  %v2189_v52 = vmax.f32 %v2181_v11, 0.0 }
 0x6af   : > { %v2184_v51 = vadd.f32 %v2175_v49, %v1646_v48  ;;  %v2190_v54 = vmax.f32 %v2182_v45, 0.0  ;;  %2970 = vmatpush1.bf16.msra.mxu1 %v5273_v62 }
 0x6b0   : > { %v2191_v53 = vmax.f32 %v2183_v50, 0.0  ;;  %2971 = vmatprep.subr.bf16.mxu1 %v5278_v0  ;;  %v5312_v0 = vld [vmem:[#allocation4 + $0x3d0] ss:$8 sps:$4 sm:$0xff]  }
 0x6b1   : > { %v2192_v55 = vmax.f32 %v2184_v51, 0.0 }
 0x6b2   : > { %v6053_v56 = vpack.c.bf16 %v2191_v53, %v2189_v52 }
 0x6b3   : > { %v6055_v57 = vpack.c.bf16 %v2192_v55, %v2190_v54  ;;  %2972 = vmatpush1.bf16.msra.mxu1 %v5276_v1  ;;  %v5317_v1 = vld [vmem:[#allocation4 + $0x3e4] ss:$8 sps:$4 sm:$0xff]  }
 0x6b4   : > { %2973 = vmatprep.subr.bf16.mxu1 %v5281_v2  ;;  %v5315_v2 = vld [vmem:[#allocation4 + $0x3e0] ss:$8 sps:$4 sm:$0xff]  }
 0x6b5   : > { %2453 = vmatprep.mubr.bf16.mxu1 %v6055_v57 }
 0x6b6   : > { %2454 = vmatmul.mubr.bf16.gmra.mrb[28].mxu1 %v6053_v56 }
 0x6b7   : > { %2974 = vmatpush1.bf16.msra.mxu1 %v5279_v3  ;;  %v5320_v3 = vld [vmem:[#allocation4 + $0x3f4] ss:$8 sps:$4 sm:$0xff]  }
 0x6b8   : > { %2975 = vmatprep.subr.bf16.mxu1 %v5284_v4  ;;  %v5318_v4 = vld [vmem:[#allocation4 + $0x3f0] ss:$8 sps:$4 sm:$0xff]  }
 0x6bb   : > { %2976 = vmatpush1.bf16.msra.mxu1 %v5282_v6  ;;  %v5321_v6 = vld [vmem:[#allocation6 + $0x300] ss:$8 sps:$4 sm:$0xff]  }
 0x6bc   : > { %2977 = vmatprep.subr.bf16.mxu1 %v5287_v7  ;;  %v5323_v7 = vld [vmem:[#allocation6 + $0x304] ss:$8 sps:$4 sm:$0xff]  }
 0x6bd   : > { %3240 = vmatprep.subr.bf16.mxu0 %v5323_v7 }
 0x6bf   : > { %2978 = vmatpush1.bf16.msra.mxu1 %v5285_v8  ;;  %v5326_v8 = vld [vmem:[#allocation6 + $0x314] ss:$8 sps:$4 sm:$0xff]  }
 0x6c0   : > { %2979 = vmatprep.subr.bf16.mxu1 %v5290_v46  ;;  %v5324_v46 = vld [vmem:[#allocation6 + $0x310] ss:$8 sps:$4 sm:$0xff]  }
 0x6c3   : > { %2980 = vmatpush1.bf16.msra.mxu1 %v5288_v9  ;;  %v5329_v9 = vld [vmem:[#allocation6 + $0x324] ss:$8 sps:$4 sm:$0xff]  }
 0x6c4   : > { %2981 = vmatprep.subr.bf16.mxu1 %v5293_v10  ;;  %v5327_v10 = vld [vmem:[#allocation6 + $0x320] ss:$8 sps:$4 sm:$0xff]  }
 0x6c7   : > { %2982 = vmatpush1.bf16.msra.mxu1 %v5291_v47  ;;  %v5332_v47 = vld [vmem:[#allocation6 + $0x334] ss:$8 sps:$4 sm:$0xff]  }
 0x6c8   : > { %2983 = vmatprep.subr.bf16.mxu1 %v5296_v12  ;;  %v5330_v12 = vld [vmem:[#allocation6 + $0x330] ss:$8 sps:$4 sm:$0xff]  }
 0x6cb   : > { %2984 = vmatpush1.bf16.msra.mxu1 %v5294_v13  ;;  %v5335_v13 = vld [vmem:[#allocation6 + $0x344] ss:$8 sps:$4 sm:$0xff]  }
 0x6cc   : > { %2985 = vmatprep.subr.bf16.mxu1 %v5299_v14  ;;  %v5333_v14 = vld [vmem:[#allocation6 + $0x340] ss:$8 sps:$4 sm:$0xff]  }
 0x6cf   : > { %2986 = vmatpush1.bf16.msra.mxu1 %v5297_v15  ;;  %v5338_v15 = vld [vmem:[#allocation6 + $0x354] ss:$8 sps:$4 sm:$0xff]  }
 0x6d0   : > { %2987 = vmatprep.subr.bf16.mxu1 %v5302_v16  ;;  %v5336_v16 = vld [vmem:[#allocation6 + $0x350] ss:$8 sps:$4 sm:$0xff]  }
 0x6d3   : > { %2988 = vmatpush1.bf16.msra.mxu1 %v5300_v17  ;;  %v5341_v17 = vld [vmem:[#allocation6 + $0x364] ss:$8 sps:$4 sm:$0xff]  }
 0x6d4   : > { %2989 = vmatprep.subr.bf16.mxu1 %v5305_v18  ;;  %v5339_v18 = vld [vmem:[#allocation6 + $0x360] ss:$8 sps:$4 sm:$0xff]  }
 0x6d7   : > { %2990 = vmatpush1.bf16.msra.mxu1 %v5303_v19  ;;  %v5344_v19 = vld [vmem:[#allocation6 + $0x374] ss:$8 sps:$4 sm:$0xff]  }
 0x6d8   : > { %2991 = vmatprep.subr.bf16.mxu1 %v5308_v20  ;;  %v5342_v20 = vld [vmem:[#allocation6 + $0x370] ss:$8 sps:$4 sm:$0xff]  }
 0x6db   : > { %2992 = vmatpush1.bf16.msra.mxu1 %v5306_v21  ;;  %v5347_v21 = vld [vmem:[#allocation6 + $0x384] ss:$8 sps:$4 sm:$0xff]  }
 0x6dc   : > { %2993 = vmatprep.subr.bf16.mxu1 %v5311_v22  ;;  %v5345_v22 = vld [vmem:[#allocation6 + $0x380] ss:$8 sps:$4 sm:$0xff]  }
 0x6df   : > { %2994 = vmatpush1.bf16.msra.mxu1 %v5309_v23  ;;  %v5350_v23 = vld [vmem:[#allocation6 + $0x394] ss:$8 sps:$4 sm:$0xff]  }
 0x6e0   : > { %2995 = vmatprep.subr.bf16.mxu1 %v5314_v63 }
 0x6e3   : > { %2996 = vmatpush1.bf16.msra.mxu1 %v5312_v0 }
 0x6e4   : > { %2997 = vmatprep.subr.bf16.mxu1 %v5317_v1 }
 0x6e7   : > { %2998 = vmatpush1.bf16.msra.mxu1 %v5315_v2  ;;  %v2201_v2 = vunpack.c.l.bf16 %v6053_v56 }
 0x6e8   : > { %2999 = vmatprep.subr.bf16.mxu1 %v5320_v3 }
 0x6eb   : > { %3000 = vmatpush1.bf16.msra.mxu1 %v5318_v4 }
 0x781   : > { %v2445_v31 = vpop.f32.mrb[24].mxu1 }
 0x782   : > { %v2446_v32 = vadd.f32 %v2445_v31, %v2244_v61  ;;  %v2447_v33 = vpop.f32.mrb[25].mxu1  ;;  %v5356_v31 = vld [vmem:[#allocation6 + $0x3b4] ss:$8 sps:$4 sm:$0xff]  }
 0x783   : > { %v2448_v34 = vadd.f32 %v2447_v33, %v2248_v30  ;;  %v2449_v36 = vpop.f32.mrb[26].mxu1  ;;  %v5359_v33 = vld [vmem:[#allocation6 + $0x3c4] ss:$8 sps:$4 sm:$0xff]  }
 0x784   : > { %v2450_v37 = vadd.f32 %v2449_v36, %v2244_v61  ;;  %v2451_v38 = vpop.f32.mrb[27].mxu1  ;;  %v2464_v39 = vmax.f32 %v2446_v32, 0.0  ;;  %v5354_v32 = vld [vmem:[#allocation6 + $0x3b0] ss:$8 sps:$4 sm:$0xff]   ;;  %v5362_v36 = vld [vmem:[#allocation6 + $0x3d4] ss:$8 sps:$4 sm:$0xff]  }
 0x785   : > { %v2452_v5 = vadd.f32 %v2451_v38, %v2248_v30  ;;  %v2465_v11 = vmax.f32 %v2448_v34, 0.0  ;;  %v5357_v34 = vld [vmem:[#allocation6 + $0x3c0] ss:$8 sps:$4 sm:$0xff]   ;;  %v4594_v38 = vld [vmem:[%s6188_s29 + $0x4] sm:$0x3] }
 0x786   : > { %v2466_v40 = vmax.f32 %v2450_v37, 0.0  ;;  %v5360_v37 = vld [vmem:[#allocation6 + $0x3d0] ss:$8 sps:$4 sm:$0xff]  }
 0x787   : > { %v2467_v42 = vmax.f32 %v2452_v5, 0.0  ;;  %v2515_v5 = vrot.slane %v4594_v38, %v5972_v26 }
 0x788   : > { %v2472_v43 = vpack.c.bf16 %v2466_v40, %v2464_v39  ;;  %v2519_v39 = vrot.slane %v4594_v38, %v5978_v28  ;;  %v5395_v38 = vld [vmem:[#allocation7 + $0x84] ss:$16 sps:$4 sm:$0xff]  }
 0x789   : > { %v2473_v44 = vpack.c.bf16 %v2467_v42, %v2465_v11  ;;  %v2455_v45 = vpop.f32.mrb[28].mxu1  ;;  %v2197_v11 = vunpack.c.l.bf16 %v6043_v35 }
 0x78a   : > { %v2456_v48 = vadd.f32 %v2455_v45, %v2244_v61  ;;  %v2457_v49 = vpop.f32.mrb[29].mxu1 }
 0x78b   : > { %v2458_v50 = vadd.f32 %v2457_v49, %v2248_v30  ;;  %v2459_v51 = vpop.f32.mrb[30].mxu1  ;;  %2714 = vmatprep.mubr.bf16.mxu0 %v2473_v44  ;;  %v2198_v44 = vunpack.c.l.bf16 %v6047_v41 }
 0x78c   : > { %v2460_v52 = vadd.f32 %v2459_v51, %v2244_v61  ;;  %v2461_v53 = vpop.f32.mrb[31].mxu1  ;;  %2715 = vmatmul.mubr.bf16.vlgmr.msra.gmra.mrb[28].mxu0 %v2472_v43  ;;  %v2468_v55 = vmax.f32 %v2456_v48, 0.0  ;;  %v5353_v61 = vld [vmem:[#allocation6 + $0x3a4] ss:$8 sps:$4 sm:$0xff]  }
 0x78d   : > { %v2462_v54 = vadd.f32 %v2461_v53, %v2248_v30  ;;  %v2469_v29 = vmax.f32 %v2458_v50, 0.0  ;;  %3241 = vmatpush1.bf16.msra.mxu0 %v5321_v6  ;;  %v5351_v30 = vld [vmem:[#allocation6 + $0x3a0] ss:$8 sps:$4 sm:$0xff]   ;;  %v2199_v50 = vunpack.c.h.bf16 %v6043_v35  ;;  %v2202_v35 = vunpack.c.l.bf16 %v6055_v57 }
 0x78e   : > { %v2470_v27 = vmax.f32 %v2460_v52, 0.0  ;;  %3242 = vmatprep.subr.bf16.mxu0 %v5326_v8 }
 0x78f   : > { %v2471_v58 = vmax.f32 %v2462_v54, 0.0  ;;  %v2200_v54 = vunpack.c.h.bf16 %v6047_v41 }
 0x790   : > { %v2474_v59 = vpack.c.bf16 %v2470_v27, %v2468_v55 }
 0x791   : > { %v2475_v62 = vpack.c.bf16 %v2471_v58, %v2469_v29  ;;  %3243 = vmatpush1.bf16.msra.mxu0 %v5324_v46  ;;  %v2203_v46 = vunpack.c.h.bf16 %v6053_v56  ;;  %v5365_v56 = vld [vmem:[#allocation6 + $0x3e4] ss:$8 sps:$4 sm:$0xff]  }
 0x792   : > { %3244 = vmatprep.subr.bf16.mxu0 %v5329_v9 }
 0x793   : > { %2724 = vmatprep.mubr.bf16.mxu0 %v2475_v62 }
 0x794   : > { %2725 = vmatmul.mubr.bf16.gmra.mrb[32].mxu0 %v2474_v59 }
 0x795   : > { %3245 = vmatpush1.bf16.msra.mxu0 %v5327_v10 }
 0x796   : > { %3246 = vmatprep.subr.bf16.mxu0 %v5332_v47 }
 0x799   : > { %3247 = vmatpush1.bf16.msra.mxu0 %v5330_v12  ;;  %v2204_v12 = vunpack.c.h.bf16 %v6055_v57  ;;  %v5363_v57 = vld [vmem:[#allocation6 + $0x3e0] ss:$8 sps:$4 sm:$0xff]  }
 0x79a   : > { %3248 = vmatprep.subr.bf16.mxu0 %v5335_v13 }
 0x79d   : > { %3249 = vmatpush1.bf16.msra.mxu0 %v5333_v14 }
 0x79e   : > { %3250 = vmatprep.subr.bf16.mxu0 %v5338_v15 }
 0x7a1   : > { %3251 = vmatpush1.bf16.msra.mxu0 %v5336_v16 }
 0x7a2   : > { %3252 = vmatprep.subr.bf16.mxu0 %v5341_v17 }
 0x7a5   : > { %3253 = vmatpush1.bf16.msra.mxu0 %v5339_v18 }
 0x7a6   : > { %3254 = vmatprep.subr.bf16.mxu0 %v5344_v19 }
 0x7a9   : > { %3255 = vmatpush1.bf16.msra.mxu0 %v5342_v20 }
 0x7aa   : > { %3256 = vmatprep.subr.bf16.mxu0 %v5347_v21 }
 0x7ad   : > { %3257 = vmatpush1.bf16.msra.mxu0 %v5345_v22  ;;  %v5368_v22 = vld [vmem:[#allocation6 + $0x3f4] ss:$8 sps:$4 sm:$0xff]  }
 0x7ae   : > { %3258 = vmatprep.subr.bf16.mxu0 %v5350_v23  ;;  %v5366_v23 = vld [vmem:[#allocation6 + $0x3f0] ss:$8 sps:$4 sm:$0xff]  }
 0x7b1   : > { %3259 = vmatpush1.bf16.msra.mxu0 %v5348_v60  ;;  %v5369_v60 = vld [vmem:[#allocation7] ss:$16 sps:$4 sm:$0xff]  }
 0x7b2   : > { %3260 = vmatprep.subr.bf16.mxu0 %v5353_v61  ;;  %v5371_v61 = vld [vmem:[#allocation7 + $0x4] ss:$16 sps:$4 sm:$0xff]  }
 0x7b3   : > { %3719 = vmatprep.subr.bf16.mxu1 %v5371_v61  ;;  %v5386_v61 = vld [vmem:[#allocation7 + $0x4c] ss:$16 sps:$4 sm:$0xff]  }
 0x7b5   : > { %3261 = vmatpush1.bf16.msra.mxu0 %v5351_v30  ;;  %v5374_v30 = vld [vmem:[#allocation7 + $0xc] ss:$16 sps:$4 sm:$0xff]  }
 0x7b6   : > { %3262 = vmatprep.subr.bf16.mxu0 %v5356_v31  ;;  %v5377_v31 = vld [vmem:[#allocation7 + $0x24] ss:$16 sps:$4 sm:$0xff]  }
 0x7b9   : > { %3263 = vmatpush1.bf16.msra.mxu0 %v5354_v32  ;;  %v5375_v32 = vld [vmem:[#allocation7 + $0x20] ss:$16 sps:$4 sm:$0xff]  }
 0x7ba   : > { %3264 = vmatprep.subr.bf16.mxu0 %v5359_v33  ;;  %v5383_v33 = vld [vmem:[#allocation7 + $0x44] ss:$16 sps:$4 sm:$0xff]  }
 0x7bd   : > { %3265 = vmatpush1.bf16.msra.mxu0 %v5357_v34  ;;  %v5381_v34 = vld [vmem:[#allocation7 + $0x40] ss:$16 sps:$4 sm:$0xff]  }
 0x7be   : > { %3266 = vmatprep.subr.bf16.mxu0 %v5362_v36  ;;  %v5389_v36 = vld [vmem:[#allocation7 + $0x64] ss:$16 sps:$4 sm:$0xff]  }
 0x7c1   : > { %3267 = vmatpush1.bf16.msra.mxu0 %v5360_v37  ;;  %v5387_v37 = vld [vmem:[#allocation7 + $0x60] ss:$16 sps:$4 sm:$0xff]  }
 0x7c2   : > { %3268 = vmatprep.subr.bf16.mxu0 %v5365_v56 }
 0x7c5   : > { %3269 = vmatpush1.bf16.msra.mxu0 %v5363_v57 }
 0x7c6   : > { %3270 = vmatprep.subr.bf16.mxu0 %v5368_v22  ;;  %v5378_v22 = vld [vmem:[#allocation7 + $0x28] ss:$16 sps:$4 sm:$0xff]  }
 0x7c9   : > { %3271 = vmatpush1.bf16.msra.mxu0 %v5366_v23 }
 0x7ca   : > { %3772 = vmatprep.subr.bf16.mxu0 %v5374_v30 }
 0x85f   : > { %v2716_v40 = vpop.f32.mrb[28].mxu0 }
 0x860   : > { %v2717_v42 = vadd.f32 %v2716_v40, %v2515_v5  ;;  %v2718_v43 = vpop.f32.mrb[29].mxu0  ;;  %v5399_v40 = vld [vmem:[#allocation7 + $0xa0] ss:$16 sps:$4 sm:$0xff]  }
 0x861   : > { %v2719_v45 = vadd.f32 %v2718_v43, %v2519_v39  ;;  %v2720_v48 = vpop.f32.mrb[30].mxu0  ;;  %v5413_v43 = vld [vmem:[#allocation7 + $0xe4] ss:$16 sps:$4 sm:$0xff]  }
 0x862   : > { %v2735_v49 = vadd.f32 %v2717_v42, %v2197_v11  ;;  %v2721_v51 = vadd.f32 %v2720_v48, %v2515_v5  ;;  %v2722_v52 = vpop.f32.mrb[31].mxu0  ;;  %v5407_v11 = vld [vmem:[#allocation7 + $0xc4] ss:$16 sps:$4 sm:$0xff]   ;;  %v5405_v42 = vld [vmem:[#allocation7 + $0xc0] ss:$16 sps:$4 sm:$0xff]  }
 0x863   : > { %v2736_v53 = vadd.f32 %v2719_v45, %v2198_v44  ;;  %v2723_v55 = vadd.f32 %v2722_v52, %v2519_v39  ;;  %v5411_v44 = vld [vmem:[#allocation7 + $0xe0] ss:$16 sps:$4 sm:$0xff]   ;;  %v5419_v45 = vld [vmem:[#allocation7 + $0x104] ss:$16 sps:$4 sm:$0xff]  }
 0x864   : > { %v2737_v27 = vadd.f32 %v2721_v51, %v2199_v50  ;;  %v2743_v58 = vmax.f32 %v2735_v49, 0.0  ;;  %v5417_v48 = vld [vmem:[#allocation7 + $0x100] ss:$16 sps:$4 sm:$0xff]   ;;  %v5425_v49 = vld [vmem:[#allocation7 + $0x124] ss:$16 sps:$4 sm:$0xff]  }
 0x865   : > { %v2738_v29 = vadd.f32 %v2723_v55, %v2200_v54  ;;  %v2744_v62 = vmax.f32 %v2736_v53, 0.0  ;;  %v5423_v50 = vld [vmem:[#allocation7 + $0x120] ss:$16 sps:$4 sm:$0xff]   ;;  %v5431_v51 = vld [vmem:[#allocation7 + $0x144] ss:$16 sps:$4 sm:$0xff]  }
 0x866   : > { %v2745_v59 = vmax.f32 %v2737_v27, 0.0  ;;  %v5429_v52 = vld [vmem:[#allocation7 + $0x140] ss:$16 sps:$4 sm:$0xff]   ;;  %v5437_v53 = vld [vmem:[#allocation7 + $0x164] ss:$16 sps:$4 sm:$0xff]  }
 0x867   : > { %v2746_v63 = vmax.f32 %v2738_v29, 0.0  ;;  %v2726_v0 = vpop.f32.mrb[32].mxu0  ;;  %v5435_v54 = vld [vmem:[#allocation7 + $0x160] ss:$16 sps:$4 sm:$0xff]   ;;  %v5443_v55 = vld [vmem:[#allocation7 + $0x184] ss:$16 sps:$4 sm:$0xff]  }
 0x868   : > { %v6073_v1 = vpack.c.bf16 %v2745_v59, %v2743_v58  ;;  %v2727_v3 = vadd.f32 %v2726_v0, %v2515_v5  ;;  %v2728_v4 = vpop.f32.mrb[33].mxu0  ;;  %v5441_v27 = vld [vmem:[#allocation7 + $0x180] ss:$16 sps:$4 sm:$0xff]   ;;  %v4627_v29 = vld [vmem:[%s6156_s8 + $0x6] sm:$0x3] }
 0x869   : > { %v2729_v6 = vadd.f32 %v2728_v4, %v2519_v39  ;;  %v2730_v7 = vpop.f32.mrb[34].mxu0  ;;  %v6077_v8 = vpack.c.bf16 %v2746_v63, %v2744_v62  ;;  %v2802_v58 = vrot.slane %v4627_v29, %v5972_v26  ;;  %v2806_v59 = vrot.slane %v4627_v29, %v5978_v28  ;;  %v5449_v29 = vld [vmem:[#allocation7 + $0x1a4] ss:$16 sps:$4 sm:$0xff]  }
 0x86a   : > { %v2739_v41 = vadd.f32 %v2727_v3, %v2201_v2  ;;  %v2731_v9 = vadd.f32 %v2730_v7, %v2515_v5  ;;  %v2732_v10 = vpop.f32.mrb[35].mxu0  ;;  %v5393_v5 = vld [vmem:[#allocation7 + $0x80] ss:$16 sps:$4 sm:$0xff]  }
 0x86b   : > { %v2740_v47 = vadd.f32 %v2729_v6, %v2202_v35  ;;  %v2733_v13 = vadd.f32 %v2732_v10, %v2519_v39  ;;  %3001 = vmatprep.mubr.bf16.mxu1 %v6077_v8  ;;  %v5401_v39 = vld [vmem:[#allocation7 + $0xa4] ss:$16 sps:$4 sm:$0xff]  }
 0x86c   : > { %v2741_v14 = vadd.f32 %v2731_v9, %v2203_v46  ;;  %3002 = vmatmul.mubr.bf16.vlgmr.msra.gmra.mrb[32].mxu1 %v6073_v1  ;;  %v2747_v16 = vmax.f32 %v2739_v41, 0.0 }
 0x86d   : > { %v2742_v15 = vadd.f32 %v2733_v13, %v2204_v12  ;;  %v2748_v18 = vmax.f32 %v2740_v47, 0.0  ;;  %3720 = vmatpush1.bf16.msra.mxu1 %v5369_v60  ;;  %v5372_v13 = vld [vmem:[#allocation7 + $0x8] ss:$16 sps:$4 sm:$0xff]  }
 0x86e   : > { %v2749_v17 = vmax.f32 %v2741_v14, 0.0  ;;  %3721 = vmatprep.subr.bf16.mxu1 %v5377_v31 }
 0x86f   : > { %v2750_v19 = vmax.f32 %v2742_v15, 0.0 }
 0x870   : > { %v6083_v20 = vpack.c.bf16 %v2749_v17, %v2747_v16  ;;  %v5380_v16 = vld [vmem:[#allocation7 + $0x2c] ss:$16 sps:$4 sm:$0xff]  }
 0x871   : > { %v6085_v21 = vpack.c.bf16 %v2750_v19, %v2748_v18  ;;  %3722 = vmatpush1.bf16.msra.mxu1 %v5375_v32 }
 0x872   : > { %3723 = vmatprep.subr.bf16.mxu1 %v5383_v33 }
 0x873   : > { %3011 = vmatprep.mubr.bf16.mxu1 %v6085_v21 }
 0x874   : > { %3012 = vmatmul.mubr.bf16.gmra.mrb[36].mxu1 %v6083_v20 }
 0x875   : > { %3724 = vmatpush1.bf16.msra.mxu1 %v5381_v34  ;;  %v5384_v34 = vld [vmem:[#allocation7 + $0x48] ss:$16 sps:$4 sm:$0xff]  }
 0x876   : > { %3725 = vmatprep.subr.bf16.mxu1 %v5389_v36  ;;  %v5392_v36 = vld [vmem:[#allocation7 + $0x6c] ss:$16 sps:$4 sm:$0xff]  }
 0x879   : > { %3726 = vmatpush1.bf16.msra.mxu1 %v5387_v37  ;;  %v5390_v37 = vld [vmem:[#allocation7 + $0x68] ss:$16 sps:$4 sm:$0xff]  }
 0x87a   : > { %3727 = vmatprep.subr.bf16.mxu1 %v5395_v38  ;;  %v5398_v38 = vld [vmem:[#allocation7 + $0x8c] ss:$16 sps:$4 sm:$0xff]  }
 0x87d   : > { %3728 = vmatpush1.bf16.msra.mxu1 %v5393_v5  ;;  %v5396_v5 = vld [vmem:[#allocation7 + $0x88] ss:$16 sps:$4 sm:$0xff]  }
 0x87e   : > { %3729 = vmatprep.subr.bf16.mxu1 %v5401_v39  ;;  %v5404_v39 = vld [vmem:[#allocation7 + $0xac] ss:$16 sps:$4 sm:$0xff]  }
 0x881   : > { %3730 = vmatpush1.bf16.msra.mxu1 %v5399_v40  ;;  %v5402_v40 = vld [vmem:[#allocation7 + $0xa8] ss:$16 sps:$4 sm:$0xff]  }
 0x882   : > { %3731 = vmatprep.subr.bf16.mxu1 %v5407_v11  ;;  %v5410_v11 = vld [vmem:[#allocation7 + $0xcc] ss:$16 sps:$4 sm:$0xff]  }
 0x885   : > { %3732 = vmatpush1.bf16.msra.mxu1 %v5405_v42  ;;  %v5408_v42 = vld [vmem:[#allocation7 + $0xc8] ss:$16 sps:$4 sm:$0xff]  }
 0x886   : > { %3733 = vmatprep.subr.bf16.mxu1 %v5413_v43  ;;  %v5416_v43 = vld [vmem:[#allocation7 + $0xec] ss:$16 sps:$4 sm:$0xff]  }
 0x889   : > { %3734 = vmatpush1.bf16.msra.mxu1 %v5411_v44  ;;  %v5414_v44 = vld [vmem:[#allocation7 + $0xe8] ss:$16 sps:$4 sm:$0xff]  }
 0x88a   : > { %3735 = vmatprep.subr.bf16.mxu1 %v5419_v45  ;;  %v5422_v45 = vld [vmem:[#allocation7 + $0x10c] ss:$16 sps:$4 sm:$0xff]  }
 0x88d   : > { %3736 = vmatpush1.bf16.msra.mxu1 %v5417_v48  ;;  %v5420_v48 = vld [vmem:[#allocation7 + $0x108] ss:$16 sps:$4 sm:$0xff]  }
 0x88e   : > { %3737 = vmatprep.subr.bf16.mxu1 %v5425_v49  ;;  %v5428_v49 = vld [vmem:[#allocation7 + $0x12c] ss:$16 sps:$4 sm:$0xff]  }
 0x891   : > { %3738 = vmatpush1.bf16.msra.mxu1 %v5423_v50  ;;  %v5426_v50 = vld [vmem:[#allocation7 + $0x128] ss:$16 sps:$4 sm:$0xff]  }
 0x892   : > { %3739 = vmatprep.subr.bf16.mxu1 %v5431_v51  ;;  %v5434_v51 = vld [vmem:[#allocation7 + $0x14c] ss:$16 sps:$4 sm:$0xff]  }
 0x895   : > { %3740 = vmatpush1.bf16.msra.mxu1 %v5429_v52  ;;  %v5432_v52 = vld [vmem:[#allocation7 + $0x148] ss:$16 sps:$4 sm:$0xff]  }
 0x896   : > { %3741 = vmatprep.subr.bf16.mxu1 %v5437_v53  ;;  %v5440_v53 = vld [vmem:[#allocation7 + $0x16c] ss:$16 sps:$4 sm:$0xff]  }
 0x899   : > { %3742 = vmatpush1.bf16.msra.mxu1 %v5435_v54  ;;  %v5438_v54 = vld [vmem:[#allocation7 + $0x168] ss:$16 sps:$4 sm:$0xff]  }
 0x89a   : > { %3743 = vmatprep.subr.bf16.mxu1 %v5443_v55  ;;  %v5446_v55 = vld [vmem:[#allocation7 + $0x18c] ss:$16 sps:$4 sm:$0xff]  }
 0x89d   : > { %3744 = vmatpush1.bf16.msra.mxu1 %v5441_v27  ;;  %v5444_v27 = vld [vmem:[#allocation7 + $0x188] ss:$16 sps:$4 sm:$0xff]  }
 0x89e   : > { %3745 = vmatprep.subr.bf16.mxu1 %v5449_v29 }
 0x93f   : > { %v3003_v62 = vpop.f32.mrb[32].mxu1 }
 0x940   : > { %v3004_v63 = vadd.f32 %v3003_v62, %v2802_v58  ;;  %v3005_v0 = vpop.f32.mrb[33].mxu1  ;;  %v5450_v62 = vld [vmem:[#allocation7 + $0x1a8] ss:$16 sps:$4 sm:$0xff]  }
 0x941   : > { %v3006_v2 = vadd.f32 %v3005_v0, %v2806_v59  ;;  %v3007_v3 = vpop.f32.mrb[34].mxu1  ;;  %v5458_v0 = vld [vmem:[#allocation7 + $0x1cc] ss:$16 sps:$4 sm:$0xff]  }
 0x942   : > { %v3008_v4 = vadd.f32 %v3007_v3, %v2802_v58  ;;  %v3009_v35 = vpop.f32.mrb[35].mxu1  ;;  %v3022_v7 = vmax.f32 %v3004_v63, 0.0  ;;  %v5455_v63 = vld [vmem:[#allocation7 + $0x1c4] ss:$16 sps:$4 sm:$0xff]   ;;  %v5456_v3 = vld [vmem:[#allocation7 + $0x1c8] ss:$16 sps:$4 sm:$0xff]  }
 0x943   : > { %v3010_v6 = vadd.f32 %v3009_v35, %v2806_v59  ;;  %v3023_v46 = vmax.f32 %v3006_v2, 0.0  ;;  %v5453_v2 = vld [vmem:[#allocation7 + $0x1c0] ss:$16 sps:$4 sm:$0xff]   ;;  %v5464_v35 = vld [vmem:[#allocation7 + $0x1ec] ss:$16 sps:$4 sm:$0xff]  }
 0x944   : > { %v3024_v41 = vmax.f32 %v3008_v4, 0.0  ;;  %v5461_v4 = vld [vmem:[#allocation7 + $0x1e4] ss:$16 sps:$4 sm:$0xff]  }
 0x945   : > { %v3025_v9 = vmax.f32 %v3010_v6, 0.0  ;;  %v5459_v6 = vld [vmem:[#allocation7 + $0x1e0] ss:$16 sps:$4 sm:$0xff]  }
 0x946   : > { %v3030_v10 = vpack.c.bf16 %v3024_v41, %v3022_v7  ;;  %v5462_v7 = vld [vmem:[#allocation7 + $0x1e8] ss:$16 sps:$4 sm:$0xff]   ;;  %v5465_v41 = vld [vmem:[#allocation9 + $0x40] sm:$0xff]  }
 0x947   : > { %v3031_v47 = vpack.c.bf16 %v3025_v9, %v3023_v46  ;;  %v3013_v12 = vpop.f32.mrb[36].mxu1  ;;  %v4660_v46 = vld [vmem:[%s6188_s29 + $0x6] sm:$0x3] }
 0x948   : > { %v3014_v14 = vadd.f32 %v3013_v12, %v2802_v58  ;;  %v3015_v15 = vpop.f32.mrb[37].mxu1  ;;  %v3073_v9 = vrot.slane %v4660_v46, %v5972_v26  ;;  %v2755_v12 = vunpack.c.l.bf16 %v6073_v1 }
 0x949   : > { %v3016_v17 = vadd.f32 %v3015_v15, %v2806_v59  ;;  %v3017_v18 = vpop.f32.mrb[38].mxu1  ;;  %3272 = vmatprep.mubr.bf16.mxu0 %v3031_v47  ;;  %v2756_v15 = vunpack.c.l.bf16 %v6077_v8 }
 0x94a   : > { %v3018_v19 = vadd.f32 %v3017_v18, %v2802_v58  ;;  %v3019_v56 = vpop.f32.mrb[39].mxu1  ;;  %3273 = vmatmul.mubr.bf16.vlgmr.msra.gmra.mrb[36].mxu0 %v3030_v10  ;;  %v3026_v23 = vmax.f32 %v3014_v14, 0.0  ;;  %v5452_v58 = vld [vmem:[#allocation7 + $0x1ac] ss:$16 sps:$4 sm:$0xff]   ;;  %v3077_v10 = vrot.slane %v4660_v46, %v5978_v28 }
 0x94b   : > { %v3020_v57 = vadd.f32 %v3019_v56, %v2806_v59  ;;  %3773 = vmatpush1.bf16.msra.mxu0 %v5372_v13  ;;  %v3027_v30 = vmax.f32 %v3016_v17, 0.0  ;;  %v5447_v59 = vld [vmem:[#allocation7 + $0x1a0] ss:$16 sps:$4 sm:$0xff]   ;;  %v5479_v46 = vld [vmem:[#allocation9 + $0x78] sm:$0xff]  }
 0x94c   : > { %v3028_v60 = vmax.f32 %v3018_v19, 0.0  ;;  %3774 = vmatprep.subr.bf16.mxu0 %v5380_v16  ;;  %3746 = vmatpush1.bf16.msra.mxu1 %v5447_v59  ;;  %v2757_v19 = vunpack.c.h.bf16 %v6073_v1  ;;  %v2760_v1 = vunpack.c.l.bf16 %v6085_v21 }
 0x94d   : > { %v3029_v31 = vmax.f32 %v3020_v57, 0.0  ;;  %3747 = vmatprep.subr.bf16.mxu1 %v5455_v63 }
 0x94e   : > { %v3032_v32 = vpack.c.bf16 %v3028_v60, %v3026_v23  ;;  %v2758_v23 = vunpack.c.h.bf16 %v6077_v8 }
 0x94f   : > { %v3033_v33 = vpack.c.bf16 %v3029_v31, %v3027_v30  ;;  %3775 = vmatpush1.bf16.msra.mxu0 %v5378_v22 }
 0x950   : > { %3776 = vmatprep.subr.bf16.mxu0 %v5386_v61  ;;  %3748 = vmatpush1.bf16.msra.mxu1 %v5453_v2  ;;  %v5472_v2 = vld [vmem:[#allocation9 + $0x18] sm:$0xff]  }
 0x951   : > { %3282 = vmatprep.mubr.bf16.mxu0 %v3033_v33  ;;  %3749 = vmatprep.subr.bf16.mxu1 %v5461_v4  ;;  %v5474_v4 = vld [vmem:[#allocation9 + $0x20] sm:$0xff]  }
 0x952   : > { %3283 = vmatmul.mubr.bf16.gmra.mrb[40].mxu0 %v3032_v32 }
 0x953   : > { %3777 = vmatpush1.bf16.msra.mxu0 %v5384_v34 }
 0x954   : > { %3778 = vmatprep.subr.bf16.mxu0 %v5392_v36  ;;  %3750 = vmatpush1.bf16.msra.mxu1 %v5459_v6  ;;  %v5476_v6 = vld [vmem:[#allocation9 + $0x28] sm:$0xff]  }
 0x955   : > { %4797 = vmatprep.subr.bf16.mxu1 %v5465_v41  ;;  %v5478_v41 = vld [vmem:[#allocation9 + $0x30] sm:$0xff]  }
 0x957   : > { %3779 = vmatpush1.bf16.msra.mxu0 %v5390_v37 }
 0x958   : > { %3780 = vmatprep.subr.bf16.mxu0 %v5398_v38  ;;  %v2759_v38 = vunpack.c.l.bf16 %v6083_v20 }
 0x95b   : > { %3781 = vmatpush1.bf16.msra.mxu0 %v5396_v5 }
 0x95c   : > { %3782 = vmatprep.subr.bf16.mxu0 %v5404_v39 }
 0x95f   : > { %3783 = vmatpush1.bf16.msra.mxu0 %v5402_v40 }
 0x960   : > { %3784 = vmatprep.subr.bf16.mxu0 %v5410_v11 }
 0x963   : > { %3785 = vmatpush1.bf16.msra.mxu0 %v5408_v42 }
 0x964   : > { %3786 = vmatprep.subr.bf16.mxu0 %v5416_v43  ;;  %v5466_v43 = vld [vmem:[#allocation9] sm:$0xff]  }
 0x967   : > { %3787 = vmatpush1.bf16.msra.mxu0 %v5414_v44  ;;  %v2761_v44 = vunpack.c.h.bf16 %v6083_v20 }
 0x968   : > { %3788 = vmatprep.subr.bf16.mxu0 %v5422_v45 }
 0x96b   : > { %3789 = vmatpush1.bf16.msra.mxu0 %v5420_v48 }
 0x96c   : > { %3790 = vmatprep.subr.bf16.mxu0 %v5428_v49  ;;  %v5467_v49 = vld [vmem:[#allocation9 + $0x48] sm:$0xff]  }
 0x96f   : > { %3791 = vmatpush1.bf16.msra.mxu0 %v5426_v50 }
 0x970   : > { %3792 = vmatprep.subr.bf16.mxu0 %v5434_v51  ;;  %v2762_v51 = vunpack.c.h.bf16 %v6085_v21  ;;  %v5471_v21 = vld [vmem:[#allocation9 + $0x58] sm:$0xff]  }
 0x973   : > { %3793 = vmatpush1.bf16.msra.mxu0 %v5432_v52 }
 0x974   : > { %3794 = vmatprep.subr.bf16.mxu0 %v5440_v53 }
 0x977   : > { %3795 = vmatpush1.bf16.msra.mxu0 %v5438_v54 }
 0x978   : > { %3796 = vmatprep.subr.bf16.mxu0 %v5446_v55  ;;  %v5468_v55 = vld [vmem:[#allocation9 + $0x8] sm:$0xff]  }
 0x97b   : > { %3797 = vmatpush1.bf16.msra.mxu0 %v5444_v27 }
 0x97c   : > { %3798 = vmatprep.subr.bf16.mxu0 %v5452_v58  ;;  %v5469_v58 = vld [vmem:[#allocation9 + $0x50] sm:$0xff]  }
 0x97f   : > { %3799 = vmatpush1.bf16.msra.mxu0 %v5450_v62 }
 0x980   : > { %3800 = vmatprep.subr.bf16.mxu0 %v5458_v0  ;;  %v5470_v0 = vld [vmem:[#allocation9 + $0x10] sm:$0xff]  }
 0x983   : > { %3801 = vmatpush1.bf16.msra.mxu0 %v5456_v3  ;;  %v5473_v3 = vld [vmem:[#allocation9 + $0x60] sm:$0xff]  }
 0x984   : > { %3802 = vmatprep.subr.bf16.mxu0 %v5464_v35  ;;  %v5475_v35 = vld [vmem:[#allocation9 + $0x68] sm:$0xff]  }
 0x987   : > { %3803 = vmatpush1.bf16.msra.mxu0 %v5462_v7  ;;  %v5477_v7 = vld [vmem:[#allocation9 + $0x70] sm:$0xff]  }
 0xa1d   : > { %v3274_v47 = vpop.f32.mrb[36].mxu0 }
 0xa1e   : > { %v3275_v13 = vadd.f32 %v3274_v47, %v3073_v9  ;;  %v3276_v14 = vpop.f32.mrb[37].mxu0  ;;  %v3389_v47 = vsub.s32 2, %v5969_v25 }
 0xa1f   : > { %v3277_v16 = vadd.f32 %v3276_v14, %v3077_v10  ;;  %v3278_v17 = vpop.f32.mrb[38].mxu0 }
 0xa20   : > { %v3293_v18 = vadd.f32 %v3275_v13, %v2755_v12  ;;  %v3279_v56 = vadd.f32 %v3278_v17, %v3073_v9  ;;  %v3280_v57 = vpop.f32.mrb[39].mxu0  ;;  %v3377_v12 = vld [vmem:[%s6189_s22] sm:$0xf]  ;;  %v3393_v13 = vsub.s32 3, %v5969_v25 }
 0xa21   : > { %v3294_v22 = vadd.f32 %v3277_v16, %v2756_v15  ;;  %v3281_v60 = vadd.f32 %v3280_v57, %v3077_v10  ;;  %v3382_v14 = vrot.slane %v3377_v12, %v5972_v26  ;;  %v3390_v15 = vrot.slane %v3377_v12, %v3389_v47 }
 0xa22   : > { %v3295_v61 = vadd.f32 %v3279_v56, %v2757_v19  ;;  %v3301_v31 = vmax.f32 %v3293_v18, 0.0  ;;  %v3386_v16 = vrot.slane %v3377_v12, %v5978_v28  ;;  %v3394_v17 = vrot.slane %v3377_v12, %v3393_v13 }
 0xa23   : > { %v3296_v30 = vadd.f32 %v3281_v60, %v2758_v23  ;;  %v3302_v33 = vmax.f32 %v3294_v22, 0.0 }
 0xa24   : > { %v3303_v32 = vmax.f32 %v3295_v61, 0.0 }
 0xa25   : > { %v3304_v34 = vmax.f32 %v3296_v30, 0.0  ;;  %v3284_v36 = vpop.f32.mrb[40].mxu0 }
 0xa26   : > { %v3309_v37 = vpack.c.bf16 %v3303_v32, %v3301_v31  ;;  %v3285_v5 = vadd.f32 %v3284_v36, %v3073_v9  ;;  %v3286_v39 = vpop.f32.mrb[41].mxu0 }
 0xa27   : > { %v3287_v40 = vadd.f32 %v3286_v39, %v3077_v10  ;;  %v3288_v11 = vpop.f32.mrb[42].mxu0  ;;  %v3310_v42 = vpack.c.bf16 %v3304_v34, %v3302_v33 }
 0xa28   : > { %v3297_v8 = vadd.f32 %v3285_v5, %v2759_v38  ;;  %v3289_v45 = vadd.f32 %v3288_v11, %v3073_v9  ;;  %v3290_v48 = vpop.f32.mrb[43].mxu0  ;;  %v5480_v9 = vld [vmem:[#allocation9 + $0x38] sm:$0xff]  }
 0xa29   : > { %v3298_v50 = vadd.f32 %v3287_v40, %v2760_v1  ;;  %v3291_v52 = vadd.f32 %v3290_v48, %v3077_v10  ;;  %3751 = vmatprep.mubr.bf16.mxu1 %v3310_v42  ;;  %3804 = vmatprep.mubr.bf16.mxu0 %v3310_v42  ;;  %v5481_v10 = vld [vmem:[#allocation9 + $0xc0] sm:$0xff]  }
 0xa2a   : > { %v3299_v53 = vadd.f32 %v3289_v45, %v2761_v44  ;;  %3752 = vmatmul.mubr.bf16.vlgmr.msra.gmra.mrb[40].mxu1 %v3309_v37  ;;  %3805 = vmatmul.mubr.bf16.vlgmr.msra.gmra.mrb[44].mxu0 %v3309_v37  ;;  %v3305_v27 = vmax.f32 %v3297_v8, 0.0 }
 0xa2b   : > { %v3300_v54 = vadd.f32 %v3291_v52, %v2762_v51  ;;  %4798 = vmatpush3.bf16.msra.mxu1 %v5466_v43  ;;  %v3306_v20 = vmax.f32 %v3298_v50, 0.0 }
 0xa2c   : > { %v3307_v29 = vmax.f32 %v3299_v53, 0.0  ;;  %4799 = vmatprep.subr.bf16.mxu1 %v5467_v49  ;;  %v5482_v49 = vld [vmem:[#allocation9 + $0x80] sm:$0xff]  }
 0xa2d   : > { %v3308_v59 = vmax.f32 %v3300_v54, 0.0  ;;  %v5483_v54 = vld [vmem:[#allocation9 + $0xc8] sm:$0xff]  }
 0xa2e   : > { %v3311_v62 = vpack.c.bf16 %v3307_v29, %v3305_v27 }
 0xa2f   : > { %v3312_v63 = vpack.c.bf16 %v3308_v59, %v3306_v20  ;;  %4800 = vmatpush3.bf16.msra.mxu1 %v5468_v55 }
 0xa30   : > { %4801 = vmatprep.subr.bf16.mxu1 %v5469_v58 }
 0xa31   : > { %3761 = vmatprep.mubr.bf16.mxu1 %v3312_v63  ;;  %3814 = vmatprep.mubr.bf16.mxu0 %v3312_v63 }
 0xa32   : > { %3762 = vmatmul.mubr.bf16.gmra.mrb[44].mxu1 %v3311_v62  ;;  %3815 = vmatmul.mubr.bf16.gmra.mrb[48].mxu0 %v3311_v62 }
 0xa33   : > { %4802 = vmatpush3.bf16.msra.mxu1 %v5470_v0 }
 0xa34   : > { %4803 = vmatprep.subr.bf16.mxu1 %v5471_v21 }
 0xa37   : > { %4804 = vmatpush3.bf16.msra.mxu1 %v5472_v2  ;;  %v5484_v2 = vld [vmem:[#allocation9 + $0x88] sm:$0xff]  }
 0xa38   : > { %4805 = vmatprep.subr.bf16.mxu1 %v5473_v3 }
 0xa3b   : > { %4806 = vmatpush3.bf16.msra.mxu1 %v5474_v4 }
 0xa3c   : > { %4807 = vmatprep.subr.bf16.mxu1 %v5475_v35 }
 0xa3f   : > { %4808 = vmatpush3.bf16.msra.mxu1 %v5476_v6 }
 0xa40   : > { %4809 = vmatprep.subr.bf16.mxu1 %v5477_v7  ;;  %v5485_v7 = vld [vmem:[#allocation9 + $0xd0] sm:$0xff]  }
 0xa43   : > { %4810 = vmatpush3.bf16.msra.mxu1 %v5478_v41 }
 0xa44   : > { %4811 = vmatprep.subr.bf16.mxu1 %v5479_v46 }
 0xa47   : > { %4812 = vmatpush3.bf16.msra.mxu1 %v5480_v9 }
 0xa48   : > { %4825 = vmatprep.subr.bf16.mxu1 %v5481_v10 }
 0xafd   : > { %v3753_v18 = vpop.f32.mrb[40].mxu1  ;;  %v3806_v19 = vpop.f32.mrb[44].mxu0 }
 0xafe   : > { %v3754_v56 = vadd.f32 %v3753_v18, %v3382_v14  ;;  %v3807_v57 = vadd.f32 %v3806_v19, %v3390_v15  ;;  %v3755_v22 = vpop.f32.mrb[41].mxu1  ;;  %v3808_v23 = vpop.f32.mrb[45].mxu0  ;;  %v5489_v18 = vld [vmem:[#allocation9 + $0xe0] sm:$0xff]  }
 0xaff   : > { %v3756_v60 = vadd.f32 %v3755_v22, %v3386_v16  ;;  %v3809_v61 = vadd.f32 %v3808_v23, %v3394_v17  ;;  %v3757_v30 = vpop.f32.mrb[42].mxu1  ;;  %v3810_v31 = vpop.f32.mrb[46].mxu0  ;;  %v5490_v19 = vld [vmem:[#allocation9 + $0xa0] sm:$0xff]   ;;  %v5493_v22 = vld [vmem:[#allocation9 + $0xf0] sm:$0xff]  }
 0xb00   : > { %v3758_v32 = vadd.f32 %v3757_v30, %v3382_v14  ;;  %v3811_v33 = vadd.f32 %v3810_v31, %v3390_v15  ;;  %v3759_v34 = vpop.f32.mrb[43].mxu1  ;;  %v3812_v25 = vpop.f32.mrb[47].mxu0  ;;  %v3825_v37 = vmax.f32 %v3754_v56, 0.0  ;;  %v3827_v38 = vmax.f32 %v3807_v57, 0.0  ;;  %v5491_v56 = vld [vmem:[#allocation9 + $0xe8] sm:$0xff]   ;;  %v5494_v23 = vld [vmem:[#allocation9 + $0xb0] sm:$0xff]  }
 0xb01   : > { %v3760_v36 = vadd.f32 %v3759_v34, %v3386_v16  ;;  %v3813_v26 = vadd.f32 %v3812_v25, %v3394_v17  ;;  %v3826_v39 = vmax.f32 %v3756_v60, 0.0  ;;  %v3828_v1 = vmax.f32 %v3809_v61, 0.0  ;;  %v5492_v57 = vld [vmem:[#allocation9 + $0xa8] sm:$0xff]   ;;  %v5495_v60 = vld [vmem:[#allocation9 + $0xf8] sm:$0xff]  }
 0xb02   : > { %v3829_v28 = vmax.f32 %v3758_v32, 0.0  ;;  %v3831_v5 = vmax.f32 %v3811_v33, 0.0  ;;  %v5496_v61 = vld [vmem:[#allocation9 + $0xb8] sm:$0xff]  }
 0xb03   : > { %v3830_v40 = vmax.f32 %v3760_v36, 0.0  ;;  %v3832_v11 = vmax.f32 %v3813_v26, 0.0 }
 0xb04   : > { %v3841_v42 = vpack.c.bf16 %v3829_v28, %v3825_v37  ;;  %v6114_v43 = vpack.c.bf16 %v3831_v5, %v3827_v38 }
 0xb05   : > { %v3842_v8 = vpack.c.bf16 %v3830_v40, %v3826_v39  ;;  %v3844_v44 = vpack.c.bf16 %v3832_v11, %v3828_v1  ;;  %v3763_v45 = vpop.f32.mrb[44].mxu1  ;;  %v3816_v48 = vpop.f32.mrb[48].mxu0  ;;  %v4757_v39 = vld [vmem:[%s6190_s30] ss:$0 sm:$0xff]  ;;  %v6121_v1 = vand.u32 127, %v704_v24 }
 0xb06   : > { %v3764_v50 = vadd.f32 %v3763_v45, %v3382_v14  ;;  %v3817_v51 = vadd.f32 %v3816_v48, %v3390_v15  ;;  %v3765_v52 = vpop.f32.mrb[45].mxu1  ;;  %v3818_v53 = vpop.f32.mrb[49].mxu0 }
 0xb07   : > { %v3766_v55 = vadd.f32 %v3765_v52, %v3386_v16  ;;  %v3819_v27 = vadd.f32 %v3818_v53, %v3394_v17  ;;  %v3767_v29 = vpop.f32.mrb[46].mxu1  ;;  %v3820_v58 = vpop.f32.mrb[50].mxu0  ;;  %4144 = vmatprep.mubr.bf16.mxu1 %v3842_v8  ;;  %vm4212_vm6 = vcmp.lt.s32.totalorder %v6121_v1, 12 }
 0xb08   : > { %v3768_v20 = vadd.f32 %v3767_v29, %v3382_v14  ;;  %v3821_v59 = vadd.f32 %v3820_v58, %v3390_v15  ;;  %v3769_v62 = vpop.f32.mrb[47].mxu1  ;;  %v3822_v63 = vpop.f32.mrb[51].mxu0  ;;  %4145 = vmatmul.mubr.bf16.vlgmr.msra.gmra.mrb[48].mxu1 %v3841_v42  ;;  %v3833_v3 = vmax.f32 %v3764_v50, 0.0  ;;  %v3835_v4 = vmax.f32 %v3817_v51, 0.0  ;;  %v5486_v15 = vld [vmem:[#allocation9 + $0x90] sm:$0xff]  }
 0xb09   : > { %v3770_v0 = vadd.f32 %v3769_v62, %v3386_v16  ;;  %v3823_v21 = vadd.f32 %v3822_v63, %v3394_v17  ;;  %4826 = vmatpush3.bf16.msra.mxu1 %v5482_v49  ;;  %v3834_v41 = vmax.f32 %v3766_v55, 0.0  ;;  %v3836_v46 = vmax.f32 %v3819_v27, 0.0  ;;  %v5487_v16 = vld [vmem:[#allocation9 + $0xd8] sm:$0xff]  }
 0xb0a   : > { %v3837_v35 = vmax.f32 %v3768_v20, 0.0  ;;  %v3839_v6 = vmax.f32 %v3821_v59, 0.0  ;;  %4827 = vmatprep.subr.bf16.mxu1 %v5483_v54  ;;  %v5488_v17 = vld [vmem:[#allocation9 + $0x98] sm:$0xff]  }
 0xb0b   : > { %v3838_v9 = vmax.f32 %v3770_v0, 0.0  ;;  %v3840_v10 = vmax.f32 %v3823_v21, 0.0 }
 0xb0c   : > { %v3845_v47 = vpack.c.bf16 %v3837_v35, %v3833_v3  ;;  %v3847_v12 = vpack.c.bf16 %v3839_v6, %v3835_v4 }
 0xb0d   : > { %v3846_v13 = vpack.c.bf16 %v3838_v9, %v3834_v41  ;;  %v3848_v14 = vpack.c.bf16 %v3840_v10, %v3836_v46  ;;  %4828 = vmatpush3.bf16.msra.mxu1 %v5484_v2 }
 0xb0e   : > { %4829 = vmatprep.subr.bf16.mxu1 %v5485_v7 }
 0xb0f   : > { %4152 = vmatprep.mubr.bf16.mxu1 %v3846_v13 }
 0xb10   : > { %4153 = vmatmul.mubr.bf16.gmra.mrb[52].mxu1 %v3845_v47 }
 0xb11   : > { %4830 = vmatpush3.bf16.msra.mxu1 %v5486_v15  ;;  %4193 = vmatprep.mubr.bf16.mxu1 %v3844_v44 }
 0xb12   : > { %4831 = vmatprep.subr.bf16.mxu1 %v5487_v16 }
 0xb15   : > { %4832 = vmatpush3.bf16.msra.mxu1 %v5488_v17 }
 0xb16   : > { %4833 = vmatprep.subr.bf16.mxu1 %v5489_v18 }
 0xb19   : > { %4834 = vmatpush3.bf16.msra.mxu1 %v5490_v19 }
 0xb1a   : > { %4835 = vmatprep.subr.bf16.mxu1 %v5491_v56 }
 0xb1d   : > { %4836 = vmatpush3.bf16.msra.mxu1 %v5492_v57 }
 0xb1e   : > { %4837 = vmatprep.subr.bf16.mxu1 %v5493_v22 }
 0xb21   : > { %4838 = vmatpush3.bf16.msra.mxu1 %v5494_v23 }
 0xb22   : > { %4839 = vmatprep.subr.bf16.mxu1 %v5495_v60 }
 0xb25   : > { %4840 = vmatpush3.bf16.msra.mxu1 %v5496_v61 }
 0xb28   : > { %4194 = vmatmul.mubr.bf16.vlgmr.msra.gmra.mrb[56].mxu1 %v6114_v43 }
 0xb29   : > { %4201 = vmatprep.mubr.bf16.mxu1 %v3848_v14 }
 0xb30   : > { %4202 = vmatmul.mubr.bf16.gmra.mrb[60].mxu1 %v3847_v12 }
 0xbdb   : > { %v4813_v30 = vpop.f32.mrb[48].mxu1 }
 0xbdc   : > { %v4814_v31 = vpop.f32.mrb[49].mxu1 }
 0xbdd   : > { %v4815_v32 = vadd.f32 %v4814_v31, %v4813_v30  ;;  %v4816_v33 = vpop.f32.mrb[50].mxu1 }
 0xbde   : > { %v4817_v34 = vpop.f32.mrb[51].mxu1 }
 0xbdf   : > { %v4818_v25 = vadd.f32 %v4817_v34, %v4816_v33  ;;  %v4147_v42 = vadd.f32 %v4815_v32, %v4757_v39 }
 0xbe1   : > { %v4150_v45 = vadd.f32 %v4818_v25, %v4757_v39 }
 0xbe3   : > { %v4819_v36 = vpop.f32.mrb[52].mxu1 }
 0xbe4   : > { %v4820_v26 = vpop.f32.mrb[53].mxu1 }
 0xbe5   : > { %v4821_v37 = vadd.f32 %v4820_v26, %v4819_v36  ;;  %v4822_v38 = vpop.f32.mrb[54].mxu1 }
 0xbe6   : > { %v4823_v28 = vpop.f32.mrb[55].mxu1 }
 0xbe7   : > { %v4824_v5 = vadd.f32 %v4823_v28, %v4822_v38  ;;  %v4155_v24 = vadd.f32 %v4821_v37, %v4757_v39 }
 0xbe9   : > { %v4158_v58 = vadd.f32 %v4824_v5, %v4757_v39 }
 0xbfb   : > { %v4841_v40 = vpop.f32.mrb[56].mxu1 }
 0xbfc   : > { %v4842_v11 = vpop.f32.mrb[57].mxu1 }
 0xbfd   : > { %v4843_v43 = vadd.f32 %v4842_v11, %v4841_v40  ;;  %v4844_v8 = vpop.f32.mrb[58].mxu1 }
 0xbfe   : > { %v4845_v44 = vpop.f32.mrb[59].mxu1 }
 0xbff   : > { %v4846_v48 = vadd.f32 %v4845_v44, %v4844_v8  ;;  %v4196_v49 = vadd.f32 %v4843_v43, %v4147_v42 }
 0xc01   : > { %v4213_v50 = vsel %vm4212_vm6, %v4196_v49, -1e+30  ;;  %v4199_v51 = vadd.f32 %v4846_v48, %v4150_v45 }
 0xc02   : > { %4217 = vmax.xlane.f32.xlu0 %v4213_v50 }
 0xc03   : > { %v4847_v52 = vpop.f32.mrb[60].mxu1  ;;  %v4214_v27 = vsel %vm4212_vm6, %v4199_v51, -1e+30 }
 0xc04   : > { %v4848_v53 = vpop.f32.mrb[61].mxu1 }
 0xc05   : > { %v4849_v54 = vadd.f32 %v4848_v53, %v4847_v52  ;;  %v4850_v55 = vpop.f32.mrb[62].mxu1 }
 0xc06   : > { %v4851_v29 = vpop.f32.mrb[63].mxu1  ;;  %4219 = vmax.xlane.f32.xlu0 %v4214_v27 }
 0xc07   : > { %v4852_v20 = vadd.f32 %v4851_v29, %v4850_v55  ;;  %v4204_v59 = vadd.f32 %v4849_v54, %v4155_v24 }
 0xc09   : > { %v4215_v62 = vsel %vm4212_vm6, %v4204_v59, -1e+30  ;;  %v4207_v63 = vadd.f32 %v4852_v20, %v4158_v58 }
 0xc0a   : > { %4221 = vmax.xlane.f32.xlu1 %v4215_v62 }
 0xc0b   : > { %v4216_v0 = vsel %vm4212_vm6, %v4207_v63, -1e+30 }
 0xc0e   : > { %4223 = vmax.xlane.f32.xlu1 %v4216_v0 }
 0xc8f   : > { %v4218_v21 = vpop.xlane.xlu0 %4217 }
 0xc90   : > { %v4225_v2 = vsub.f32 %v4213_v50, %v4218_v21 }
 0xc92   : > { %v4229_v3 = vmul.f32 1.442695, %v4225_v2 }
 0xc93   : > { %v4220_v4 = vpop.xlane.xlu0 %4219 }
 0xc94   : > { %5497 = vpow2.f32 %v4229_v3  ;;  %v4226_v35 = vsub.f32 %v4214_v27, %v4220_v4 }
 0xc96   : > { %v4231_v6 = vmul.f32 1.442695, %v4226_v35 }
 0xc97   : > { %v4222_v7 = vpop.xlane.xlu1 %4221 }
 0xc98   : > { %5499 = vpow2.f32 %v4231_v6  ;;  %v4227_v41 = vsub.f32 %v4215_v62, %v4222_v7 }
 0xc9a   : > { %v4233_v46 = vmul.f32 1.442695, %v4227_v41 }
 0xc9b   : > { %v4224_v9 = vpop.xlane.xlu1 %4223 }
 0xc9c   : > { %5501 = vpow2.f32 %v4233_v46  ;;  %v4228_v10 = vsub.f32 %v4216_v0, %v4224_v9 }
 0xc9e   : > { %v5498_v47 = vpop.eup %5497  ;;  %v4235_v12 = vmul.f32 1.442695, %v4228_v10 }
 0xc9f   : > { %4237 = vadd.xlane.f32.xlu0 %v5498_v47 }
 0xca0   : > { %5503 = vpow2.f32 %v4235_v12 }
 0xca2   : > { %v5500_v13 = vpop.eup %5499 }
 0xca3   : > { %4239 = vadd.xlane.f32.xlu1 %v5500_v13 }
 0xca6   : > { %v5502_v14 = vpop.eup %5501 }
 0xca7   : > { %4241 = vadd.xlane.f32.xlu0 %v5502_v14 }
 0xcaa   : > { %v5504_v15 = vpop.eup %5503 }
 0xcab   : > { %4243 = vadd.xlane.f32.xlu1 %v5504_v15 }
 0xd2c   : > { %v4238_v16 = vpop.xlane.xlu0 %4237 }
 0xd2d   : > { %5505 = vrcp.f32 %v4238_v16 }
 0xd30   : > { %v4240_v17 = vpop.xlane.xlu1 %4239 }
 0xd31   : > { %5507 = vrcp.f32 %v4240_v17 }
 0xd34   : > { %v4242_v18 = vpop.xlane.xlu0 %4241 }
 0xd35   : > { %5509 = vrcp.f32 %v4242_v18 }
 0xd37   : > { %v5506_v19 = vpop.eup %5505 }
 0xd38   : > { %v4246_v56 = vmul.f32 %v5506_v19, %v5498_v47  ;;  %v4244_v57 = vpop.xlane.xlu1 %4243 }
 0xd39   : > { %5511 = vrcp.f32 %v4244_v57 }
 0xd3a   : > { %v4253_v22 = vsel %vm4212_vm6, %v4246_v56, %v4196_v49 }
 0xd3b   : > { %v5508_v23 = vpop.eup %5507  ;;  %4257 = vst [vmem:[%s569_s21] sm:$0xff] %v4253_v22 }
 0xd3c   : > { %v4248_v60 = vmul.f32 %v5508_v23, %v5500_v13 }
 0xd3e   : > { %v4254_v61 = vsel %vm4212_vm6, %v4248_v60, %v4199_v51 }
 0xd3f   : > { %v5510_v30 = vpop.eup %5509  ;;  %4258 = vst [vmem:[%s569_s21 + $0x8] sm:$0xff] %v4254_v61 }
 0xd40   : > { %v4250_v31 = vmul.f32 %v5510_v30, %v5502_v14 }
 0xd42   : > { %v4255_v32 = vsel %vm4212_vm6, %v4250_v31, %v4204_v59 }
 0xd43   : > { %v5512_v33 = vpop.eup %5511  ;;  %4259 = vst [vmem:[%s569_s21 + $0x10] sm:$0xff] %v4255_v32 }
 0xd44   : > { %v4252_v34 = vmul.f32 %v5512_v33, %v5504_v15 }
 0xd46   : > { %v4256_v25 = vsel %vm4212_vm6, %v4252_v34, %v4207_v63 }
 0xd47   : > { %4260 = vst [vmem:[%s569_s21 + $0x18] sm:$0xff] %v4256_v25 }
 0xd48 PF: > { %s28_s18 = sadd.s32 1, %s5671_s18  }
 0xd49   : > { %p25_p7 = scmp.ge.s32.totalorder %s28_s18, 4  }
 0xd4b   :  { %27 = sbr.rel (!%p25_p7) target bundleno = 9 (0x9), region = 143 }
 0xd52   :  { %4283 = vsyncpa [#allocation3], 1 }
 0xd53   :  { %4285 = vsyncpa [#allocation3 + $0x1], 1 }
 0xd54   :  { %4286 = vsyncpa [#allocation5], 1 }
 0xd55   :  { %4287 = vsyncpa [#allocation8], 1 }

</bundles_post_ra>
